<compile_context>
chip_gen: v5e
topology: v5e:2x2
jax: 0.10.0
libtpu: 0.0.40
codegen_flags: <defaults>
</compile_context>

<pallas_src>
import functools

import jax
import jax.numpy as jnp
from jax.experimental import pallas as pl
from jax.experimental.pallas import tpu as pltpu

NFMS = (150, 150, 150)
KS = (3, 4, 5)
KMAX = max(KS)
NF_TOT = sum(NFMS)
LANE = 128


def _round_up(x, m):
    return pl.cdiv(x, m) * m


def cnn_text_kernel(emb_ref, wcat_ref, bmask_ref, fcw_ref, fcb_ref, out_ref, *, t_out):
    # emb block: (TB, Lp, H) bf16; fused conv weight (KMAX*H, 450) bf16;
    # bias+mask (t_out, 450) f32; fc weight (450, C_pad) bf16; fc bias (1, C_pad) f32;
    # out block (TB, C_pad) bf16.
    emb = emb_ref[...]
    TB, _, H = emb.shape

    # im2col for the largest kernel size: ONE wide-K MXU matmul covers all 3 branches
    # (smaller kernels see zero weight rows for their unused taps).
    cols = jnp.concatenate([emb[:, j:j + t_out, :] for j in range(KMAX)], axis=-1)
    lhs = cols.reshape(TB * t_out, KMAX * H)
    acc = jnp.dot(lhs, wcat_ref[...], preferred_element_type=jnp.float32)
    acc = acc.reshape(TB, t_out, NF_TOT)

    # Bias add + per-branch time-validity mask fused into one resident add: invalid
    # positions get -1e30 and ReLU clamps them to 0, which cannot change the (>=0) max.
    acc = jnp.maximum(acc + bmask_ref[...][None], 0.0)
    pooled = jnp.max(acc, axis=1)                       # max-over-time -> (TB, 450)

    # TODO(synk): dropout(p=0.1) is identity here (eval mode); training-mode dropout
    # would need pltpu.prng_* masking.
    out = jnp.dot(pooled.astype(fcw_ref.dtype), fcw_ref[...],
                  preferred_element_type=jnp.float32)
    out_ref[...] = (out + fcb_ref[...]).astype(out_ref.dtype)


def experiment10_forward(tokens, params, *, block_b=256, compute_dtype=jnp.bfloat16):
    B, L = tokens.shape
    H = params["embedding"].shape[1]
    C = params["fc_b"].shape[-1]
    assert L >= KMAX, "sequence length must be >= largest conv kernel size"

    C_pad = _round_up(C, LANE)                 # lane-dense logits tile (5 -> 128)
    # Conv-output length, multiple of 16 so in-kernel (TB,t,*)<->(TB*t,*) reshapes land
    # on exact sublane-tile boundaries for both bf16 (pack 16) and f32 (pack 8).
    t_out = _round_up(L - min(KS) + 1, 16)
    Lp = t_out + KMAX - 1

    # Batch block: multiple of 16 so MXU M = TB*t_out is a multiple of 256; keep >= 2
    # grid steps when the batch allows it (v7x shards the parallel axis over its 2 TCs).
    TB = min(_round_up(block_b, 16), _round_up(B, 16))
    if B >= 32 and _round_up(B, TB) // TB < 2:
        TB = max(16, _round_up((B + 1) // 2, 16))
    B_pad = _round_up(B, TB)

    # Glue: embedding gather stays in plain JAX; cast to bf16 to halve HBM->VMEM DMA.
    emb = jnp.take(params["embedding"], tokens, axis=0).astype(compute_dtype)
    emb = jnp.pad(emb, ((0, B_pad - B), (0, Lp - L), (0, 0)))

    # Fused conv weight: per-branch (k, H, F) -> (k*H, F), zero-pad K rows to KMAX*H,
    # concat along the feature dim -> (KMAX*H, 450).
    w_parts = []
    for i, (k, f) in enumerate(zip(KS, NFMS)):
        w = params[f"w{i + 1}"].reshape(k * H, f)
        w_parts.append(jnp.pad(w, ((0, (KMAX - k) * H), (0, 0))))
    w_cat = jnp.concatenate(w_parts, axis=-1).astype(compute_dtype)

    # Bias + per-branch validity folded into one resident (t_out, 450) f32 add tensor.
    bias_cat = jnp.concatenate([params[f"b{i + 1}"] for i in range(len(KS))], axis=-1)
    louts = [L - k + 1 for k in KS]
    col_lout = jnp.concatenate(
        [jnp.full((f,), lo, jnp.int32) for f, lo in zip(NFMS, louts)])
    t_idx = jnp.arange(t_out, dtype=jnp.int32)[:, None]
    bias_mask = jnp.where(t_idx < col_lout[None, :],
                          bias_cat[None, :].astype(jnp.float32),
                          jnp.float32(-1e30))

    # FC weight/bias padded along classes to a full 128-lane tile (unmasked vst).
    fc_w = jnp.pad(params["fc_w"], ((0, 0), (0, C_pad - C))).astype(compute_dtype)
    fc_b = jnp.pad(params["fc_b"].reshape(1, C),
                   ((0, 0), (0, C_pad - C))).astype(jnp.float32)

    full = lambda a: pl.BlockSpec(a.shape, lambda b: (0,) * a.ndim)
    kernel = functools.partial(cnn_text_kernel, t_out=t_out)

    out = pl.pallas_call(
        kernel,
        out_shape=jax.ShapeDtypeStruct((B_pad, C_pad), jnp.bfloat16),
        grid_spec=pltpu.PrefetchScalarGridSpec(
            num_scalar_prefetch=0,
            grid=(B_pad // TB,),
            in_specs=[
                pl.BlockSpec((TB, Lp, H), lambda b: (b, 0, 0)),   # embedded tokens
                full(w_cat), full(bias_mask), full(fc_w), full(fc_b),
            ],
            out_specs=pl.BlockSpec((TB, C_pad), lambda b: (b, 0)),
        ),
        compiler_params=pltpu.CompilerParams(
            dimension_semantics=("parallel",),
            vmem_limit_bytes=64 * 1024 * 1024),
    )(emb, w_cat, bias_mask, fc_w, fc_b)

    return out[:B, :C].astype(jnp.float32)


def reference_forward(tokens, params):
    # Pure-JAX f32 reference matching the PyTorch forward (eval mode).
    emb = jnp.take(params["embedding"], tokens, axis=0)           # (B, L, H)
    feats = []
    for i, k in enumerate(KS):
        w = params[f"w{i + 1}"]                                   # (k, H, F)
        b = params[f"b{i + 1}"]
        lout = tokens.shape[1] - k + 1
        taps = jnp.stack([emb[:, j:j + lout, :] for j in range(k)], axis=2)
        conv = jnp.einsum("btkh,khf->btf", taps, w) + b
        feats.append(jnp.max(jax.nn.relu(conv), axis=1))
    feat = jnp.concatenate(feats, axis=-1)
    return feat @ params["fc_w"] + params["fc_b"]


def init_params(key, vocab_size, hidden_dim, num_classes):
    keys = jax.random.split(key, 9)
    return {
        # pre_trained_embeddings (frozen in the torch module) — synthetic here.
        "embedding": jax.random.normal(keys[0], (vocab_size, hidden_dim), jnp.float32),
        # Conv1d weights stored as (k, H, F) (PyTorch (F, H, k) permuted); biases (F,).
        "w1": jax.random.normal(keys[1], (KS[0], hidden_dim, NFMS[0]), jnp.float32) * 0.05,
        "b1": jax.random.normal(keys[2], (NFMS[0],), jnp.float32) * 0.05,
        "w2": jax.random.normal(keys[3], (KS[1], hidden_dim, NFMS[1]), jnp.float32) * 0.05,
        "b2": jax.random.normal(keys[4], (NFMS[1],), jnp.float32) * 0.05,
        "w3": jax.random.normal(keys[5], (KS[2], hidden_dim, NFMS[2]), jnp.float32) * 0.05,
        "b3": jax.random.normal(keys[6], (NFMS[2],), jnp.float32) * 0.05,
        # Linear: (in=sum(NFMS), out=num_classes), bias (num_classes,).
        "fc_w": jax.random.normal(keys[7], (sum(NFMS), num_classes), jnp.float32) * 0.05,
        "fc_b": jax.random.normal(keys[8], (num_classes,), jnp.float32) * 0.05,
    }


if __name__ == "__main__":
    vocab_size, hidden_dim, num_classes = 50, 32, 5
    batch, seq = 2, 16   # seq must be >= max kernel size (5)

    key = jax.random.PRNGKey(0)
    pkey, tkey = jax.random.split(key)
    params = init_params(pkey, vocab_size, hidden_dim, num_classes)
    tokens = jax.random.randint(tkey, (batch, seq), 0, vocab_size, dtype=jnp.int32)

    out = experiment10_forward(tokens, params)
    jax.block_until_ready(out)
    assert out.shape == (batch, num_classes), out.shape
    assert bool(jnp.all(jnp.isfinite(out)))

    # bf16 compute/storage vs f32 reference: allow a generous tolerance.
    ref = reference_forward(tokens, params)
    err = float(jnp.max(jnp.abs(out - ref)))
    tol = 0.2 + 0.02 * float(jnp.max(jnp.abs(ref)))
    assert err < tol, f"max abs err {err} vs tol {tol}"
    print("KERNEL_OK")
</pallas_src>

<mosaic_0001>
module attributes {stable_mosaic.version = 11 : i64} {
  func.func @cnn_text_kernel(%arg0: i32, %arg1: memref<16x20x32xbf16, #tpu.memory_space<vmem>>, %arg2: memref<160x450xbf16, #tpu.memory_space<vmem>>, %arg3: memref<16x450xf32, #tpu.memory_space<vmem>>, %arg4: memref<450x128xbf16, #tpu.memory_space<vmem>>, %arg5: memref<1x128xf32, #tpu.memory_space<vmem>>, %arg6: memref<16x128xbf16, #tpu.memory_space<vmem>>) attributes {dimension_semantics = [#tpu.dimension_semantics<parallel>], iteration_bounds = array<i64: 1>, scalar_prefetch = 0 : i64, scratch_operands = 0 : i64, tpu.core_type = #tpu.core_type<tc>, window_params = [{transform_indices = @transform_0, window_bounds = array<i64: 16, 20, 32>}, {pipeline_mode = #tpu.pipeline_mode<synchronous>, transform_indices = @transform_1, window_bounds = array<i64: 160, 450>}, {pipeline_mode = #tpu.pipeline_mode<synchronous>, transform_indices = @transform_2, window_bounds = array<i64: 16, 450>}, {pipeline_mode = #tpu.pipeline_mode<synchronous>, transform_indices = @transform_3, window_bounds = array<i64: 450, 128>}, {pipeline_mode = #tpu.pipeline_mode<synchronous>, transform_indices = @transform_4, window_bounds = array<i64: 1, 128>}, {transform_indices = @transform_5, window_bounds = array<i64: 16, 128>}]} {
    %c0 = arith.constant 0 : index
    %c0_0 = arith.constant 0 : index
    %c0_1 = arith.constant 0 : index
    %0 = vector.load %arg1[%c0, %c0_0, %c0_1] : memref<16x20x32xbf16, #tpu.memory_space<vmem>>, vector<16x20x32xbf16>
    %1 = vector.extract_strided_slice %0 {offsets = [0, 0, 0], sizes = [16, 16, 32], strides = [1, 1, 1]} : vector<16x20x32xbf16> to vector<16x16x32xbf16>
    %2 = vector.extract_strided_slice %0 {offsets = [0, 1, 0], sizes = [16, 16, 32], strides = [1, 1, 1]} : vector<16x20x32xbf16> to vector<16x16x32xbf16>
    %3 = vector.extract_strided_slice %0 {offsets = [0, 2, 0], sizes = [16, 16, 32], strides = [1, 1, 1]} : vector<16x20x32xbf16> to vector<16x16x32xbf16>
    %4 = vector.extract_strided_slice %0 {offsets = [0, 3, 0], sizes = [16, 16, 32], strides = [1, 1, 1]} : vector<16x20x32xbf16> to vector<16x16x32xbf16>
    %5 = vector.extract_strided_slice %0 {offsets = [0, 4, 0], sizes = [16, 16, 32], strides = [1, 1, 1]} : vector<16x20x32xbf16> to vector<16x16x32xbf16>
    %6 = tpu.concatenate %1, %2, %3, %4, %5 in 2 : vector<16x16x32xbf16>, vector<16x16x32xbf16>, vector<16x16x32xbf16>, vector<16x16x32xbf16>, vector<16x16x32xbf16> -> vector<16x16x160xbf16>
    %7 = vector.shape_cast %6 : vector<16x16x160xbf16> to vector<256x160xbf16>
    %c0_2 = arith.constant 0 : index
    %c0_3 = arith.constant 0 : index
    %8 = vector.load %arg2[%c0_2, %c0_3] : memref<160x450xbf16, #tpu.memory_space<vmem>>, vector<160x450xbf16>
    %cst = arith.constant dense<0.000000e+00> : vector<256x450xf32>
    %9 = tpu.matmul %7, %8, %cst {dimension_numbers = #tpu.dot_dimension_numbers<[1], [0], [0], [1], [0, 0, 1, 1], [], []>} : vector<256x160xbf16>, vector<160x450xbf16>, vector<256x450xf32> -> vector<256x450xf32>
    %10 = vector.shape_cast %9 : vector<256x450xf32> to vector<16x16x450xf32>
    %c0_4 = arith.constant 0 : index
    %c0_5 = arith.constant 0 : index
    %11 = vector.load %arg3[%c0_4, %c0_5] : memref<16x450xf32, #tpu.memory_space<vmem>>, vector<16x450xf32>
    %12 = vector.shape_cast %11 : vector<16x450xf32> to vector<1x16x450xf32>
    %13 = vector.broadcast %12 : vector<1x16x450xf32> to vector<16x16x450xf32>
    %14 = arith.addf %10, %13 : vector<16x16x450xf32>
    %cst_6 = arith.constant 0.000000e+00 : f32
    %15 = vector.broadcast %cst_6 : f32 to vector<16x16x450xf32>
    %16 = arith.maximumf %14, %15 : vector<16x16x450xf32>
    %cst_7 = arith.constant dense<0xFF800000> : vector<16x450xf32>
    %17 = vector.multi_reduction <maximumf>, %16, %cst_7 [1] : vector<16x16x450xf32> to vector<16x450xf32>
    %18 = arith.truncf %17 : vector<16x450xf32> to vector<16x450xbf16>
    %c0_8 = arith.constant 0 : index
    %c0_9 = arith.constant 0 : index
    %19 = vector.load %arg4[%c0_8, %c0_9] : memref<450x128xbf16, #tpu.memory_space<vmem>>, vector<450x128xbf16>
    %cst_10 = arith.constant dense<0.000000e+00> : vector<16x128xf32>
    %20 = tpu.matmul %18, %19, %cst_10 {dimension_numbers = #tpu.dot_dimension_numbers<[1], [0], [0], [1], [0, 0, 1, 1], [], []>} : vector<16x450xbf16>, vector<450x128xbf16>, vector<16x128xf32> -> vector<16x128xf32>
    %c0_11 = arith.constant 0 : index
    %c0_12 = arith.constant 0 : index
    %21 = vector.load %arg5[%c0_11, %c0_12] : memref<1x128xf32, #tpu.memory_space<vmem>>, vector<1x128xf32>
    %22 = vector.broadcast %21 : vector<1x128xf32> to vector<16x128xf32>
    %23 = arith.addf %20, %22 : vector<16x128xf32>
    %24 = arith.truncf %23 : vector<16x128xf32> to vector<16x128xbf16>
    %c0_13 = arith.constant 0 : index
    %c0_14 = arith.constant 0 : index
    %25 = vector.load %arg6[%c0_13, %c0_14] : memref<16x128xbf16, #tpu.memory_space<vmem>>, vector<16x128xbf16>
    tpu.vector_store %arg6[%c0_13, %c0_14], %24 {strides = array<i32>} : memref<16x128xbf16, #tpu.memory_space<vmem>>, vector<16x128xbf16>,
    return
  }
  func.func @transform_0(%arg0: i32) -> (i32, i32, i32) {
    %c0_i32 = arith.constant 0 : i32
    %c0_i32_0 = arith.constant 0 : i32
    %c0_i32_1 = arith.constant 0 : i32
    return %arg0, %c0_i32, %c0_i32_0 : i32, i32, i32
  }
  func.func @transform_1(%arg0: i32) -> (i32, i32) {
    %c0_i32 = arith.constant 0 : i32
    %c0_i32_0 = arith.constant 0 : i32
    %c0_i32_1 = arith.constant 0 : i32
    return %c0_i32, %c0_i32_0 : i32, i32
  }
  func.func @transform_2(%arg0: i32) -> (i32, i32) {
    %c0_i32 = arith.constant 0 : i32
    %c0_i32_0 = arith.constant 0 : i32
    %c0_i32_1 = arith.constant 0 : i32
    return %c0_i32, %c0_i32_0 : i32, i32
  }
  func.func @transform_3(%arg0: i32) -> (i32, i32) {
    %c0_i32 = arith.constant 0 : i32
    %c0_i32_0 = arith.constant 0 : i32
    %c0_i32_1 = arith.constant 0 : i32
    return %c0_i32, %c0_i32_0 : i32, i32
  }
  func.func @transform_4(%arg0: i32) -> (i32, i32) {
    %c0_i32 = arith.constant 0 : i32
    %c0_i32_0 = arith.constant 0 : i32
    %c0_i32_1 = arith.constant 0 : i32
    return %c0_i32, %c0_i32_0 : i32, i32
  }
  func.func @transform_5(%arg0: i32) -> (i32, i32) {
    %c0_i32 = arith.constant 0 : i32
    %c0_i32_0 = arith.constant 0 : i32
    return %arg0, %c0_i32 : i32, i32
  }
}

</mosaic_0001>

<bundles_post_ra>
// kernel: tpu_custom_call.1
= control target key start
LH: loop header
LB: loop body
LE: loop exit
PB: predicated region body
PF: predicated region fallthrough
CT: control target
= control target key end

     0   :  { %10 = vsyncpa [#allocation3], 0  ;;  %s5391_s0 = inlined_call_operand.vmem [shape: bf16[16,20,32], index: 0, kind: input, shape index: {}]   ;;  %s5392_s1 = inlined_call_operand.vmem [shape: bf16[160,450], index: 1, kind: input, shape index: {}]   ;;  %s5393_s2 = inlined_call_operand.hbm [shape: f32[16,450], index: 2, kind: input, shape index: {}]   ;;  %s5394_s3 = inlined_call_operand.hbm [shape: bf16[450,128], index: 3, kind: input, shape index: {}]   ;;  %s5395_s4 = inlined_call_operand.vmem [shape: f32[1,128], index: 4, kind: input, shape index: {}]   ;;  %s5396_s5 = inlined_call_operand.hbm [shape: bf16[16,128], index: 5, kind: output, shape index: {}]  }
   0x1   :  { %11 = vsyncpa [#allocation6], 0 }
   0x2   :  { %12 = vsyncpa [#allocation4], 0  ;;  %s21_s20 = sshll.u32 %s5393_s2, 4  ;;  %s3788_s21 = smov [#allocation2]   ;;  %s22_s20 = int_to_ptr.hbm [resolvable:$true] %s21_s20 }
   0x3   :  { %s23_s22 = sshll.u32 %s3788_s21, 4  ;;  %s34_s25 = sshll.u32 %s5394_s3, 4  ;;  %s24_s22 = int_to_ptr.vmem [resolvable:$true] %s23_s22  ;;  %s35_s25 = int_to_ptr.hbm [resolvable:$true] %s34_s25 }
   0x4   :  { %s3789_s26 = smov 512   ;;  %s3790_s27 = smov 32  }
   0x5   :  { %29 = dma.hbm_to_vmem [thread:$0]  %s22_s20, 1024, %s24_s22, [#allocation3], %s3789_s26, %s3789_s26, %s3790_s27  }
   0x6   :  { %s3791_s28 = smov [#allocation5]   ;;  %s3792_s30 = smov 64  }
   0x7   :  { %s36_s29 = sshll.u32 %s3791_s28, 4  ;;  %s3793_s6 = smov 4   ;;  %s37_s29 = int_to_ptr.vmem [resolvable:$true] %s36_s29 }
   0x8   :  { %42 = dma.hbm_to_vmem [thread:$0]  %s35_s25, 3648, %s37_s29, [#allocation6], %s3792_s30, %s3792_s30, %s3793_s6  }
   0x9   :  { %3782 = dma.done.wait [#allocation3], 1024  }
   0xa   :  { %3783 = vsyncadd [#allocation3], 4294966272 }
   0xb   :  { %3784 = dma.done.wait [#allocation6], 3648  }
   0xc   :  { %3785 = vsyncadd [#allocation6], 4294963648  ;;  %v3413_v0 = vld [vmem:[%s5392_s1 + $0x120] sm:$0xf]  ;;  %v3658_v1 = vld [vmem:[%s5392_s1 + $0x12c] sm:$0xf0] }
   0xd   :  { %v3656_v2 = vld [vmem:[%s5392_s1 + $0x124] sm:$0xf]  ;;  %v3414_v3 = vor.u32 %v3658_v1, %v3413_v0  ;;  %v3415_v4 = vld [vmem:[%s5392_s1 + $0x130] sm:$0xf0]  ;;  %v3397_v5 = vld [vmem:[%s5392_s1 + $0x100] sm:$0xf] }
   0xe   :  { %v3654_v6 = vld [vmem:[%s5392_s1 + $0x10c] sm:$0xf0]  ;;  %v3418_v7 = vor.u32 %v3656_v2, %v3415_v4  ;;  %v3652_v8 = vld [vmem:[%s5392_s1 + $0x104] sm:$0xf]  ;;  %v3399_v9 = vld [vmem:[%s5392_s1 + $0x110] sm:$0xf0] }
   0xf   :  { %v3863_v10 = vld [vmem:[%s5391_s0] sm:$0xff]  ;;  %1260 = vmatpush.bf16.msra.mxu1 %v3414_v3  ;;  %v3398_v11 = vor.u32 %v3654_v6, %v3397_v5  ;;  %v56_v12 = vld [vmem:[%s5391_s0 + $0x8] sm:$0x3]  ;;  %v59_v13 = vld [vmem:[%s5391_s0 + $0x14] sm:$0x3]  ;;  %v3402_v14 = vor.u32 %v3652_v8, %v3399_v9  ;;  %vm713_vm0 = vcmask 1045504  }
  0x10   :  { %1438 = vmatpush.bf16.msra.mxu3 %v3418_v7  ;;  %v198_v15 = vunpack.c.l.b16 %v56_v12  ;;  %v232_v16 = vshrl.u32 %v3863_v10, 16  ;;  %v234_v17 = vshll.u32 %v3863_v10, 16  ;;  %v3876_v18 = vld [vmem:[%s5391_s0 + $0xc] sm:$0xff]  ;;  %v199_v19 = vunpack.c.l.b16 %v59_v13  ;;  %v62_v31 = vld [vmem:[%s5391_s0 + $0x20] sm:$0x3]  ;;  %v3895_v39 = vld [vmem:[%s5391_s0 + $0x18] sm:$0xff] }
  0x11   :  { %v714_v21 = vrot.slane %v3863_v10, 2  ;;  %vm762_vm1 = vcmask 261120   ;;  %vm230_vm2 = vsmask.f32 7424  ;;  %v246_v30 = vshll.u32 %v3876_v18, 16  ;;  %s3794_s9 = smov 96  }
  0x12   :  { %v214_v20 = vpack.c.b16 %v198_v15, %v198_v15  ;;  %v236_v22 = vrot.slane %v234_v17, 1  ;;  %v537_v23 = vrot.slane %v232_v16, 1  ;;  %v538_v24 = vrot.slane %v234_v17, 2  ;;  %v65_v62 = vld [vmem:[%s5391_s0 + $0x2c] sm:$0x3]  ;;  %v3923_v13 = vld [vmem:[%s5391_s0 + $0x24] sm:$0xff] }
  0x13   :  { %1261 = vmatpush.bf16.msra.mxu1 %v3398_v11  ;;  %v215_v29 = vpack.c.b16 %v199_v19, %v199_v19  ;;  %vm536_vm3 = vsmask.f32 6400  ;;  %v244_v38 = vshrl.u32 %v3876_v18, 16  ;;  %v200_v40 = vunpack.c.l.b16 %v62_v31  ;;  %s3795_s19 = smov [#allocation7]   ;;  %s3189_s22 = sshll.u32 %s5396_s5, 4  ;;  %s3190_s22 = int_to_ptr.hbm [resolvable:$true] %s3189_s22 }
  0x14   :  { %1439 = vmatpush.bf16.msra.mxu3 %v3402_v14  ;;  %v715_v25 = vrot.slane %v214_v20, 2  ;;  %v237_v26 = vor.u32 %v236_v22, %v232_v16  ;;  %v239_v27 = vshll.u32 %v214_v20, 16  ;;  %v540_v28 = vshrl.u32 %v214_v20, 16  ;;  %s3187_s20 = sshll.u32 %s3795_s19, 4  ;;  %s3188_s20 = int_to_ptr.vmem [resolvable:$true] %s3187_s20 }
  0x15   :  { %v539_v35 = vor.u32 %v538_v24, %v537_v23  ;;  %v459_v41 = vrot.slane %v3876_v18, 1  ;;  %v248_v43 = vrot.slane %v246_v30, 1  ;;  %v251_v44 = vshll.u32 %v215_v29, 16 }
  0x16   :  { %v3884_v32 = vsel %vm713_vm0, %v714_v21, %v715_v25  ;;  %v241_v33 = vrot.slane %v239_v27, 1  ;;  %v543_v34 = vrot.slane %v239_v27, 2  ;;  %v542_v36 = vrot.slane %v540_v28, 1  ;;  %v68_v27 = vld [vmem:[%s5391_s0 + $0x38] sm:$0x3] }
  0x17   :  { %5436 = vst [vmem:[#allocation11_spill] sm:$0xff] %v3884_v32  ;;  %3427 = vmatmul.msk.bf16.vlgmr.msra.gmra.mxu1 %vm762_vm1, %v3884_v32  ;;  %3443 = vmatmul.msk.bf16.vlgmr.msra.gmra.mxu3 %vm762_vm1, %v3884_v32  ;;  %v460_v45 = vrot.slane %v215_v29, 1  ;;  %vm455_vm4 = vcmask 1046528   ;;  %v456_v46 = vrot.slane %v3863_v10, 1  ;;  %v457_v47 = vrot.slane %v214_v20, 1 }
  0x18   :  { %v242_v37 = vsel %vm230_vm2, %v237_v26, %v241_v33  ;;  %v544_v42 = vor.u32 %v543_v34, %v542_v36  ;;  %v258_v48 = vshll.u32 %v3895_v39, 16  ;;  %v216_v51 = vpack.c.b16 %v200_v40, %v200_v40 }
  0x19   :  { %423 = vrot.lane.b32.xlu0 %v242_v37, %s3790_s27  ;;  %v461_v50 = vsel %vm455_vm4, %v459_v41, %v460_v45  ;;  %v546_v52 = vrot.slane %v244_v38, 1  ;;  %v547_v53 = vrot.slane %v246_v30, 2  ;;  %v249_v54 = vor.u32 %v248_v43, %v244_v38 }
  0x1a   :  { %v545_v49 = vsel %vm536_vm3, %v539_v35, %v544_v42  ;;  %506 = vrot.lane.b32.xlu2 %v461_v50, %s3792_s30  ;;  %v253_v55 = vrot.slane %v251_v44, 1  ;;  %v549_v56 = vshrl.u32 %v215_v29, 16  ;;  %v552_v57 = vrot.slane %v251_v44, 2  ;;  %v3950_v35 = vld [vmem:[%s5391_s0 + $0x30] sm:$0xff] }
  0x1b   :  { %681 = vrot.lane.b32.xlu1 %v545_v49, %s3794_s9  ;;  %v458_v58 = vsel %vm455_vm4, %v456_v46, %v457_v47  ;;  %v256_v59 = vshrl.u32 %v3895_v39, 16  ;;  %v260_v60 = vrot.slane %v258_v48, 1  ;;  %v263_v61 = vshll.u32 %v216_v51, 16 }
  0x1c   :  { %v548_v63 = vor.u32 %v547_v53, %v546_v52  ;;  %v551_v0 = vrot.slane %v549_v56, 1  ;;  %v717_v1 = vrot.slane %v3876_v18, 2  ;;  %v718_v2 = vrot.slane %v215_v29, 2 }
  0x1d   :  { %v254_v3 = vsel %vm230_vm2, %v249_v54, %v253_v55  ;;  %v201_v5 = vunpack.c.l.b16 %v65_v62  ;;  %v261_v6 = vor.u32 %v260_v60, %v256_v59  ;;  %v265_v7 = vrot.slane %v263_v61, 1  ;;  %v71_v55 = vld [vmem:[%s5391_s0 + $0x44] sm:$0x3] }
  0x1e   :  { %v553_v4 = vor.u32 %v552_v57, %v551_v0  ;;  %v3915_v9 = vsel %vm713_vm0, %v717_v1, %v718_v2  ;;  %v462_v11 = vrot.slane %v3895_v39, 1  ;;  %v463_v12 = vrot.slane %v216_v51, 1 }
  0x1f   :  { %5437 = vst [vmem:[#allocation12_spill] sm:$0xff] %v3915_v9  ;;  %v217_v14 = vpack.c.b16 %v201_v5, %v201_v5  ;;  %v266_v15 = vsel %vm230_vm2, %v261_v6, %v265_v7  ;;  %v268_v16 = vshrl.u32 %v3923_v13, 16  ;;  %v270_v17 = vshll.u32 %v3923_v13, 16  ;;  %v3381_v7 = vld [vmem:[%s5392_s1 + $0xe0] sm:$0xf] }
  0x20   :  { %v554_v8 = vsel %vm536_vm3, %v548_v63, %v553_v4  ;;  %v464_v20 = vsel %vm455_vm4, %v462_v11, %v463_v12  ;;  %v465_v24 = vrot.slane %v3923_v13, 1  ;;  %v720_v28 = vrot.slane %v3895_v39, 2 }
  0x21   :  { %504 = vrot.lane.b32.xlu0 %v458_v58, %s3792_s30  ;;  %v275_v19 = vshll.u32 %v217_v14, 16  ;;  %v272_v21 = vrot.slane %v270_v17, 1  ;;  %v466_v25 = vrot.slane %v217_v14, 1  ;;  %v721_v29 = vrot.slane %v216_v51, 2 }
  0x22   :  { %683 = vrot.lane.b32.xlu2 %v554_v8, %s3794_s9  ;;  %v202_v31 = vunpack.c.l.b16 %v68_v27  ;;  %v558_v33 = vshrl.u32 %v216_v51, 16  ;;  %v555_v36 = vrot.slane %v256_v59, 1  ;;  %v556_v37 = vrot.slane %v258_v48, 2  ;;  %v3650_v8 = vld [vmem:[%s5392_s1 + $0xec] sm:$0xf0] }
  0x23   :  { %425 = vrot.lane.b32.xlu1 %v254_v3, %s3790_s27  ;;  %v277_v22 = vrot.slane %v275_v19, 1  ;;  %v273_v23 = vor.u32 %v272_v21, %v268_v16  ;;  %v467_v30 = vsel %vm455_vm4, %v465_v24, %v466_v25  ;;  %v3944_v34 = vsel %vm713_vm0, %v720_v28, %v721_v29  ;;  %v74_v28 = vld [vmem:[%s5391_s0 + $0x50] sm:$0x3] }
  0x24   :  { %v560_v38 = vrot.slane %v558_v33, 1  ;;  %v561_v40 = vrot.slane %v263_v61, 2  ;;  %v3952_v41 = vpack.c.b16 %v202_v31, %v202_v31  ;;  %v557_v42 = vor.u32 %v556_v37, %v555_v36  ;;  %v3979_v61 = vld [vmem:[%s5391_s0 + $0x3c] sm:$0xff] }
  0x25   :  { %v278_v26 = vsel %vm230_vm2, %v273_v23, %v277_v22  ;;  %v280_v44 = vshrl.u32 %v3950_v35, 16  ;;  %v282_v45 = vshll.u32 %v3950_v35, 16  ;;  %v468_v47 = vrot.slane %v3950_v35, 1 }
  0x26   :  { %v562_v43 = vor.u32 %v561_v40, %v560_v38  ;;  %v287_v46 = vshll.u32 %v3952_v41, 16  ;;  %v469_v48 = vrot.slane %v3952_v41, 1  ;;  %v723_v56 = vrot.slane %v3923_v13, 2  ;;  %v4028_v40 = vld [vmem:[%s5391_s0 + $0x48] sm:$0xff] }
  0x27   :  { %3428 = vmatmul.msk.bf16.gmra.mxu1 %vm762_vm1, %v3915_v9  ;;  %3444 = vmatmul.msk.bf16.gmra.mxu3 %vm762_vm1, %v3915_v9  ;;  %v284_v50 = vrot.slane %v282_v45, 1  ;;  %v724_v57 = vrot.slane %v217_v14, 2  ;;  %v203_v58 = vunpack.c.l.b16 %v71_v55  ;;  %v567_v59 = vshrl.u32 %v217_v14, 16  ;;  %v3351_v55 = vld [vmem:[%s5392_s1 + $0xb0] sm:$0xf0] }
  0x28   :  { %v563_v49 = vsel %vm536_vm3, %v557_v42, %v562_v43  ;;  %v289_v51 = vrot.slane %v287_v46, 1  ;;  %v470_v52 = vsel %vm455_vm4, %v468_v47, %v469_v48  ;;  %v564_v62 = vrot.slane %v268_v16, 1  ;;  %v3648_v16 = vld [vmem:[%s5392_s1 + $0xe4] sm:$0xf]  ;;  %v3365_v43 = vld [vmem:[%s5392_s1 + $0xc0] sm:$0xf] }
  0x29   :  { %427 = vrot.lane.b32.xlu0 %v266_v15, %s3790_s27  ;;  %v285_v53 = vor.u32 %v284_v50, %v280_v44  ;;  %v3974_v60 = vsel %vm713_vm0, %v723_v56, %v724_v57  ;;  %v565_v63 = vrot.slane %v270_v17, 2  ;;  %v569_v0 = vrot.slane %v567_v59, 1  ;;  %v3367_v48 = vld [vmem:[%s5392_s1 + $0xd0] sm:$0xf0]  ;;  %v3642_v50 = vld [vmem:[%s5392_s1 + $0xac] sm:$0xf0] }
  0x2a   :  { %685 = vrot.lane.b32.xlu2 %v563_v49, %s3794_s9  ;;  %v570_v1 = vrot.slane %v275_v19, 2  ;;  %v3981_v2 = vpack.c.b16 %v203_v58, %v203_v58  ;;  %v292_v5 = vshrl.u32 %v3979_v61, 16  ;;  %v294_v6 = vshll.u32 %v3979_v61, 16  ;;  %v3349_v49 = vld [vmem:[%s5392_s1 + $0xa0] sm:$0xf] }
  0x2b   :  { %508 = vrot.lane.b32.xlu1 %v464_v20, %s3792_s30  ;;  %v290_v54 = vsel %vm230_vm2, %v285_v53, %v289_v51  ;;  %v566_v3 = vor.u32 %v565_v63, %v564_v62  ;;  %v471_v12 = vrot.slane %v3979_v61, 1  ;;  %v3382_v15 = vor.u32 %v3650_v8, %v3381_v7  ;;  %v3383_v20 = vld [vmem:[%s5392_s1 + $0xf0] sm:$0xf0]  ;;  %v3636_v7 = vld [vmem:[%s5392_s1 + $0x84] sm:$0xf] }
  0x2c   :  { %v571_v4 = vor.u32 %v570_v1, %v569_v0  ;;  %v299_v11 = vshll.u32 %v3981_v2, 16  ;;  %v472_v14 = vrot.slane %v3981_v2, 1  ;;  %v296_v19 = vrot.slane %v294_v6, 1  ;;  %v3333_v0 = vld [vmem:[%s5392_s1 + $0x80] sm:$0xf] }
  0x2d   :  { %1165 = vmatpush.bf16.msra.mxu0 %v3382_v15  ;;  %v3386_v23 = vor.u32 %v3648_v16, %v3383_v20  ;;  %v727_v27 = vrot.slane %v3952_v41, 2  ;;  %v576_v29 = vshrl.u32 %v3952_v41, 16  ;;  %v204_v31 = vunpack.c.l.b16 %v74_v28  ;;  %v3638_v1 = vld [vmem:[%s5392_s1 + $0x8c] sm:$0xf0]  ;;  %v3335_v8 = vld [vmem:[%s5392_s1 + $0x90] sm:$0xf0] }
  0x2e   :  { %v572_v17 = vsel %vm536_vm3, %v566_v3, %v571_v4  ;;  %v301_v21 = vrot.slane %v299_v11, 1  ;;  %v473_v22 = vsel %vm455_vm4, %v471_v12, %v472_v14  ;;  %v297_v24 = vor.u32 %v296_v19, %v292_v5  ;;  %v3634_v19 = vld [vmem:[%s5392_s1 + $0x6c] sm:$0xf0] }
  0x2f   :  { %1343 = vmatpush.bf16.msra.mxu2 %v3386_v23  ;;  %v573_v33 = vrot.slane %v280_v44, 1  ;;  %v574_v36 = vrot.slane %v282_v45, 2  ;;  %v578_v37 = vrot.slane %v576_v29, 1  ;;  %v579_v38 = vrot.slane %v287_v46, 2  ;;  %v3646_v44 = vld [vmem:[%s5392_s1 + $0xcc] sm:$0xf0] }
  0x30   :  { %v302_v25 = vsel %vm230_vm2, %v297_v24, %v301_v21  ;;  %v3644_v45 = vld [vmem:[%s5392_s1 + $0xc4] sm:$0xf]  ;;  %v4043_v46 = vpack.c.b16 %v204_v31, %v204_v31  ;;  %v3366_v47 = vor.u32 %v3646_v44, %v3365_v43  ;;  %v3350_v53 = vor.u32 %v3642_v50, %v3349_v49  ;;  %v3319_v24 = vld [vmem:[%s5392_s1 + $0x70] sm:$0xf0] }
  0x31   :  { %429 = vrot.lane.b32.xlu0 %v278_v26, %s3790_s27  ;;  %v726_v26 = vrot.slane %v3950_v35, 2  ;;  %v575_v41 = vor.u32 %v574_v36, %v573_v33  ;;  %v580_v42 = vor.u32 %v579_v38, %v578_v37  ;;  %v304_v56 = vshrl.u32 %v4028_v40, 16  ;;  %v3632_v23 = vld [vmem:[%s5392_s1 + $0x64] sm:$0xf]  ;;  %v4117_v38 = vld [vmem:[%s5391_s0 + $0x54] sm:$0xff] }
  0x32   :  { %687 = vrot.lane.b32.xlu2 %v572_v17, %s3794_s9  ;;  %1166 = vmatpush.bf16.msra.mxu0 %v3366_v47  ;;  %v306_v57 = vshll.u32 %v4028_v40, 16  ;;  %v311_v58 = vshll.u32 %v4043_v46, 16  ;;  %v474_v59 = vrot.slane %v4028_v40, 1  ;;  %v475_v63 = vrot.slane %v4043_v46, 1  ;;  %v3317_v17 = vld [vmem:[%s5392_s1 + $0x60] sm:$0xf] }
  0x33   :  { %510 = vrot.lane.b32.xlu1 %v467_v30, %s3792_s30  ;;  %v4023_v30 = vsel %vm713_vm0, %v726_v26, %v727_v27  ;;  %v581_v51 = vsel %vm536_vm3, %v575_v41, %v580_v42  ;;  %v3334_v15 = vor.u32 %v3638_v1, %v3333_v0  ;;  %v3338_v16 = vor.u32 %v3636_v7, %v3335_v8  ;;  %v77_v26 = vld [vmem:[%s5391_s0 + $0x5c] sm:$0x3]  ;;  %v3630_v42 = vld [vmem:[%s5392_s1 + $0x4c] sm:$0xf0]  ;;  %v3303_v44 = vld [vmem:[%s5392_s1 + $0x50] sm:$0xf0] }
  0x34   :  { %v308_v3 = vrot.slane %v306_v57, 1  ;;  %v313_v4 = vrot.slane %v311_v58, 1  ;;  %v476_v12 = vsel %vm455_vm4, %v474_v59, %v475_v63  ;;  %v729_v20 = vrot.slane %v3979_v61, 2  ;;  %v3622_v8 = vld [vmem:[%s5392_s1 + $0xc] sm:$0xf0] }
  0x35   :  { %v730_v21 = vrot.slane %v3981_v2, 2  ;;  %v585_v27 = vshrl.u32 %v3981_v2, 16  ;;  %v3322_v29 = vor.u32 %v3632_v23, %v3319_v24  ;;  %v205_v31 = vunpack.c.l.b16 %v77_v26  ;;  %v3628_v2 = vld [vmem:[%s5392_s1 + $0x44] sm:$0xf]  ;;  %v3659_v26 = vld [vmem:[%s5392_s1 + $0x134] sm:$0xf0] }
  0x36   :  { %1167 = vmatpush.bf16.msra.mxu0 %v3350_v53  ;;  %v309_v14 = vor.u32 %v308_v3, %v304_v56  ;;  %v582_v33 = vrot.slane %v292_v5, 1  ;;  %v583_v36 = vrot.slane %v294_v6, 2  ;;  %v588_v41 = vrot.slane %v299_v11, 2  ;;  %v3301_v6 = vld [vmem:[%s5392_s1 + $0x40] sm:$0xf] }
  0x37   :  { %3429 = vmatmul.msk.bf16.gmra.mxu1 %vm762_vm1, %v3944_v34  ;;  %3445 = vmatmul.msk.bf16.gmra.mxu3 %vm762_vm1, %v3944_v34  ;;  %v4108_v28 = vsel %vm713_vm0, %v729_v20, %v730_v21  ;;  %v587_v37 = vrot.slane %v585_v27, 1  ;;  %v3302_v43 = vor.u32 %v3630_v42, %v3301_v6  ;;  %v3306_v47 = vor.u32 %v3628_v2, %v3303_v44  ;;  %v3285_v53 = vld [vmem:[%s5392_s1 + $0x20] sm:$0xf]  ;;  %v3389_v42 = vld [vmem:[%s5392_s1 + $0xe8] sm:$0xf] }
  0x38   :  { %v584_v5 = vor.u32 %v583_v36, %v582_v33  ;;  %v316_v50 = vshrl.u32 %v4117_v38, 16  ;;  %v477_v1 = vrot.slane %v4117_v38, 1  ;;  %v3269_v3 = vld [vmem:[%s5392_s1] sm:$0xf]  ;;  %v594_v23 = vshrl.u32 %v4043_v46, 16 }
  0x39   :  { %431 = vrot.lane.b32.xlu0 %v290_v54, %s3790_s27  ;;  %v3640_v54 = vld [vmem:[%s5392_s1 + $0xa4] sm:$0xf]  ;;  %v589_v11 = vor.u32 %v588_v41, %v587_v37  ;;  %v3657_v36 = vld [vmem:[%s5392_s1 + $0x12c] sm:$0xf]  ;;  %v3423_v37 = vld [vmem:[%s5392_s1 + $0x138] sm:$0xf0] }
  0x3a   :  { %689 = vrot.lane.b32.xlu2 %v581_v51, %s3794_s9  ;;  %v3354_v62 = vor.u32 %v3640_v54, %v3351_v55  ;;  %1168 = vmatpush.bf16.msra.mxu0 %v3334_v15  ;;  %v3626_v54 = vld [vmem:[%s5392_s1 + $0x2c] sm:$0xf0]  ;;  %v3624_v55 = vld [vmem:[%s5392_s1 + $0x24] sm:$0xf]  ;;  %v3270_v15 = vor.u32 %v3622_v8, %v3269_v3  ;;  %v596_v33 = vrot.slane %v594_v23, 1  ;;  %v597_v6 = vrot.slane %v311_v58, 2 }
  0x3b   :  { %512 = vrot.lane.b32.xlu1 %v470_v52, %s3792_s30  ;;  %v3370_v52 = vor.u32 %v3644_v45, %v3367_v48  ;;  %v4137_v45 = vpack.c.b16 %v205_v31, %v205_v31  ;;  %v318_v48 = vshll.u32 %v4117_v38, 16  ;;  %v590_v49 = vsel %vm536_vm3, %v584_v5, %v589_v11  ;;  %v3651_v2 = vld [vmem:[%s5392_s1 + $0xf4] sm:$0xf0]  ;;  %v3391_v58 = vld [vmem:[%s5392_s1 + $0xf8] sm:$0xf0] }
  0x3c   :  { %v3286_v59 = vor.u32 %v3626_v54, %v3285_v53  ;;  %v592_v31 = vrot.slane %v306_v57, 2  ;;  %v4212_v57 = vld [vmem:[%s5391_s0 + $0x60] sm:$0xff]  ;;  %v3390_v11 = vor.u32 %v3651_v2, %v3389_v42  ;;  %v735_v3 = vrot.slane %v4117_v38, 2  ;;  %v83_v8 = vld [vmem:[%s5391_s0 + $0x74] sm:$0x3] }
  0x3d   :  { %1344 = vmatpush.bf16.msra.mxu2 %v3370_v52  ;;  %v320_v51 = vrot.slane %v318_v48, 1  ;;  %v323_v52 = vshll.u32 %v4137_v45, 16  ;;  %v478_v7 = vrot.slane %v4137_v45, 1  ;;  %v330_v44 = vshll.u32 %v4212_v57, 16  ;;  %v86_v42 = vld [vmem:[%s5391_s0 + $0x80] sm:$0x3] }
  0x3e   :  { %1521 = vmatpush.bf16.msrb.mxu1 %v3390_v11  ;;  %v328_v53 = vshrl.u32 %v4212_v57, 16  ;;  %vm795_vm5 = vcmask 523264   ;;  %vm828_vm6 = vcmask 785408   ;;  %vm2875_vm7 = vcmask 1041409  }
  0x3f   :  { %v321_v63 = vor.u32 %v320_v51, %v316_v50  ;;  %v325_v0 = vrot.slane %v323_v52, 1  ;;  %v479_v20 = vsel %vm455_vm4, %v477_v1, %v478_v7  ;;  %v332_v54 = vrot.slane %v330_v44, 1 }
  0x40   :  { %vm2877_vm8 = vcmask 1042434   ;;  %vm2879_vm9 = vcmask 1043459   ;;  %vm2881_vm10 = vcmask 1044484   ;;  %vm2883_vm11 = vcmask 1045509  }
  0x41   :  { %433 = vrot.lane.b32.xlu0 %v302_v25, %s3790_s27  ;;  %1345 = vmatpush.bf16.msra.mxu2 %v3354_v62  ;;  %v3318_v25 = vor.u32 %v3634_v19, %v3317_v17  ;;  %v3287_v62 = vld [vmem:[%s5392_s1 + $0x30] sm:$0xf0]  ;;  %v732_v17 = vrot.slane %v4028_v40, 2  ;;  %v733_v19 = vrot.slane %v4043_v46, 2  ;;  %v3649_v46 = vld [vmem:[%s5392_s1 + $0xec] sm:$0xf] }
  0x42   :  { %691 = vrot.lane.b32.xlu2 %v590_v49, %s3794_s9  ;;  %v3394_v51 = vor.u32 %v3649_v46, %v3391_v58  ;;  %vm2885_vm12 = vcmask 1046534   ;;  %vm2887_vm13 = vcmask 1047559   ;;  %vm2162_vm14 = vcmask 539648  }
  0x43   :  { %514 = vrot.lane.b32.xlu1 %v473_v22, %s3792_s30  ;;  %v314_v22 = vsel %vm230_vm2, %v309_v14, %v313_v4  ;;  %1169 = vmatpush.bf16.msra.mxu0 %v3318_v25  ;;  %v3290_v4 = vor.u32 %v3624_v55, %v3287_v62  ;;  %v326_v14 = vsel %vm230_vm2, %v321_v63, %v325_v0  ;;  %v3421_v25 = vld [vmem:[%s5392_s1 + $0x128] sm:$0xf]  ;;  %vm3119_vm15 = vcmask 1040384  }
  0x44   :  { %v4187_v24 = vsel %vm713_vm0, %v732_v17, %v733_v19  ;;  %v3422_v27 = vor.u32 %v3659_v26, %v3421_v25  ;;  %v333_v63 = vor.u32 %v332_v54, %v328_v53  ;;  %v601_v17 = vrot.slane %v318_v48, 2 }
  0x45   :  { %1346 = vmatpush.bf16.msra.mxu2 %v3338_v16  ;;  %v3271_v16 = vld [vmem:[%s5392_s1 + $0x10] sm:$0xf0] }
  0x46   :  { %1616 = vmatpush.bf16.msrb.mxu3 %v3422_v27 }
  0x47   :  { %3430 = vmatmul.msk.bf16.gmra.mxu1 %vm762_vm1, %v3974_v60  ;;  %3446 = vmatmul.msk.bf16.gmra.mxu3 %vm762_vm1, %v3974_v60 }
  0x48   :  { %1170 = vmatpush.bf16.msra.mxu0 %v3302_v43  ;;  %v598_v43 = vor.u32 %v597_v6, %v596_v33 }
  0x49   :  { %435 = vrot.lane.b32.xlu0 %v314_v22, %s3790_s27  ;;  %1347 = vmatpush.bf16.msra.mxu2 %v3322_v29  ;;  %v80_v22 = vld [vmem:[%s5391_s0 + $0x68] sm:$0x3]  ;;  %v591_v29 = vrot.slane %v304_v56, 1  ;;  %v3426_v56 = vor.u32 %v3657_v36, %v3423_v37 }
  0x4a   :  { %v206_v41 = vunpack.c.l.b16 %v80_v22 }
  0x4b   :  { %516 = vrot.lane.b32.xlu1 %v476_v12, %s3792_s30  ;;  %v3620_v12 = vld [vmem:[%s5392_s1 + $0x4] sm:$0xf]  ;;  %v593_v5 = vor.u32 %v592_v31, %v591_v29 }
  0x4c   :  { %1171 = vmatpush.bf16.msra.mxu0 %v3286_v59  ;;  %v3274_v21 = vor.u32 %v3620_v12, %v3271_v16  ;;  %v480_v59 = vrot.slane %v4212_v57, 1  ;;  %v603_v12 = vshrl.u32 %v4137_v45, 16  ;;  %v600_v16 = vrot.slane %v316_v50, 1 }
  0x4d   :  { %1348 = vmatpush.bf16.msra.mxu2 %v3306_v47  ;;  %v4223_v47 = vpack.c.b16 %v206_v41, %v206_v41  ;;  %v599_v49 = vsel %vm536_vm3, %v593_v5, %v598_v43 }
  0x4e   :  { %693 = vrot.lane.b32.xlu2 %v599_v49, %s3794_s9  ;;  %v605_v19 = vrot.slane %v603_v12, 1  ;;  %v602_v22 = vor.u32 %v601_v17, %v600_v16  ;;  %v3375_v16 = vld [vmem:[%s5392_s1 + $0xd8] sm:$0xf0] }
  0x4f   :  { %v335_v55 = vshll.u32 %v4223_v47, 16  ;;  %v481_v62 = vrot.slane %v4223_v47, 1  ;;  %v739_v5 = vrot.slane %v4223_v47, 2  ;;  %v612_v43 = vshrl.u32 %v4223_v47, 16 }
  0x50   :  { %1172 = vmatpush.bf16.msra.mxu0 %v3270_v15  ;;  %v207_v15 = vunpack.c.l.b16 %v83_v8 }
  0x51   :  { %1349 = vmatpush.bf16.msra.mxu2 %v3290_v4  ;;  %437 = vrot.lane.b32.xlu0 %v326_v14, %s3790_s27  ;;  %v337_v0 = vrot.slane %v335_v55, 1  ;;  %v482_v1 = vsel %vm455_vm4, %v480_v59, %v481_v62  ;;  %v736_v4 = vrot.slane %v4137_v45, 2  ;;  %v609_v59 = vrot.slane %v328_v53, 1  ;;  %v4314_v53 = vld [vmem:[%s5391_s0 + $0x78] sm:$0xff] }
  0x52   :  { %v4267_v23 = vpack.c.b16 %v207_v15, %v207_v15  ;;  %v610_v62 = vrot.slane %v330_v44, 2  ;;  %v3373_v44 = vld [vmem:[%s5392_s1 + $0xc8] sm:$0xf]  ;;  %v3645_v15 = vld [vmem:[%s5392_s1 + $0xcc] sm:$0xf] }
  0x53   :  { %518 = vrot.lane.b32.xlu1 %v479_v20, %s3792_s30  ;;  %v338_v7 = vsel %vm230_vm2, %v333_v63, %v337_v0  ;;  %v4250_v14 = vsel %vm713_vm0, %v735_v3, %v736_v4  ;;  %v606_v20 = vrot.slane %v323_v52, 2  ;;  %v614_v63 = vrot.slane %v612_v43, 1 }
  0x54   :  { %1699 = vmatpush.bf16.msrb.mxu0 %v3394_v51  ;;  %5438 = vst [vmem:[#allocation13_spill] sm:$0xff] %v4250_v14  ;;  %v347_v27 = vshll.u32 %v4267_v23, 16  ;;  %v484_v31 = vrot.slane %v4267_v23, 1  ;;  %v208_v51 = vunpack.c.l.b16 %v86_v42  ;;  %v611_v0 = vor.u32 %v610_v62, %v609_v59  ;;  %v89_v42 = vld [vmem:[%s5391_s0 + $0x8c] sm:$0x3] }
  0x55   :  { %1350 = vmatpush.bf16.msra.mxu2 %v3274_v21  ;;  %v4265_v21 = vld [vmem:[%s5391_s0 + $0x6c] sm:$0xff]  ;;  %v607_v50 = vor.u32 %v606_v20, %v605_v19  ;;  %v3378_v19 = vor.u32 %v3645_v15, %v3375_v16  ;;  %v352_v20 = vshrl.u32 %v4314_v53, 16 }
  0x56   :  { %v342_v45 = vshll.u32 %v4265_v21, 16  ;;  %v340_v25 = vshrl.u32 %v4265_v21, 16  ;;  %v483_v29 = vrot.slane %v4265_v21, 1  ;;  %v349_v36 = vrot.slane %v347_v27, 1 }
  0x57   :  { %3431 = vmatmul.msk.bf16.gmra.mxu1 %vm762_vm1, %v4023_v30  ;;  %3447 = vmatmul.msk.bf16.gmra.mxu3 %vm762_vm1, %v4023_v30  ;;  %v608_v48 = vsel %vm536_vm3, %v602_v22, %v607_v50  ;;  %v4322_v4 = vpack.c.b16 %v208_v51, %v208_v51  ;;  %v209_v51 = vunpack.c.l.b16 %v89_v42 }
  0x58   :  { %695 = vrot.lane.b32.xlu2 %v608_v48, %s3794_s9  ;;  %v344_v26 = vrot.slane %v342_v45, 1  ;;  %v485_v37 = vsel %vm455_vm4, %v483_v29, %v484_v31  ;;  %1700 = vmatpush.bf16.msrb.mxu0 %v3378_v19  ;;  %v618_v59 = vrot.slane %v340_v25, 1  ;;  %v619_v62 = vrot.slane %v342_v45, 2 }
  0x59   :  { %1794 = vmatpush.bf16.msrb.mxu2 %v3426_v56  ;;  %439 = vrot.lane.b32.xlu0 %v338_v7, %s3790_s27  ;;  %v738_v56 = vrot.slane %v4212_v57, 2  ;;  %v354_v7 = vshll.u32 %v4314_v53, 16  ;;  %v359_v50 = vshll.u32 %v4322_v4, 16 }
  0x5a   :  { %v345_v33 = vor.u32 %v344_v26, %v340_v25  ;;  %v487_v26 = vrot.slane %v4322_v4, 1  ;;  %v4385_v25 = vld [vmem:[%s5391_s0 + $0x84] sm:$0xff]  ;;  %v620_v45 = vor.u32 %v619_v62, %v618_v59  ;;  %v627_v59 = vrot.slane %v352_v20, 1 }
  0x5b   :  { %520 = vrot.lane.b32.xlu1 %v482_v1, %s3792_s30  ;;  %v4298_v49 = vsel %vm713_vm0, %v738_v56, %v739_v5  ;;  %v356_v22 = vrot.slane %v354_v7, 1  ;;  %v361_v31 = vrot.slane %v359_v50, 1  ;;  %v742_v56 = vrot.slane %v4267_v23, 2 }
  0x5c   :  { %v350_v41 = vsel %vm230_vm2, %v345_v33, %v349_v36  ;;  %5439 = vst [vmem:[#allocation14_spill] sm:$0xff] %v4298_v49  ;;  %v489_v16 = vrot.slane %v4385_v25, 1  ;;  %v628_v62 = vrot.slane %v354_v7, 2 }
  0x5d   :  { %v357_v29 = vor.u32 %v356_v22, %v352_v20  ;;  %v4444_v20 = vld [vmem:[%s5391_s0 + $0x90] sm:$0xff] }
  0x5e   :  { %v629_v7 = vor.u32 %v628_v62, %v627_v59 }
  0x61   :  { %441 = vrot.lane.b32.xlu0 %v350_v41, %s3790_s27  ;;  %v741_v41 = vrot.slane %v4265_v21, 2 }
  0x63   :  { %522 = vrot.lane.b32.xlu1 %v485_v37, %s3792_s30  ;;  %v362_v37 = vsel %vm230_vm2, %v357_v29, %v361_v31 }
  0x67   :  { %3432 = vmatmul.msk.bf16.gmra.mxu1 %vm762_vm1, %v4108_v28  ;;  %3448 = vmatmul.msk.bf16.gmra.mxu3 %vm762_vm1, %v4108_v28 }
  0x69   :  { %443 = vrot.lane.b32.xlu0 %v362_v37, %s3790_s27  ;;  %v744_v37 = vrot.slane %v4314_v53, 2 }
  0x74   :  { %v507_v47 = vpop.permute.xlu2 %506 }
  0x77   :  { %3433 = vmatmul.msk.bf16.gmra.mxu1 %vm762_vm1, %v4187_v24  ;;  %3449 = vmatmul.msk.bf16.gmra.mxu3 %vm762_vm1, %v4187_v24 }
  0x7c   :  { %v684_v5 = vpop.permute.xlu2 %683 }
  0x87   :  { %3434 = vmatmul.msk.bf16.gmra.mxu1 %vm762_vm1, %v4250_v14  ;;  %3450 = vmatmul.msk.bf16.gmra.mxu3 %vm762_vm1, %v4250_v14 }
  0x8b   :  { %v424_v52 = vpop.permute.xlu0 %423 }
  0x8c   :  { %v764_v2 = vsel %vm762_vm1, %v3863_v10, %v424_v52  ;;  %v615_v10 = vrot.slane %v335_v55, 2  ;;  %v3647_v55 = vld [vmem:[%s5392_s1 + $0xd4] sm:$0xf0]  ;;  %v486_v52 = vrot.slane %v4314_v53, 1 }
  0x8d   :  { %v682_v6 = vpop.permute.xlu1 %681  ;;  %v3374_v3 = vor.u32 %v3647_v55, %v3373_v44 }
  0x8e   :  { %v616_v1 = vor.u32 %v615_v10, %v614_v63  ;;  %v488_v36 = vsel %vm455_vm4, %v486_v52, %v487_v26  ;;  %v624_v10 = vrot.slane %v347_v27, 2  ;;  %v366_v27 = vshll.u32 %v4385_v25, 16 }
  0x8f   :  { %1522 = vmatpush.bf16.msrb.mxu1 %v3374_v3  ;;  %524 = vrot.lane.b32.xlu1 %v488_v36, %s3792_s30  ;;  %v686_v36 = vpop.permute.xlu2 %685 }
  0x90   :  { %v617_v12 = vsel %vm536_vm3, %v611_v0, %v616_v1  ;;  %v4387_v0 = vpack.c.b16 %v209_v51, %v209_v51  ;;  %v364_v1 = vshrl.u32 %v4385_v25, 16  ;;  %v368_v3 = vrot.slane %v366_v27, 1 }
  0x91   :  { %697 = vrot.lane.b32.xlu2 %v617_v12, %s3794_s9 }
  0x92   :  { %v371_v12 = vshll.u32 %v4387_v0, 16  ;;  %v369_v52 = vor.u32 %v368_v3, %v364_v1 }
  0x93   :  { %v505_v11 = vpop.permute.xlu0 %504 }
  0x94   :  { %v797_v46 = vsel %vm795_vm5, %v764_v2, %v505_v11  ;;  %v4295_v58 = vpop.f32.mrf.mxu1  ;;  %v621_v2 = vshrl.u32 %v4267_v23, 16  ;;  %v373_v26 = vrot.slane %v371_v12, 1 }
  0x95   :  { %v4301_v54 = vsel %vm828_vm6, %v797_v46, %v682_v6  ;;  %v426_v17 = vpop.permute.xlu1 %425  ;;  %v4368_v46 = vsel %vm713_vm0, %v741_v41, %v742_v56  ;;  %v92_v56 = vld [vmem:[%s5391_s0 + $0x98] sm:$0x3] }
  0x96   :  { %5440 = vst [vmem:[#allocation15_spill] sm:$0xff] %v4301_v54  ;;  %1173 = vmatmul.bf16.vlgmr.msra.gmra.mxu0 %v4301_v54  ;;  %1351 = vmatmul.bf16.vlgmr.msra.gmra.mxu2 %v4301_v54  ;;  %v766_v33 = vsel %vm762_vm1, %v3876_v18, %v426_v17  ;;  %v623_v63 = vrot.slane %v621_v2, 1  ;;  %v490_v17 = vrot.slane %v4387_v0, 1  ;;  %v374_v31 = vsel %vm230_vm2, %v369_v52, %v373_v26 }
  0x97   :  { %3435 = vmatmul.msk.bf16.gmra.mxu1 %vm762_vm1, %v4298_v49  ;;  %3451 = vmatmul.msk.bf16.gmra.mxu3 %vm762_vm1, %v4298_v49  ;;  %v799_v6 = vsel %vm795_vm5, %v766_v33, %v507_v47  ;;  %5442 = vst [vmem:[#allocation17_spill] sm:$0xff] %v4368_v46  ;;  %v210_v51 = vunpack.c.l.b16 %v92_v56  ;;  %v376_v26 = vshrl.u32 %v4444_v20, 16 }
  0x98   :  { %v4363_v11 = vsel %vm828_vm6, %v799_v6, %v684_v5  ;;  %v625_v47 = vor.u32 %v624_v10, %v623_v63  ;;  %v491_v29 = vsel %vm455_vm4, %v489_v16, %v490_v17  ;;  %445 = vrot.lane.b32.xlu0 %v374_v31, %s3790_s27  ;;  %v630_v6 = vshrl.u32 %v4322_v4, 16 }
  0x99   :  { %5441 = vst [vmem:[#allocation16_spill] sm:$0xff] %v4363_v11  ;;  %526 = vrot.lane.b32.xlu1 %v491_v29, %s3792_s30  ;;  %v633_v10 = vrot.slane %v359_v50, 2 }
  0x9a   :  { %v4325_v8 = vpop.f32.mrf.mxu3  ;;  %v626_v23 = vsel %vm536_vm3, %v620_v45, %v625_v47  ;;  %v632_v63 = vrot.slane %v630_v6, 1  ;;  %v3357_v45 = vld [vmem:[%s5392_s1 + $0xa8] sm:$0xf] }
  0x9b   :  { %v428_v55 = vpop.permute.xlu0 %427  ;;  %699 = vrot.lane.b32.xlu2 %v626_v23, %s3794_s9  ;;  %v4452_v23 = vpack.c.b16 %v210_v51, %v210_v51 }
  0x9c   :  { %v4339_v48 = vpop.f32.mrf.mxu1  ;;  %v768_v19 = vsel %vm762_vm1, %v3895_v39, %v428_v55  ;;  %v745_v39 = vrot.slane %v4322_v4, 2  ;;  %v3643_v4 = vld [vmem:[%s5392_s1 + $0xb4] sm:$0xf0]  ;;  %v634_v50 = vor.u32 %v633_v10, %v632_v63  ;;  %v378_v55 = vshll.u32 %v4444_v20, 16  ;;  %v688_v10 = vpop.permute.xlu2 %687 }
  0x9d   :  { %v509_v22 = vpop.permute.xlu1 %508  ;;  %v3358_v47 = vor.u32 %v3643_v4, %v3357_v45  ;;  %v383_v31 = vshll.u32 %v4452_v23, 16  ;;  %v95_v45 = vld [vmem:[%s5391_s0 + $0xa4] sm:$0x3] }
  0x9e   :  { %v801_v33 = vsel %vm795_vm5, %v768_v19, %v509_v22  ;;  %v4427_v2 = vsel %vm713_vm0, %v744_v37, %v745_v39  ;;  %v635_v17 = vsel %vm536_vm3, %v629_v7, %v634_v50  ;;  %v3641_v19 = vld [vmem:[%s5392_s1 + $0xac] sm:$0xf]  ;;  %v3359_v22 = vld [vmem:[%s5392_s1 + $0xb8] sm:$0xf0]  ;;  %v380_v29 = vrot.slane %v378_v55, 1 }
  0x9f   :  { %v4421_v5 = vsel %vm828_vm6, %v801_v33, %v686_v36  ;;  %5443 = vst [vmem:[#allocation18_spill] sm:$0xff] %v4427_v2  ;;  %1523 = vmatpush.bf16.msrb.mxu1 %v3358_v47  ;;  %v3362_v52 = vor.u32 %v3641_v19, %v3359_v22  ;;  %v492_v36 = vrot.slane %v4444_v20, 1  ;;  %v493_v37 = vrot.slane %v4452_v23, 1 }
  0xa0   :  { %v381_v6 = vor.u32 %v380_v29, %v376_v26  ;;  %v385_v51 = vrot.slane %v383_v31, 1  ;;  %v747_v7 = vrot.slane %v4385_v25, 2  ;;  %v639_v47 = vshrl.u32 %v4387_v0, 16 }
  0xa1   :  { %1701 = vmatpush.bf16.msrb.mxu0 %v3362_v52  ;;  %v494_v59 = vsel %vm455_vm4, %v492_v36, %v493_v37  ;;  %v211_v19 = vunpack.c.l.b16 %v95_v45  ;;  %v636_v22 = vrot.slane %v364_v1, 1  ;;  %v637_v52 = vrot.slane %v366_v27, 2  ;;  %v4515_v1 = vld [vmem:[%s5391_s0 + $0x9c] sm:$0xff] }
  0xa2   :  { %v4359_v18 = vpop.f32.mrf.mxu3  ;;  %v386_v62 = vsel %vm230_vm2, %v381_v6, %v385_v51  ;;  %528 = vrot.lane.b32.xlu1 %v494_v59, %s3792_s30  ;;  %v641_v29 = vrot.slane %v639_v47, 1  ;;  %v642_v36 = vrot.slane %v371_v12, 2  ;;  %v5399_v12 = vshll.u32 %v4515_v1, 16 }
  0xa3   :  { %v430_v16 = vpop.permute.xlu0 %429  ;;  %701 = vrot.lane.b32.xlu2 %v635_v17, %s3794_s9  ;;  %447 = vrot.lane.b32.xlu0 %v386_v62, %s3790_s27  ;;  %v638_v27 = vor.u32 %v637_v52, %v636_v22  ;;  %v5400_v51 = vshrl.u32 %v4515_v1, 16 }
  0xa4   :  { %v4365_v43 = vpop.f32.mrf.mxu1  ;;  %v770_v39 = vsel %vm762_vm1, %v3923_v13, %v430_v16  ;;  %v748_v13 = vrot.slane %v4387_v0, 2  ;;  %v643_v37 = vor.u32 %v642_v36, %v641_v29  ;;  %v392_v59 = vrot.slane %v5399_v12, 1  ;;  %v690_v36 = vpop.permute.xlu2 %689 }
  0xa5   :  { %v511_v56 = vpop.permute.xlu1 %510 }
  0xa6   :  { %1178 = vmatmul.bf16.gmra.mxu0 %v4363_v11  ;;  %1356 = vmatmul.bf16.gmra.mxu2 %v4363_v11  ;;  %v803_v63 = vsel %vm795_vm5, %v770_v39, %v511_v56  ;;  %v4498_v17 = vsel %vm713_vm0, %v747_v7, %v748_v13  ;;  %v4517_v39 = vpack.c.b16 %v211_v19, %v211_v19 }
  0xa7   :  { %3436 = vmatmul.msk.bf16.gmra.mxu1 %vm762_vm1, %v4368_v46  ;;  %3452 = vmatmul.msk.bf16.gmra.mxu3 %vm762_vm1, %v4368_v46  ;;  %v4492_v50 = vsel %vm828_vm6, %v803_v63, %v688_v10  ;;  %5444 = vst [vmem:[#allocation19_spill] sm:$0xff] %v4498_v17  ;;  %v644_v0 = vsel %vm536_vm3, %v638_v27, %v643_v37  ;;  %v495_v10 = vrot.slane %v4515_v1, 1  ;;  %v750_v27 = vrot.slane %v4444_v20, 2 }
  0xa8   :  { %v5397_v62 = vshll.u32 %v4517_v39, 16  ;;  %v496_v7 = vrot.slane %v4517_v39, 1  ;;  %v393_v47 = vor.u32 %v392_v59, %v5400_v51  ;;  %v648_v59 = vshrl.u32 %v4452_v23, 16 }
  0xaa   :  { %v4391_v44 = vpop.f32.mrf.mxu3  ;;  %v397_v19 = vrot.slane %v5397_v62, 1  ;;  %v497_v22 = vsel %vm455_vm4, %v495_v10, %v496_v7 }
  0xab   :  { %v432_v6 = vpop.permute.xlu0 %431  ;;  %703 = vrot.lane.b32.xlu2 %v644_v0, %s3794_s9  ;;  %530 = vrot.lane.b32.xlu1 %v497_v22, %s3792_s30  ;;  %v98_v0 = vld [vmem:[%s5391_s0 + $0xb0] sm:$0x3]  ;;  %v651_v22 = vrot.slane %v383_v31, 2 }
  0xac   :  { %v4398_v15 = vpop.f32.mrf.mxu1  ;;  %v772_v13 = vsel %vm762_vm1, %v3950_v35, %v432_v6  ;;  %v398_v52 = vsel %vm230_vm2, %v393_v47, %v397_v19  ;;  %v751_v35 = vrot.slane %v4452_v23, 2  ;;  %v646_v47 = vrot.slane %v378_v55, 2  ;;  %v3639_v23 = vld [vmem:[%s5392_s1 + $0x94] sm:$0xf0]  ;;  %v692_v51 = vpop.permute.xlu2 %691 }
  0xad   :  { %v513_v45 = vpop.permute.xlu1 %512  ;;  %449 = vrot.lane.b32.xlu0 %v398_v52, %s3790_s27  ;;  %v650_v19 = vrot.slane %v648_v59, 1  ;;  %v3341_v52 = vld [vmem:[%s5392_s1 + $0x88] sm:$0xf] }
  0xae   :  { %v805_v29 = vsel %vm795_vm5, %v772_v13, %v513_v45  ;;  %v4557_v7 = vsel %vm713_vm0, %v750_v27, %v751_v35  ;;  %v212_v13 = vunpack.c.l.b16 %v98_v0  ;;  %v645_v45 = vrot.slane %v376_v26, 1  ;;  %v4574_v26 = vld [vmem:[%s5391_s0 + $0xa8] sm:$0xff] }
  0xaf   :  { %v4551_v6 = vsel %vm828_vm6, %v805_v29, %v690_v36  ;;  %5445 = vst [vmem:[#allocation20_spill] sm:$0xff] %v4557_v7  ;;  %v652_v31 = vor.u32 %v651_v22, %v650_v19  ;;  %v3342_v29 = vor.u32 %v3639_v23, %v3341_v52  ;;  %v5398_v27 = vshll.u32 %v4574_v26, 16 }
  0xb0   :  { %v647_v55 = vor.u32 %v646_v47, %v645_v45  ;;  %v4582_v36 = vpack.c.b16 %v212_v13, %v212_v13  ;;  %v3637_v45 = vld [vmem:[%s5392_s1 + $0x8c] sm:$0xf]  ;;  %v3343_v47 = vld [vmem:[%s5392_s1 + $0x98] sm:$0xf0]  ;;  %v5404_v19 = vshrl.u32 %v4574_v26, 16  ;;  %v498_v23 = vrot.slane %v4574_v26, 1 }
  0xb1   :  { %1524 = vmatpush.bf16.msrb.mxu1 %v3342_v29  ;;  %v3346_v13 = vor.u32 %v3637_v45, %v3343_v47  ;;  %v404_v22 = vrot.slane %v5398_v27, 1 }
  0xb2   :  { %v4415_v41 = vpop.f32.mrf.mxu3  ;;  %v653_v59 = vsel %vm536_vm3, %v647_v55, %v652_v31  ;;  %v5403_v52 = vshll.u32 %v4582_v36, 16  ;;  %v499_v31 = vrot.slane %v4582_v36, 1 }
  0xb3   :  { %v434_v0 = vpop.permute.xlu0 %433  ;;  %705 = vrot.lane.b32.xlu2 %v653_v59, %s3794_s9  ;;  %1702 = vmatpush.bf16.msrb.mxu0 %v3346_v13  ;;  %v405_v59 = vor.u32 %v404_v22, %v5404_v19  ;;  %v101_v22 = vld [vmem:[%s5391_s0 + $0xbc] sm:$0x3] }
  0xb4   :  { %v4424_v42 = vpop.f32.mrf.mxu1  ;;  %v774_v29 = vsel %vm762_vm1, %v3979_v61, %v434_v0  ;;  %v409_v45 = vrot.slane %v5403_v52, 1  ;;  %v500_v47 = vsel %vm455_vm4, %v498_v23, %v499_v31  ;;  %v754_v61 = vrot.slane %v4517_v39, 2 }
  0xb5   :  { %v515_v62 = vpop.permute.xlu1 %514  ;;  %532 = vrot.lane.b32.xlu1 %v500_v47, %s3792_s30  ;;  %v657_v23 = vshrl.u32 %v4517_v39, 16 }
  0xb6   :  { %1183 = vmatmul.bf16.gmra.mxu0 %v4421_v5  ;;  %1361 = vmatmul.bf16.gmra.mxu2 %v4421_v5  ;;  %v410_v27 = vsel %vm230_vm2, %v405_v59, %v409_v45  ;;  %v807_v12 = vsel %vm795_vm5, %v774_v29, %v515_v62  ;;  %v5447_v29 = vshrl.u32 %v4515_v1, 16 }
  0xb7   :  { %3437 = vmatmul.msk.bf16.gmra.mxu1 %vm762_vm1, %v4427_v2  ;;  %3453 = vmatmul.msk.bf16.gmra.mxu3 %vm762_vm1, %v4427_v2  ;;  %v4619_v13 = vsel %vm828_vm6, %v807_v12, %v692_v51  ;;  %v659_v47 = vrot.slane %v657_v23, 1  ;;  %v213_v12 = vunpack.c.l.b16 %v101_v22  ;;  %v5449_v51 = vshll.u32 %v4517_v39, 16  ;;  %v3635_v39 = vld [vmem:[%s5392_s1 + $0x74] sm:$0xf0]  ;;  %v3309_v2 = vld [vmem:[%s5392_s1 + $0x48] sm:$0xf] }
  0xb8   :  { %451 = vrot.lane.b32.xlu0 %v410_v27, %s3790_s27  ;;  %v654_v59 = vrot.slane %v5447_v29, 1  ;;  %v5448_v27 = vshll.u32 %v4515_v1, 16 }
  0xb9   :  { %v660_v52 = vrot.slane %v5449_v51, 2 }
  0xba   :  { %v4455_v3 = vpop.f32.mrf.mxu3  ;;  %v655_v45 = vrot.slane %v5448_v27, 2 }
  0xbb   :  { %v661_v29 = vor.u32 %v660_v52, %v659_v47  ;;  %v436_v19 = vpop.permute.xlu0 %435  ;;  %v3631_v52 = vld [vmem:[%s5392_s1 + $0x54] sm:$0xf0] }
  0xbc   :  { %v4469_v33 = vpop.f32.mrf.mxu1  ;;  %v656_v22 = vor.u32 %v655_v45, %v654_v59 }
  0xc2   :  { %v4489_v4 = vpop.f32.mrf.mxu3 }
  0xc4   :  { %v4495_v16 = vpop.f32.mrf.mxu1 }
  0xc6   :  { %1188 = vmatmul.bf16.gmra.mxu0 %v4492_v50  ;;  %1366 = vmatmul.bf16.gmra.mxu2 %v4492_v50 }
  0xc7   :  { %3438 = vmatmul.msk.bf16.gmra.mxu1 %vm762_vm1, %v4498_v17  ;;  %3454 = vmatmul.msk.bf16.gmra.mxu3 %vm762_vm1, %v4498_v17  ;;  %v662_v17 = vsel %vm536_vm3, %v656_v22, %v661_v29  ;;  %v3293_v22 = vld [vmem:[%s5392_s1 + $0x28] sm:$0xf]  ;;  %v517_v29 = vpop.permute.xlu1 %516 }
  0xc8   :  { %707 = vrot.lane.b32.xlu2 %v662_v17, %s3794_s9 }
  0xca   :  { %v4521_v56 = vpop.f32.mrf.mxu3 }
  0xcc   :  { %v4528_v63 = vpop.f32.mrf.mxu1 }
  0xd2   :  { %v4545_v37 = vpop.f32.mrf.mxu3 }
  0xd4   :  { %v4554_v10 = vpop.f32.mrf.mxu1 }
  0xd6   :  { %1193 = vmatmul.bf16.gmra.mxu0 %v4551_v6  ;;  %1371 = vmatmul.bf16.gmra.mxu2 %v4551_v6 }
  0xd7   :  { %3439 = vmatmul.msk.bf16.gmra.mxu1 %vm762_vm1, %v4557_v7  ;;  %3455 = vmatmul.msk.bf16.gmra.mxu3 %vm762_vm1, %v4557_v7  ;;  %v753_v7 = vrot.slane %v4515_v1, 2 }
  0xd9   :  { %v4628_v62 = vsel %vm713_vm0, %v753_v7, %v754_v61  ;;  %v4645_v7 = vld [vmem:[%s5391_s0 + $0xb4] sm:$0xff]  ;;  %v3325_v61 = vld [vmem:[%s5392_s1 + $0x68] sm:$0xf] }
  0xda   :  { %v4585_v35 = vpop.f32.mrf.mxu3  ;;  %5446 = vst [vmem:[#allocation21_spill] sm:$0xff] %v4628_v62  ;;  %v3326_v23 = vor.u32 %v3635_v39, %v3325_v61  ;;  %v5411_v27 = vshll.u32 %v4645_v7, 16  ;;  %v5418_v59 = vshrl.u32 %v4645_v7, 16  ;;  %v501_v17 = vrot.slane %v4645_v7, 1 }
  0xdc   :  { %v4599_v55 = vpop.f32.mrf.mxu1  ;;  %1525 = vmatpush.bf16.msrb.mxu1 %v3326_v23  ;;  %v416_v45 = vrot.slane %v5411_v27, 1  ;;  %v776_v23 = vsel %vm762_vm1, %v4028_v40, %v436_v19  ;;  %v694_v40 = vpop.permute.xlu2 %693  ;;  %v756_v19 = vrot.slane %v4574_v26, 2 }
  0xdd   :  { %v809_v14 = vsel %vm795_vm5, %v776_v23, %v517_v29  ;;  %v5451_v29 = vshrl.u32 %v4574_v26, 16 }
  0xde   :  { %v417_v27 = vor.u32 %v416_v45, %v5418_v59  ;;  %v757_v45 = vrot.slane %v4582_v36, 2 }
  0xe2   :  { %v4616_v0 = vpop.f32.mrf.mxu3 }
  0xe4   :  { %v4625_v31 = vpop.f32.mrf.mxu1 }
  0xe6   :  { %1198 = vmatmul.bf16.gmra.mxu0 %v4619_v13  ;;  %1376 = vmatmul.bf16.gmra.mxu2 %v4619_v13 }
  0xe7   :  { %3440 = vmatmul.msk.bf16.gmra.mxu1 %vm762_vm1, %v4628_v62  ;;  %3456 = vmatmul.msk.bf16.gmra.mxu3 %vm762_vm1, %v4628_v62  ;;  %v4656_v62 = vpack.c.b16 %v213_v12, %v213_v12  ;;  %v3310_v12 = vor.u32 %v3631_v52, %v3309_v2  ;;  %v3627_v2 = vld [vmem:[%s5392_s1 + $0x34] sm:$0xf0] }
  0xe8   :  { %v3294_v49 = vor.u32 %v3627_v2, %v3293_v22  ;;  %v666_v22 = vshrl.u32 %v4582_v36, 16  ;;  %v663_v2 = vrot.slane %v5451_v29, 1 }
  0xe9   :  { %v5419_v61 = vshll.u32 %v4656_v62, 16  ;;  %v502_v39 = vrot.slane %v4656_v62, 1  ;;  %1526 = vmatpush.bf16.msrb.mxu1 %v3310_v12 }
  0xea   :  { %v4654_v51 = vpop.f32.mrf.mxu3 }
  0xeb   :  { %v421_v52 = vrot.slane %v5419_v61, 1  ;;  %v503_v46 = vsel %vm455_vm4, %v501_v17, %v502_v39  ;;  %v4696_v61 = vsel %vm828_vm6, %v809_v14, %v694_v40  ;;  %v3655_v17 = vld [vmem:[%s5392_s1 + $0x114] sm:$0xf0] }
  0xec   :  { %v4669_v47 = vpop.f32.mrf.mxu1  ;;  %534 = vrot.lane.b32.xlu1 %v503_v46, %s3792_s30  ;;  %v3405_v46 = vld [vmem:[%s5392_s1 + $0x108] sm:$0xf]  ;;  %v3623_v14 = vld [vmem:[%s5392_s1 + $0x14] sm:$0xf0] }
  0xed   :  { %v422_v59 = vsel %vm230_vm2, %v417_v27, %v421_v52  ;;  %1527 = vmatpush.bf16.msrb.mxu1 %v3294_v49  ;;  %v3277_v27 = vld [vmem:[%s5392_s1 + $0x8] sm:$0xf]  ;;  %v3406_v49 = vor.u32 %v3655_v17, %v3405_v46  ;;  %v5452_v52 = vshll.u32 %v4574_v26, 16 }
  0xee   :  { %453 = vrot.lane.b32.xlu0 %v422_v59, %s3790_s27  ;;  %v4710_v59 = vsel %vm713_vm0, %v756_v19, %v757_v45  ;;  %v3278_v23 = vor.u32 %v3623_v14, %v3277_v27  ;;  %v668_v19 = vrot.slane %v666_v22, 1  ;;  %v5453_v45 = vshll.u32 %v4582_v36, 16  ;;  %v3653_v27 = vld [vmem:[%s5392_s1 + $0x10c] sm:$0xf]  ;;  %v3407_v14 = vld [vmem:[%s5392_s1 + $0x118] sm:$0xf0] }
  0xef   :  { %5450 = vst [vmem:[#allocation22_spill] sm:$0xff] %v4710_v59  ;;  %v664_v40 = vrot.slane %v5452_v52, 2  ;;  %1617 = vmatpush.bf16.msrb.mxu3 %v3406_v49  ;;  %v3410_v36 = vor.u32 %v3653_v27, %v3407_v14  ;;  %v438_v52 = vpop.permute.xlu0 %437  ;;  %v675_v14 = vshrl.u32 %v4656_v62, 16 }
  0xf0   :  { %v669_v46 = vrot.slane %v5453_v45, 2 }
  0xf1   :  { %v665_v17 = vor.u32 %v664_v40, %v663_v2  ;;  %1528 = vmatpush.bf16.msrb.mxu1 %v3278_v23  ;;  %1795 = vmatpush.bf16.msrb.mxu2 %v3410_v36  ;;  %v778_v23 = vsel %vm762_vm1, %v4117_v38, %v438_v52  ;;  %v519_v2 = vpop.permute.xlu1 %518  ;;  %v5459_v38 = vshrl.u32 %v4645_v7, 16 }
  0xf2   :  { %v4693_v12 = vpop.f32.mrf.mxu3  ;;  %v670_v22 = vor.u32 %v669_v46, %v668_v19  ;;  %v811_v40 = vsel %vm795_vm5, %v778_v23, %v519_v2  ;;  %v759_v19 = vrot.slane %v4645_v7, 2  ;;  %v760_v46 = vrot.slane %v4656_v62, 2 }
  0xf3   :  { %v672_v52 = vrot.slane %v5459_v38, 1  ;;  %v677_v2 = vrot.slane %v675_v14, 1 }
  0xf4   :  { %v4707_v39 = vpop.f32.mrf.mxu1  ;;  %v671_v45 = vsel %vm536_vm3, %v665_v17, %v670_v22  ;;  %v4754_v36 = vsel %vm713_vm0, %v759_v19, %v760_v46 }
  0xf5   :  { %709 = vrot.lane.b32.xlu2 %v671_v45, %s3794_s9  ;;  %5458 = vst [vmem:[#allocation27_spill] sm:$0xff] %v4754_v36  ;;  %v5460_v45 = vshll.u32 %v4645_v7, 16 }
  0xf6   :  { %1203 = vmatmul.bf16.gmra.mxu0 %v4696_v61  ;;  %1381 = vmatmul.bf16.gmra.mxu2 %v4696_v61 }
  0xf7   :  { %3441 = vmatmul.msk.bf16.gmra.mxu1 %vm762_vm1, %v4710_v59  ;;  %3457 = vmatmul.msk.bf16.gmra.mxu3 %vm762_vm1, %v4710_v59  ;;  %v696_v59 = vpop.permute.xlu2 %695  ;;  %v673_v23 = vrot.slane %v5460_v45, 2 }
  0xf8   :  { %v4748_v17 = vsel %vm828_vm6, %v811_v40, %v696_v59  ;;  %v5461_v59 = vshll.u32 %v4656_v62, 16 }
  0xf9   :  { %5456 = vst [vmem:[#allocation25_spill] sm:$0xff] %v4748_v17  ;;  %v674_v19 = vor.u32 %v673_v23, %v672_v52  ;;  %v3633_v52 = vld [vmem:[%s5392_s1 + $0x6c] sm:$0xf]  ;;  %v3327_v23 = vld [vmem:[%s5392_s1 + $0x78] sm:$0xf0] }
  0xfa   :  { %v4734_v29 = vpop.f32.mrf.mxu3  ;;  %v678_v40 = vrot.slane %v5461_v59, 2  ;;  %v521_v59 = vpop.permute.xlu1 %520 }
  0xfb   :  { %5454 = vst [vmem:[#allocation23_spill] sm:$0xff] %v4734_v29 }
  0xfc   :  { %v4738_v49 = vpop.f32.mrf.mxu1  ;;  %v679_v46 = vor.u32 %v678_v40, %v677_v2 }
  0xfe   :  { %v680_v14 = vsel %vm536_vm3, %v674_v19, %v679_v46  ;;  %v3330_v19 = vor.u32 %v3633_v52, %v3327_v23  ;;  %v4796_v46 = vld [vmem:[#allocation2] sm:$0xff] }
  0xff   :  { %711 = vrot.lane.b32.xlu2 %v680_v14, %s3794_s9 }
 0x100   :  { %1703 = vmatpush.bf16.msrb.mxu0 %v3330_v19 }
 0x102   :  { %v4745_v27 = vpop.f32.mrf.mxu3 }
 0x103   :  { %5455 = vst [vmem:[#allocation24_spill] sm:$0xff] %v4745_v27  ;;  %v698_v27 = vpop.permute.xlu2 %697 }
 0x104   :  { %v4751_v22 = vpop.f32.mrf.mxu1 }
 0x105   :  { %5457 = vst [vmem:[#allocation26_spill] sm:$0xff] %v4751_v22  ;;  %v440_v22 = vpop.permute.xlu0 %439 }
 0x106   :  { %1208 = vmatmul.bf16.gmra.mxu0 %v4748_v17  ;;  %1386 = vmatmul.bf16.gmra.mxu2 %v4748_v17  ;;  %v780_v62 = vsel %vm762_vm1, %v4212_v57, %v440_v22 }
 0x107   :  { %3442 = vmatmul.msk.bf16.gmra.mxu1 %vm762_vm1, %v4754_v36  ;;  %3458 = vmatmul.msk.bf16.gmra.mxu3 %vm762_vm1, %v4754_v36  ;;  %v813_v17 = vsel %vm795_vm5, %v780_v62, %v521_v59  ;;  %v4800_v59 = vld [vmem:[#allocation2 + $0x20] sm:$0xff] }
 0x108   :  { %v4786_v40 = vsel %vm828_vm6, %v813_v17, %v698_v27 }
 0x109   :  { %5464 = vst [vmem:[#allocation30_spill] sm:$0xff] %v4786_v40 }
 0x10a   :  { %v4768_v38 = vpop.f32.mrf.mxu3 }
 0x10b   :  { %5462 = vst [vmem:[#allocation28_spill] sm:$0xff] %v4768_v38  ;;  %v4813_v38 = vld [vmem:[#allocation2 + $0x28] sm:$0xff] }
 0x10c   :  { %v4772_v45 = vpop.f32.mrf.mxu1 }
 0x10d   :  { %v442_v17 = vpop.permute.xlu0 %441 }
 0x10e   :  { %v782_v36 = vsel %vm762_vm1, %v4265_v21, %v442_v17 }
 0x112   :  { %v4777_v29 = vpop.f32.mrf.mxu3 }
 0x113   :  { %5463 = vst [vmem:[#allocation29_spill] sm:$0xff] %v4777_v29  ;;  %v1174_v2 = vpop.f32.mrf.mxu0  ;;  %v700_v29 = vpop.permute.xlu2 %699 }
 0x114   :  { %v4788_v57 = vpop.f32.mrf.mxu1  ;;  %v1264_v22 = vadd.f32 %v4295_v58, %v1174_v2 }
 0x115   :  { %5465 = vst [vmem:[#allocation31_spill] sm:$0xff] %v4788_v57  ;;  %v523_v57 = vpop.permute.xlu1 %522 }
 0x116   :  { %1213 = vmatmul.bf16.gmra.mxu0 %v4786_v40  ;;  %1391 = vmatmul.bf16.gmra.mxu2 %v4786_v40  ;;  %v1885_v52 = vadd.f32 %v4796_v46, %v1264_v22  ;;  %v4810_v40 = vld [vmem:[#allocation2 + $0x8] sm:$0xff] }
 0x117   :  { %1529 = vmatmul.bf16.vlgmr.msrb.gmra.mxu1 %v4301_v54  ;;  %3459 = vmatmul.msk.bf16.vlgmr.msrb.gmra.mxu3 %vm762_vm1, %v3884_v32  ;;  %v815_v54 = vsel %vm795_vm5, %v782_v36, %v523_v57 }
 0x119   :  { %v1352_v14 = vpop.f32.mrf.mxu2 }
 0x11a   :  { %v4798_v27 = vpop.f32.mrf.mxu3  ;;  %v1442_v58 = vadd.f32 %v4325_v8, %v1352_v14  ;;  %v4820_v14 = vsel %vm828_vm6, %v815_v54, %v700_v29 }
 0x11b   :  { %5466 = vst [vmem:[#allocation32_spill] sm:$0xff] %v4798_v27  ;;  %v1176_v62 = vpop.f32.mrf.mxu0  ;;  %v2013_v27 = vmax.f32 %v1885_v52, 0.0 }
 0x11c   :  { %v1266_v23 = vadd.f32 %v4339_v48, %v1176_v62  ;;  %v4804_v19 = vpop.f32.mrf.mxu1  ;;  %v1886_v48 = vadd.f32 %v4810_v40, %v1442_v58  ;;  %5469 = vst [vmem:[#allocation35_spill] sm:$0xff] %v4820_v14  ;;  %v444_v58 = vpop.permute.xlu0 %443 }
 0x11d   :  { %5467 = vst [vmem:[#allocation33_spill] sm:$0xff] %v4804_v19 }
 0x11e   :  { %v1889_v2 = vadd.f32 %v4800_v59, %v1266_v23  ;;  %v2014_v57 = vmax.f32 %v1886_v48, 0.0 }
 0x120   :  { %v2017_v32 = vmax.f32 %v1889_v2, 0.0 }
 0x121   :  { %v1354_v22 = vpop.f32.mrf.mxu2 }
 0x122   :  { %v2141_v62 = vmax.f32 %v2013_v27, %v2017_v32  ;;  %v1444_v21 = vadd.f32 %v4359_v18, %v1354_v22  ;;  %v4817_v17 = vpop.f32.mrf.mxu3 }
 0x123   :  { %5468 = vst [vmem:[#allocation34_spill] sm:$0xff] %v4817_v17  ;;  %v1179_v8 = vpop.f32.mrf.mxu0 }
 0x124   :  { %v1890_v52 = vadd.f32 %v4813_v38, %v1444_v21  ;;  %v4823_v23 = vpop.f32.mrf.mxu1  ;;  %v2142_v36 = vrot.slane %v2141_v62, 4  ;;  %v1269_v54 = vadd.f32 %v4365_v43, %v1179_v8 }
 0x125   :  { %5470 = vst [vmem:[#allocation36_spill] sm:$0xff] %v4823_v23 }
 0x126   :  { %v2018_v2 = vmax.f32 %v1890_v52, 0.0  ;;  %1218 = vmatmul.bf16.gmra.mxu0 %v4820_v14  ;;  %1396 = vmatmul.bf16.gmra.mxu2 %v4820_v14  ;;  %v2143_v18 = vmax.f32 %v2141_v62, %v2142_v36  ;;  %v1893_v21 = vadd.f32 %v4796_v46, %v1269_v54 }
 0x127   :  { %1534 = vmatmul.bf16.gmra.mxu1 %v4363_v11  ;;  %3460 = vmatmul.msk.bf16.gmra.mxu3 %vm762_vm1, %v3915_v9  ;;  %v784_v9 = vsel %vm762_vm1, %v4314_v53, %v444_v58  ;;  %v702_v11 = vpop.permute.xlu2 %701 }
 0x128   :  { %v2148_v32 = vmax.f32 %v2014_v57, %v2018_v2  ;;  %v2144_v14 = vrot.slane %v2143_v18, 2  ;;  %v525_v57 = vpop.permute.xlu1 %524  ;;  %v2021_v36 = vmax.f32 %v1893_v21, 0.0 }
 0x129   :  { %v1357_v29 = vpop.f32.mrf.mxu2 }
 0x12a   :  { %v4831_v27 = vpop.f32.mrf.mxu3  ;;  %v2149_v22 = vrot.slane %v2148_v32, 4  ;;  %v1447_v43 = vadd.f32 %v4391_v44, %v1357_v29  ;;  %v2145_v54 = vmax.f32 %v2143_v18, %v2144_v14 }
 0x12b   :  { %5471 = vst [vmem:[#allocation37_spill] sm:$0xff] %v4831_v27  ;;  %v1181_v48 = vpop.f32.mrf.mxu0  ;;  %v817_v27 = vsel %vm795_vm5, %v784_v9, %v525_v57  ;;  %v3629_v9 = vld [vmem:[%s5392_s1 + $0x4c] sm:$0xf] }
 0x12c   :  { %v1271_v52 = vadd.f32 %v4398_v15, %v1181_v48  ;;  %v4835_v23 = vpop.f32.mrf.mxu1  ;;  %v2150_v8 = vmax.f32 %v2148_v32, %v2149_v22  ;;  %v1894_v15 = vadd.f32 %v4810_v40, %v1447_v43  ;;  %v4847_v44 = vsel %vm828_vm6, %v817_v27, %v702_v11  ;;  %v446_v43 = vpop.permute.xlu0 %445 }
 0x12d   :  { %5472 = vst [vmem:[#allocation38_spill] sm:$0xff] %v4835_v23 }
 0x12e   :  { %v1897_v62 = vadd.f32 %v4800_v59, %v1271_v52  ;;  %v2151_v53 = vrot.slane %v2150_v8, 2  ;;  %v2022_v18 = vmax.f32 %v1894_v15, 0.0 }
 0x130   :  { %v2025_v2 = vmax.f32 %v1897_v62, 0.0  ;;  %v2152_v11 = vmax.f32 %v2150_v8, %v2151_v53  ;;  %v786_v8 = vsel %vm762_vm1, %v4385_v25, %v446_v43 }
 0x131   :  { %v1359_v17 = vpop.f32.mrf.mxu2 }
 0x132   :  { %v2172_v48 = vmax.f32 %v2021_v36, %v2025_v2  ;;  %v1449_v23 = vadd.f32 %v4415_v41, %v1359_v17  ;;  %v4844_v19 = vpop.f32.mrf.mxu3  ;;  %v3311_v41 = vld [vmem:[%s5392_s1 + $0x58] sm:$0xf0]  ;;  %v2146_v17 = vrot.slane %v2145_v54, 1 }
 0x133   :  { %v1184_v58 = vpop.f32.mrf.mxu0  ;;  %v3314_v14 = vor.u32 %v3629_v9, %v3311_v41 }
 0x134   :  { %v2173_v32 = vrot.slane %v2172_v48, 4  ;;  %v1898_v29 = vadd.f32 %v4813_v38, %v1449_v23  ;;  %v4850_v22 = vpop.f32.mrf.mxu1  ;;  %v1274_v57 = vadd.f32 %v4424_v42, %v1184_v58  ;;  %v2147_v62 = vmax.f32 %v2145_v54, %v2146_v17  ;;  %v527_v58 = vpop.permute.xlu1 %526 }
 0x135   :  { %5473 = vst [vmem:[#allocation39_spill] sm:$0xff] %v4850_v22  ;;  %1704 = vmatpush.bf16.msrb.mxu0 %v3314_v14 }
 0x136   :  { %v2174_v21 = vmax.f32 %v2172_v48, %v2173_v32  ;;  %v2026_v52 = vmax.f32 %v1898_v29, 0.0  ;;  %1223 = vmatmul.bf16.gmra.mxu0 %v4847_v44  ;;  %1401 = vmatmul.bf16.gmra.mxu2 %v4847_v44  ;;  %v2153_v32 = vrot.slane %v2152_v11, 1  ;;  %v1901_v41 = vadd.f32 %v4796_v46, %v1274_v57  ;;  %v704_v57 = vpop.permute.xlu2 %703 }
 0x137   :  { %1539 = vmatmul.bf16.gmra.mxu1 %v4421_v5  ;;  %3461 = vmatmul.msk.bf16.gmra.mxu3 %vm762_vm1, %v3944_v34  ;;  %v2622_v54 = vpack.c.bf16 %v2147_v62, %v2147_v62 }
 0x138   :  { %v2175_v23 = vrot.slane %v2174_v21, 2  ;;  %v2179_v27 = vmax.f32 %v2022_v18, %v2026_v52 }
 0x139   :  { %v1362_v36 = vpop.f32.mrf.mxu2  ;;  %v2811_v22 = vunpack.c.l.b16 %v2622_v54 }
 0x13a   :  { %v2176_v2 = vmax.f32 %v2174_v21, %v2175_v23  ;;  %v2180_v15 = vrot.slane %v2179_v27, 4  ;;  %v4864_v48 = vpop.f32.mrf.mxu3  ;;  %v1452_v17 = vadd.f32 %v4455_v3, %v1362_v36  ;;  %v2154_v23 = vmax.f32 %v2152_v11, %v2153_v32 }
 0x13b   :  { %5474 = vst [vmem:[#allocation40_spill] sm:$0xff] %v4864_v48  ;;  %v1186_v29 = vpop.f32.mrf.mxu0  ;;  %v819_v48 = vsel %vm795_vm5, %v786_v8, %v527_v58 }
 0x13c   :  { %v2177_v53 = vrot.slane %v2176_v2, 1  ;;  %v2181_v9 = vmax.f32 %v2179_v27, %v2180_v15  ;;  %v1276_v18 = vadd.f32 %v4469_v33, %v1186_v29  ;;  %v4870_v42 = vpop.f32.mrf.mxu1  ;;  %v2029_v27 = vmax.f32 %v1901_v41, 0.0 }
 0x13d   :  { %5475 = vst [vmem:[#allocation41_spill] sm:$0xff] %v4870_v42  ;;  %v1902_v33 = vadd.f32 %v4810_v40, %v1452_v17  ;;  %v2623_v11 = vpack.c.bf16 %v2154_v23, %v2154_v23  ;;  %v4880_v8 = vsel %vm828_vm6, %v819_v48, %v704_v57  ;;  %v448_v23 = vpop.permute.xlu0 %447 }
 0x13e   :  { %v2178_v14 = vmax.f32 %v2176_v2, %v2177_v53  ;;  %v2182_v21 = vrot.slane %v2181_v9, 2  ;;  %v1905_v52 = vadd.f32 %v4800_v59, %v1276_v18 }
 0x13f   :  { %v2030_v17 = vmax.f32 %v1902_v33, 0.0 }
 0x140   :  { %v2626_v25 = vpack.c.bf16 %v2178_v14, %v2178_v14  ;;  %v2183_v43 = vmax.f32 %v2181_v9, %v2182_v21  ;;  %v2033_v15 = vmax.f32 %v1905_v52, 0.0 }
 0x141   :  { %v1364_v29 = vpop.f32.mrf.mxu2 }
 0x142   :  { %v2815_v62 = vunpack.c.l.b16 %v2626_v25  ;;  %v2184_v42 = vrot.slane %v2183_v43, 1  ;;  %v2202_v3 = vmax.f32 %v2029_v27, %v2033_v15  ;;  %v1454_v36 = vadd.f32 %v4489_v4, %v1364_v29  ;;  %v4877_v2 = vpop.f32.mrf.mxu3 }
 0x143   :  { %v1189_v32 = vpop.f32.mrf.mxu0  ;;  %v2812_v4 = vunpack.c.l.b16 %v2623_v11  ;;  %v788_v29 = vsel %vm762_vm1, %v4444_v20, %v448_v23 }
 0x144   :  { %v2876_v53 = vsel %vm2875_vm7, %v2815_v62, %v2811_v22  ;;  %v2185_v9 = vmax.f32 %v2183_v43, %v2184_v42  ;;  %v2203_v41 = vrot.slane %v2202_v3, 4  ;;  %v1906_v18 = vadd.f32 %v4813_v38, %v1454_v36  ;;  %v4884_v58 = vpop.f32.mrf.mxu1 }
 0x145   :  { %v1279_v52 = vadd.f32 %v4495_v16, %v1189_v32  ;;  %v529_v16 = vpop.permute.xlu1 %528 }
 0x146   :  { %v2627_v54 = vpack.c.bf16 %v2185_v9, %v2185_v9  ;;  %v2204_v14 = vmax.f32 %v2202_v3, %v2203_v41  ;;  %v2034_v21 = vmax.f32 %v1906_v18, 0.0  ;;  %1228 = vmatmul.bf16.gmra.mxu0 %v4880_v8  ;;  %1406 = vmatmul.bf16.gmra.mxu2 %v4880_v8 }
 0x147   :  { %1544 = vmatmul.bf16.gmra.mxu1 %v4492_v50  ;;  %3462 = vmatmul.msk.bf16.gmra.mxu3 %vm762_vm1, %v3974_v60  ;;  %v1909_v36 = vadd.f32 %v4796_v46, %v1279_v52 }
 0x148   :  { %v2816_v22 = vunpack.c.l.b16 %v2627_v54  ;;  %v2205_v48 = vrot.slane %v2204_v14, 2  ;;  %v2209_v42 = vmax.f32 %v2030_v17, %v2034_v21  ;;  %v821_v17 = vsel %vm795_vm5, %v788_v29, %v529_v16 }
 0x149   :  { %v1367_v25 = vpop.f32.mrf.mxu2  ;;  %v2037_v20 = vmax.f32 %v1909_v36, 0.0 }
 0x14a   :  { %v2889_v43 = vsel %vm2875_vm7, %v2816_v22, %v2812_v4  ;;  %v2206_v27 = vmax.f32 %v2204_v14, %v2205_v48  ;;  %v2210_v15 = vrot.slane %v2209_v42, 4  ;;  %v4893_v57 = vpop.f32.mrf.mxu3  ;;  %v1457_v32 = vadd.f32 %v4521_v56, %v1367_v25  ;;  %v706_v22 = vpop.permute.xlu2 %705 }
 0x14b   :  { %v1191_v33 = vpop.f32.mrf.mxu0 }
 0x14c   :  { %v2207_v62 = vrot.slane %v2206_v27, 1  ;;  %v2211_v3 = vmax.f32 %v2209_v42, %v2210_v15  ;;  %v1281_v11 = vadd.f32 %v4528_v63, %v1191_v33  ;;  %v4899_v9 = vpop.f32.mrf.mxu1  ;;  %v1910_v48 = vadd.f32 %v4810_v40, %v1457_v32 }
 0x14d   :  { %v4909_v15 = vsel %vm828_vm6, %v821_v17, %v706_v22 }
 0x14e   :  { %v2208_v41 = vmax.f32 %v2206_v27, %v2207_v62  ;;  %v2212_v18 = vrot.slane %v2211_v3, 2  ;;  %v1913_v54 = vadd.f32 %v4800_v59, %v1281_v11  ;;  %v3625_v11 = vld [vmem:[%s5392_s1 + $0x2c] sm:$0xf] }
 0x150   :  { %v2630_v14 = vpack.c.bf16 %v2208_v41, %v2208_v41  ;;  %v2213_v21 = vmax.f32 %v2211_v3, %v2212_v18  ;;  %v2041_v4 = vmax.f32 %v1913_v54, 0.0  ;;  %v2038_v41 = vmax.f32 %v1910_v48, 0.0 }
 0x151   :  { %v1369_v63 = vpop.f32.mrf.mxu2 }
 0x152   :  { %v2819_v42 = vunpack.c.l.b16 %v2630_v14  ;;  %v2214_v52 = vrot.slane %v2213_v21, 1  ;;  %v2232_v23 = vmax.f32 %v2037_v20, %v2041_v4  ;;  %v1459_v56 = vadd.f32 %v4545_v37, %v1369_v63  ;;  %v4906_v25 = vpop.f32.mrf.mxu3  ;;  %v3295_v37 = vld [vmem:[%s5392_s1 + $0x38] sm:$0xf0]  ;;  %v450_v20 = vpop.permute.xlu0 %449 }
 0x153   :  { %v1194_v27 = vpop.f32.mrf.mxu0  ;;  %v3298_v16 = vor.u32 %v3625_v11, %v3295_v37 }
 0x154   :  { %v2878_v33 = vsel %vm2877_vm8, %v2819_v42, %v2876_v53  ;;  %v2215_v29 = vmax.f32 %v2213_v21, %v2214_v52  ;;  %v2233_v62 = vrot.slane %v2232_v23, 4  ;;  %v1914_v3 = vadd.f32 %v4813_v38, %v1459_v56  ;;  %v4913_v36 = vpop.f32.mrf.mxu1 }
 0x155   :  { %v1284_v21 = vadd.f32 %v4554_v10, %v1194_v27  ;;  %1705 = vmatpush.bf16.msrb.mxu0 %v3298_v16  ;;  %v531_v27 = vpop.permute.xlu1 %530 }
 0x156   :  { %v2631_v32 = vpack.c.bf16 %v2215_v29, %v2215_v29  ;;  %v2234_v18 = vmax.f32 %v2232_v23, %v2233_v62  ;;  %v2042_v54 = vmax.f32 %v1914_v3, 0.0  ;;  %1233 = vmatmul.bf16.gmra.mxu0 %v4909_v15  ;;  %1411 = vmatmul.bf16.gmra.mxu2 %v4909_v15  ;;  %v790_v23 = vsel %vm762_vm1, %v4515_v1, %v450_v20 }
 0x157   :  { %1549 = vmatmul.bf16.gmra.mxu1 %v4551_v6  ;;  %3463 = vmatmul.msk.bf16.gmra.mxu3 %vm762_vm1, %v4023_v30  ;;  %v1917_v62 = vadd.f32 %v4796_v46, %v1284_v21 }
 0x158   :  { %v2820_v53 = vunpack.c.l.b16 %v2631_v32  ;;  %v2235_v17 = vrot.slane %v2234_v18, 2  ;;  %v2239_v14 = vmax.f32 %v2038_v41, %v2042_v54  ;;  %v823_v32 = vsel %vm795_vm5, %v790_v23, %v531_v27 }
 0x159   :  { %v1372_v4 = vpop.f32.mrf.mxu2  ;;  %v2045_v1 = vmax.f32 %v1917_v62, 0.0 }
 0x15a   :  { %v2890_v22 = vsel %vm2877_vm8, %v2820_v53, %v2889_v43  ;;  %v2236_v48 = vmax.f32 %v2234_v18, %v2235_v17  ;;  %v2240_v63 = vrot.slane %v2239_v14, 4  ;;  %v4928_v42 = vpop.f32.mrf.mxu3  ;;  %v1462_v11 = vadd.f32 %v4585_v35, %v1372_v4  ;;  %v708_v53 = vpop.permute.xlu2 %707 }
 0x15b   :  { %v1196_v52 = vpop.f32.mrf.mxu0 }
 0x15c   :  { %v2237_v56 = vrot.slane %v2236_v48, 1  ;;  %v2241_v29 = vmax.f32 %v2239_v14, %v2240_v63  ;;  %v1286_v3 = vadd.f32 %v4599_v55, %v1196_v52  ;;  %v4934_v10 = vpop.f32.mrf.mxu1  ;;  %v1918_v17 = vadd.f32 %v4810_v40, %v1462_v11 }
 0x15d   :  { %v4944_v63 = vsel %vm828_vm6, %v823_v32, %v708_v53  ;;  %v452_v32 = vpop.permute.xlu0 %451 }
 0x15e   :  { %v2238_v43 = vmax.f32 %v2236_v48, %v2237_v56  ;;  %v2242_v37 = vrot.slane %v2241_v29, 2  ;;  %v1921_v16 = vadd.f32 %v4800_v59, %v1286_v3  ;;  %v2046_v27 = vmax.f32 %v1918_v17, 0.0 }
 0x160   :  { %v2634_v41 = vpack.c.bf16 %v2238_v43, %v2238_v43  ;;  %v2243_v18 = vmax.f32 %v2241_v29, %v2242_v37  ;;  %v2049_v54 = vmax.f32 %v1921_v16, 0.0 }
 0x161   :  { %v1374_v55 = vpop.f32.mrf.mxu2 }
 0x162   :  { %v2823_v14 = vunpack.c.l.b16 %v2634_v41  ;;  %v2244_v21 = vrot.slane %v2243_v18, 1  ;;  %v2262_v20 = vmax.f32 %v2045_v1, %v2049_v54  ;;  %v1464_v35 = vadd.f32 %v4616_v0, %v1374_v55  ;;  %v4941_v4 = vpop.f32.mrf.mxu3 }
 0x163   :  { %v1199_v48 = vpop.f32.mrf.mxu0  ;;  %v792_v55 = vsel %vm762_vm1, %v4574_v26, %v452_v32 }
 0x164   :  { %v2880_v52 = vsel %vm2879_vm9, %v2823_v14, %v2878_v33  ;;  %v2245_v23 = vmax.f32 %v2243_v18, %v2244_v21  ;;  %v2263_v56 = vrot.slane %v2262_v20, 4  ;;  %v1922_v29 = vadd.f32 %v4813_v38, %v1464_v35  ;;  %v4948_v62 = vpop.f32.mrf.mxu1 }
 0x165   :  { %v1289_v16 = vadd.f32 %v4625_v31, %v1199_v48  ;;  %v533_v31 = vpop.permute.xlu1 %532 }
 0x166   :  { %v2635_v3 = vpack.c.bf16 %v2245_v23, %v2245_v23  ;;  %v2264_v11 = vmax.f32 %v2262_v20, %v2263_v56  ;;  %v2050_v43 = vmax.f32 %v1922_v29, 0.0  ;;  %1238 = vmatmul.bf16.gmra.mxu0 %v4944_v63  ;;  %1416 = vmatmul.bf16.gmra.mxu2 %v4944_v63 }
 0x167   :  { %1554 = vmatmul.bf16.gmra.mxu1 %v4619_v13  ;;  %3464 = vmatmul.msk.bf16.gmra.mxu3 %vm762_vm1, %v4108_v28  ;;  %v1925_v20 = vadd.f32 %v4796_v46, %v1289_v16 }
 0x168   :  { %v2824_v0 = vunpack.c.l.b16 %v2635_v3  ;;  %v2265_v33 = vrot.slane %v2264_v11, 2  ;;  %v2269_v37 = vmax.f32 %v2046_v27, %v2050_v43  ;;  %v825_v3 = vsel %vm795_vm5, %v792_v55, %v533_v31 }
 0x169   :  { %v1377_v41 = vpop.f32.mrf.mxu2  ;;  %v2053_v26 = vmax.f32 %v1925_v20, 0.0 }
 0x16a   :  { %v2891_v18 = vsel %vm2879_vm9, %v2824_v0, %v2890_v22  ;;  %v2266_v1 = vmax.f32 %v2264_v11, %v2265_v33  ;;  %v2270_v54 = vrot.slane %v2269_v37, 4  ;;  %v4957_v53 = vpop.f32.mrf.mxu3  ;;  %v1467_v48 = vadd.f32 %v4654_v51, %v1377_v41  ;;  %v710_v0 = vpop.permute.xlu2 %709  ;;  %v3279_v51 = vld [vmem:[%s5392_s1 + $0x18] sm:$0xf0] }
 0x16b   :  { %v1201_v17 = vpop.f32.mrf.mxu0  ;;  %v4979_v55 = vsel %vm828_vm6, %v825_v3, %v710_v0 }
 0x16c   :  { %v2267_v14 = vrot.slane %v2266_v1, 1  ;;  %v2271_v21 = vmax.f32 %v2269_v37, %v2270_v54  ;;  %v1291_v35 = vadd.f32 %v4669_v47, %v1201_v17  ;;  %v4963_v23 = vpop.f32.mrf.mxu1  ;;  %v1926_v33 = vadd.f32 %v4810_v40, %v1467_v48  ;;  %v3621_v37 = vld [vmem:[%s5392_s1 + $0xc] sm:$0xf] }
 0x16e   :  { %v2268_v22 = vmax.f32 %v2266_v1, %v2267_v14  ;;  %v2272_v56 = vrot.slane %v2271_v21, 2  ;;  %v1929_v29 = vadd.f32 %v4800_v59, %v1291_v35  ;;  %v3282_v14 = vor.u32 %v3621_v37, %v3279_v51 }
 0x170   :  { %v2638_v27 = vpack.c.bf16 %v2268_v22, %v2268_v22  ;;  %v2273_v11 = vmax.f32 %v2271_v21, %v2272_v56  ;;  %v2057_v43 = vmax.f32 %v1929_v29, 0.0  ;;  %1706 = vmatpush.bf16.msrb.mxu0 %v3282_v14  ;;  %v2054_v56 = vmax.f32 %v1926_v33, 0.0 }
 0x171   :  { %v1379_v47 = vpop.f32.mrf.mxu2 }
 0x172   :  { %v2827_v16 = vunpack.c.l.b16 %v2638_v27  ;;  %v2274_v32 = vrot.slane %v2273_v11, 1  ;;  %v2292_v41 = vmax.f32 %v2053_v26, %v2057_v43  ;;  %v1469_v1 = vadd.f32 %v4693_v12, %v1379_v47  ;;  %v4976_v54 = vpop.f32.mrf.mxu3  ;;  %v454_v26 = vpop.permute.xlu0 %453 }
 0x173   :  { %v1204_v17 = vpop.f32.mrf.mxu0 }
 0x174   :  { %v2882_v21 = vsel %vm2881_vm10, %v2827_v16, %v2880_v52  ;;  %v2275_v20 = vmax.f32 %v2273_v11, %v2274_v32  ;;  %v2293_v35 = vrot.slane %v2292_v41, 4  ;;  %v1930_v31 = vadd.f32 %v4813_v38, %v1469_v1  ;;  %v4983_v48 = vpop.f32.mrf.mxu1 }
 0x175   :  { %v1294_v11 = vadd.f32 %v4707_v39, %v1204_v17  ;;  %v794_v16 = vsel %vm762_vm1, %v4645_v7, %v454_v26  ;;  %v535_v39 = vpop.permute.xlu1 %534  ;;  %v5478_v17 = vld [vmem:[#allocation23_spill] sm:$0xff] }
 0x176   :  { %v2639_v22 = vpack.c.bf16 %v2275_v20, %v2275_v20  ;;  %v2294_v29 = vmax.f32 %v2292_v41, %v2293_v35  ;;  %v2058_v12 = vmax.f32 %v1930_v31, 0.0  ;;  %1243 = vmatmul.bf16.gmra.mxu0 %v4979_v55  ;;  %1421 = vmatmul.bf16.gmra.mxu2 %v4979_v55 }
 0x177   :  { %1559 = vmatmul.bf16.gmra.mxu1 %v4696_v61  ;;  %3465 = vmatmul.msk.bf16.gmra.mxu3 %vm762_vm1, %v4187_v24  ;;  %v1933_v1 = vadd.f32 %v4796_v46, %v1294_v11 }
 0x178   :  { %v2828_v52 = vunpack.c.l.b16 %v2639_v22  ;;  %v2295_v3 = vrot.slane %v2294_v29, 2  ;;  %v2299_v27 = vmax.f32 %v2054_v56, %v2058_v12  ;;  %v827_v56 = vsel %vm795_vm5, %v794_v16, %v535_v39 }
 0x179   :  { %v1382_v43 = vpop.f32.mrf.mxu2  ;;  %v2061_v7 = vmax.f32 %v1933_v1, 0.0 }
 0x17a   :  { %v2892_v0 = vsel %vm2881_vm10, %v2828_v52, %v2891_v18  ;;  %v2296_v33 = vmax.f32 %v2294_v29, %v2295_v3  ;;  %v2300_v47 = vrot.slane %v2299_v27, 4  ;;  %v4992_v37 = vpop.f32.mrf.mxu3  ;;  %v1472_v35 = vadd.f32 %v5478_v17, %v1382_v43  ;;  %v712_v3 = vpop.permute.xlu2 %711 }
 0x17b   :  { %5476 = vst [vmem:[#allocation42_spill] sm:$0xff] %v4992_v37  ;;  %v1206_v51 = vpop.f32.mrf.mxu0 }
 0x17c   :  { %v2297_v32 = vrot.slane %v2296_v33, 1  ;;  %v2301_v41 = vmax.f32 %v2299_v27, %v2300_v47  ;;  %v1296_v14 = vadd.f32 %v4738_v49, %v1206_v51  ;;  %v4998_v20 = vpop.f32.mrf.mxu1  ;;  %v1934_v27 = vadd.f32 %v4810_v40, %v1472_v35  ;;  %v5479_v51 = vld [vmem:[#allocation24_spill] sm:$0xff] }
 0x17d   :  { %5477 = vst [vmem:[#allocation43_spill] sm:$0xff] %v4998_v20 }
 0x17e   :  { %v2298_v18 = vmax.f32 %v2296_v33, %v2297_v32  ;;  %v2302_v31 = vrot.slane %v2301_v41, 2  ;;  %v1937_v22 = vadd.f32 %v4800_v59, %v1296_v14  ;;  %v5008_v14 = vsel %vm828_vm6, %v827_v56, %v712_v3  ;;  %v5484_v56 = vld [vmem:[#allocation13_spill] sm:$0xff]  ;;  %v5485_v3 = vld [vmem:[#allocation26_spill] sm:$0xff] }
 0x17f   :  { %5481 = vst [vmem:[#allocation24_spill] sm:$0xff] %v5008_v14 }
 0x180   :  { %v2642_v29 = vpack.c.bf16 %v2298_v18, %v2298_v18  ;;  %v2303_v12 = vmax.f32 %v2301_v41, %v2302_v31  ;;  %v2065_v52 = vmax.f32 %v1937_v22, 0.0  ;;  %v2062_v18 = vmax.f32 %v1934_v27, 0.0 }
 0x181   :  { %v1384_v11 = vpop.f32.mrf.mxu2 }
 0x182   :  { %v2831_v49 = vunpack.c.l.b16 %v2642_v29  ;;  %v2304_v26 = vrot.slane %v2303_v12, 1  ;;  %v2322_v47 = vmax.f32 %v2061_v7, %v2065_v52  ;;  %v1474_v43 = vadd.f32 %v5479_v51, %v1384_v11  ;;  %v5005_v33 = vpop.f32.mrf.mxu3  ;;  %v5483_v29 = vld [vmem:[#allocation25_spill] sm:$0xff] }
 0x183   :  { %5480 = vst [vmem:[#allocation23_spill] sm:$0xff] %v5005_v33  ;;  %v1209_v32 = vpop.f32.mrf.mxu0 }
 0x184   :  { %v2305_v16 = vmax.f32 %v2303_v12, %v2304_v26  ;;  %v2323_v41 = vrot.slane %v2322_v47, 4  ;;  %v1938_v1 = vadd.f32 %v4813_v38, %v1474_v43  ;;  %v5011_v39 = vpop.f32.mrf.mxu1  ;;  %v2884_v17 = vsel %vm2883_vm11, %v2831_v49, %v2882_v21 }
 0x185   :  { %5482 = vst [vmem:[#allocation44_spill] sm:$0xff] %v5011_v39  ;;  %v1299_v11 = vadd.f32 %v5485_v3, %v1209_v32 }
 0x186   :  { %v2643_v35 = vpack.c.bf16 %v2305_v16, %v2305_v16  ;;  %v2324_v31 = vmax.f32 %v2322_v47, %v2323_v41  ;;  %v2066_v22 = vmax.f32 %v1938_v1, 0.0  ;;  %1248 = vmatmul.bf16.gmra.mxu0 %v5008_v14  ;;  %1426 = vmatmul.bf16.gmra.mxu2 %v5008_v14 }
 0x187   :  { %1564 = vmatmul.bf16.gmra.mxu1 %v5483_v29  ;;  %3466 = vmatmul.msk.bf16.gmra.mxu3 %vm762_vm1, %v5484_v56  ;;  %v1941_v41 = vadd.f32 %v4796_v46, %v1299_v11 }
 0x188   :  { %v2832_v12 = vunpack.c.l.b16 %v2643_v35  ;;  %v2325_v7 = vrot.slane %v2324_v31, 2  ;;  %v2329_v52 = vmax.f32 %v2062_v18, %v2066_v22  ;;  %v5488_v35 = vld [vmem:[#allocation28_spill] sm:$0xff] }
 0x189   :  { %v1387_v26 = vpop.f32.mrf.mxu2 }
 0x18a   :  { %v2326_v21 = vmax.f32 %v2324_v31, %v2325_v7  ;;  %v2330_v49 = vrot.slane %v2329_v52, 4  ;;  %v5020_v27 = vpop.f32.mrf.mxu3  ;;  %v2893_v47 = vsel %vm2883_vm11, %v2832_v12, %v2892_v0  ;;  %v1477_v18 = vadd.f32 %v5488_v35, %v1387_v26 }
 0x18b   :  { %5486 = vst [vmem:[#allocation26_spill] sm:$0xff] %v5020_v27  ;;  %v1211_v51 = vpop.f32.mrf.mxu0  ;;  %v2069_v27 = vmax.f32 %v1941_v41, 0.0 }
 0x18c   :  { %v2327_v43 = vrot.slane %v2326_v21, 1  ;;  %v2331_v16 = vmax.f32 %v2329_v52, %v2330_v49  ;;  %v1301_v1 = vadd.f32 %v4772_v45, %v1211_v51  ;;  %v5025_v39 = vpop.f32.mrf.mxu1  ;;  %v1942_v0 = vadd.f32 %v4810_v40, %v1477_v18  ;;  %v5489_v45 = vld [vmem:[#allocation29_spill] sm:$0xff] }
 0x18d   :  { %5487 = vst [vmem:[#allocation45_spill] sm:$0xff] %v5025_v39 }
 0x18e   :  { %v2328_v22 = vmax.f32 %v2326_v21, %v2327_v43  ;;  %v2332_v32 = vrot.slane %v2331_v16, 2  ;;  %v1945_v31 = vadd.f32 %v4800_v59, %v1301_v1 }
 0x190   :  { %v2646_v7 = vpack.c.bf16 %v2328_v22, %v2328_v22  ;;  %v2333_v3 = vmax.f32 %v2331_v16, %v2332_v32  ;;  %v2073_v14 = vmax.f32 %v1945_v31, 0.0  ;;  %v2070_v22 = vmax.f32 %v1942_v0, 0.0  ;;  %v5491_v31 = vld [vmem:[#allocation15_spill] sm:$0xff] }
 0x191   :  { %v1389_v12 = vpop.f32.mrf.mxu2 }
 0x192   :  { %v2835_v52 = vunpack.c.l.b16 %v2646_v7  ;;  %v2334_v11 = vrot.slane %v2333_v3, 1  ;;  %v2352_v49 = vmax.f32 %v2069_v27, %v2073_v14  ;;  %v1479_v51 = vadd.f32 %v5489_v45, %v1389_v12  ;;  %v5031_v39 = vpop.f32.mrf.mxu3  ;;  %v5492_v7 = vld [vmem:[#allocation11_spill] sm:$0xff]  ;;  %v5493_v14 = vld [vmem:[#allocation30_spill] sm:$0xff] }
 0x193   :  { %5490 = vst [vmem:[#allocation28_spill] sm:$0xff] %v5031_v39  ;;  %v1214_v26 = vpop.f32.mrf.mxu0  ;;  %v5494_v27 = vld [vmem:[#allocation14_spill] sm:$0xff]  ;;  %v5495_v45 = vld [vmem:[#allocation31_spill] sm:$0xff]  ;;  %v5496_v39 = vld [vmem:[#allocation33_spill] sm:$0xff] }
 0x194   :  { %v2335_v21 = vmax.f32 %v2333_v3, %v2334_v11  ;;  %v2353_v43 = vrot.slane %v2352_v49, 4  ;;  %v1946_v1 = vadd.f32 %v4813_v38, %v1479_v51  ;;  %v1530_v35 = vpop.f32.mrf.mxu1  ;;  %v2886_v16 = vsel %vm2885_vm12, %v2835_v52, %v2884_v17 }
 0x195   :  { %v1304_v51 = vadd.f32 %v5495_v45, %v1214_v26 }
 0x196   :  { %v2647_v41 = vpack.c.bf16 %v2335_v21, %v2335_v21  ;;  %v2354_v18 = vmax.f32 %v2352_v49, %v2353_v43  ;;  %v2074_v32 = vmax.f32 %v1946_v1, 0.0  ;;  %1707 = vmatmul.bf16.vlgmr.msrb.gmra.mxu0 %v5491_v31  ;;  %3475 = vmatmul.msk.bf16.vlgmr.msrb.gmra.mxu2 %vm762_vm1, %v5492_v7 }
 0x197   :  { %1569 = vmatmul.bf16.gmra.mxu1 %v5493_v14  ;;  %3467 = vmatmul.msk.bf16.gmra.mxu3 %vm762_vm1, %v5494_v27  ;;  %v1949_v14 = vadd.f32 %v4796_v46, %v1304_v51 }
 0x198   :  { %v2836_v3 = vunpack.c.l.b16 %v2647_v41  ;;  %v2355_v12 = vrot.slane %v2354_v18, 2  ;;  %v2359_v11 = vmax.f32 %v2070_v22, %v2074_v32  ;;  %v5497_v41 = vld [vmem:[#allocation32_spill] sm:$0xff] }
 0x199   :  { %v1392_v17 = vpop.f32.mrf.mxu2  ;;  %v2077_v45 = vmax.f32 %v1949_v14, 0.0 }
 0x19a   :  { %v2356_v52 = vmax.f32 %v2354_v18, %v2355_v12  ;;  %v2360_v0 = vrot.slane %v2359_v11, 4  ;;  %v1619_v49 = vpop.f32.mrf.mxu3  ;;  %v2894_v21 = vsel %vm2885_vm12, %v2836_v3, %v2893_v47  ;;  %v1482_v29 = vadd.f32 %v5497_v41, %v1392_v17  ;;  %v5047_v47 = vld [vmem:[#allocation2 + $0x10] sm:$0xff] }
 0x19b   :  { %v1216_v43 = vpop.f32.mrf.mxu0  ;;  %v1620_v1 = vadd.f32 %v1619_v49, %v1530_v35 }
 0x19c   :  { %v2357_v31 = vrot.slane %v2356_v52, 1  ;;  %v2361_v7 = vmax.f32 %v2359_v11, %v2360_v0  ;;  %v1306_v56 = vadd.f32 %v5496_v39, %v1216_v43  ;;  %v1532_v27 = vpop.f32.mrf.mxu1  ;;  %v1950_v35 = vadd.f32 %v4810_v40, %v1482_v29  ;;  %v5498_v0 = vld [vmem:[#allocation34_spill] sm:$0xff] }
 0x19e   :  { %v2358_v22 = vmax.f32 %v2356_v52, %v2357_v31  ;;  %v2362_v32 = vrot.slane %v2361_v7, 2  ;;  %v1953_v26 = vadd.f32 %v4800_v59, %v1306_v56  ;;  %v5051_v52 = vld [vmem:[#allocation2 + $0x30] sm:$0xff]  ;;  %v1887_v56 = vadd.f32 %v5047_v47, %v1620_v1 }
 0x1a0   :  { %v2650_v18 = vpack.c.bf16 %v2358_v22, %v2358_v22  ;;  %v2363_v12 = vmax.f32 %v2361_v7, %v2362_v32  ;;  %v2081_v33 = vmax.f32 %v1953_v26, 0.0  ;;  %v2078_v26 = vmax.f32 %v1950_v35, 0.0 }
 0x1a1   :  { %v1394_v3 = vpop.f32.mrf.mxu2  ;;  %v2015_v1 = vmax.f32 %v1887_v56, 0.0 }
 0x1a2   :  { %v2839_v11 = vunpack.c.l.b16 %v2650_v18  ;;  %v2364_v51 = vrot.slane %v2363_v12, 1  ;;  %v2382_v39 = vmax.f32 %v2077_v45, %v2081_v33  ;;  %v1484_v49 = vadd.f32 %v5498_v0, %v1394_v3  ;;  %v1621_v17 = vpop.f32.mrf.mxu3  ;;  %v5500_v45 = vld [vmem:[#allocation16_spill] sm:$0xff] }
 0x1a3   :  { %v1219_v43 = vpop.f32.mrf.mxu0  ;;  %v1622_v31 = vadd.f32 %v1621_v17, %v1532_v27  ;;  %v5501_v3 = vld [vmem:[#allocation12_spill] sm:$0xff] }
 0x1a4   :  { %v2365_v14 = vmax.f32 %v2363_v12, %v2364_v51  ;;  %v1954_v7 = vadd.f32 %v4813_v38, %v1484_v49  ;;  %v1535_v41 = vpop.f32.mrf.mxu1  ;;  %v2383_v22 = vrot.slane %v2382_v39, 4  ;;  %v5057_v32 = vsel %vm2887_vm13, %v2839_v11, %v2886_v16  ;;  %v5502_v12 = vld [vmem:[#allocation35_spill] sm:$0xff]  ;;  %v5503_v51 = vld [vmem:[#allocation17_spill] sm:$0xff]  ;;  %v5504_v17 = vld [vmem:[#allocation36_spill] sm:$0xff] }
 0x1a5   :  { %v1891_v29 = vadd.f32 %v5051_v52, %v1622_v31  ;;  %5499 = vst [vmem:[#allocation29_spill] sm:$0xff] %v5057_v32  ;;  %v1309_v16 = vadd.f32 %v5504_v17, %v1219_v43 }
 0x1a6   :  { %v2651_v33 = vpack.c.bf16 %v2365_v14, %v2365_v14  ;;  %v2082_v18 = vmax.f32 %v1954_v7, 0.0  ;;  %1712 = vmatmul.bf16.gmra.mxu0 %v5500_v45  ;;  %3476 = vmatmul.msk.bf16.gmra.mxu2 %vm762_vm1, %v5501_v3  ;;  %v2384_v11 = vmax.f32 %v2382_v39, %v2383_v22 }
 0x1a7   :  { %v2019_v27 = vmax.f32 %v1891_v29, 0.0  ;;  %1574 = vmatmul.bf16.gmra.mxu1 %v5502_v12  ;;  %3468 = vmatmul.msk.bf16.gmra.mxu3 %vm762_vm1, %v5503_v51  ;;  %v1957_v29 = vadd.f32 %v4796_v46, %v1309_v16  ;;  %v5506_v12 = vld [vmem:[#allocation38_spill] sm:$0xff] }
 0x1a8   :  { %v2840_v0 = vunpack.c.l.b16 %v2651_v33  ;;  %v2389_v49 = vmax.f32 %v2078_v26, %v2082_v18  ;;  %v2385_v51 = vrot.slane %v2384_v11, 2  ;;  %v5507_v26 = vld [vmem:[#allocation37_spill] sm:$0xff] }
 0x1a9   :  { %v2155_v31 = vmax.f32 %v2015_v1, %v2019_v27  ;;  %v1397_v35 = vpop.f32.mrf.mxu2  ;;  %v2085_v22 = vmax.f32 %v1957_v29, 0.0 }
 0x1aa   :  { %v1624_v14 = vpop.f32.mrf.mxu3  ;;  %v5067_v7 = vsel %vm2887_vm13, %v2840_v0, %v2894_v21  ;;  %v2390_v45 = vrot.slane %v2389_v49, 4  ;;  %v1487_v18 = vadd.f32 %v5507_v26, %v1397_v35  ;;  %v2386_v27 = vmax.f32 %v2384_v11, %v2385_v51  ;;  %v5509_v26 = vld [vmem:[#allocation39_spill] sm:$0xff] }
 0x1ab   :  { %5505 = vst [vmem:[#allocation15_spill] sm:$0xff] %v5067_v7  ;;  %v1221_v3 = vpop.f32.mrf.mxu0  ;;  %v1625_v56 = vadd.f32 %v1624_v14, %v1535_v41  ;;  %v2156_v33 = vrot.slane %v2155_v31, 4 }
 0x1ac   :  { %v1311_v32 = vadd.f32 %v5506_v12, %v1221_v3  ;;  %v1537_v37 = vpop.f32.mrf.mxu1  ;;  %v2391_v43 = vmax.f32 %v2389_v49, %v2390_v45  ;;  %v1958_v17 = vadd.f32 %v4810_v40, %v1487_v18  ;;  %v2387_v49 = vrot.slane %v2386_v27, 1 }
 0x1ad   :  { %v2157_v21 = vmax.f32 %v2155_v31, %v2156_v33  ;;  %v1895_v3 = vadd.f32 %v5047_v47, %v1625_v56 }
 0x1ae   :  { %v1961_v39 = vadd.f32 %v4800_v59, %v1311_v32  ;;  %v2392_v12 = vrot.slane %v2391_v43, 2  ;;  %v2086_v11 = vmax.f32 %v1958_v17, 0.0  ;;  %v2388_v18 = vmax.f32 %v2386_v27, %v2387_v49 }
 0x1af   :  { %v2158_v45 = vrot.slane %v2157_v21, 2  ;;  %v2023_v56 = vmax.f32 %v1895_v3, 0.0 }
 0x1b0   :  { %v2089_v1 = vmax.f32 %v1961_v39, 0.0 }
 0x1b1   :  { %v1399_v0 = vpop.f32.mrf.mxu2  ;;  %v2159_v39 = vmax.f32 %v2157_v21, %v2158_v45  ;;  %v5511_v21 = vld [vmem:[#allocation40_spill] sm:$0xff] }
 0x1b2   :  { %v2412_v41 = vmax.f32 %v2085_v22, %v2089_v1  ;;  %v1489_v16 = vadd.f32 %v4844_v19, %v1399_v0  ;;  %v1626_v14 = vpop.f32.mrf.mxu3  ;;  %v2393_v19 = vmax.f32 %v2391_v43, %v2392_v12 }
 0x1b3   :  { %v1224_v7 = vpop.f32.mrf.mxu0  ;;  %v1627_v20 = vadd.f32 %v1626_v14, %v1537_v37  ;;  %v5508_v37 = vld [vmem:[#allocation18_spill] sm:$0xff] }
 0x1b4   :  { %v2413_v35 = vrot.slane %v2412_v41, 4  ;;  %v1962_v59 = vadd.f32 %v4813_v38, %v1489_v16  ;;  %v1540_v32 = vpop.f32.mrf.mxu1 }
 0x1b5   :  { %v1899_v51 = vadd.f32 %v5051_v52, %v1627_v20  ;;  %v1314_v20 = vadd.f32 %v5509_v26, %v1224_v7  ;;  %v2160_v7 = vrot.slane %v2159_v39, 1 }
 0x1b6   :  { %v2414_v31 = vmax.f32 %v2412_v41, %v2413_v35  ;;  %v2090_v40 = vmax.f32 %v1962_v59, 0.0  ;;  %1717 = vmatmul.bf16.gmra.mxu0 %v4421_v5  ;;  %3477 = vmatmul.msk.bf16.gmra.mxu2 %vm762_vm1, %v3944_v34  ;;  %v2394_v34 = vrot.slane %v2393_v19, 1  ;;  %v5510_v35 = vld [vmem:[#allocation41_spill] sm:$0xff] }
 0x1b7   :  { %v2027_v29 = vmax.f32 %v1899_v51, 0.0  ;;  %1579 = vmatmul.bf16.gmra.mxu1 %v4847_v44  ;;  %3469 = vmatmul.msk.bf16.gmra.mxu3 %vm762_vm1, %v5508_v37  ;;  %v1965_v3 = vadd.f32 %v4796_v46, %v1314_v20 }
 0x1b8   :  { %v2415_v38 = vrot.slane %v2414_v31, 2  ;;  %v2419_v33 = vmax.f32 %v2086_v11, %v2090_v40  ;;  %v2654_v11 = vpack.c.bf16 %v2388_v18, %v2388_v18  ;;  %v5088_v40 = vld [vmem:[#allocation2 + $0x20] sm:$0xff]  ;;  %v5091_v18 = vld [vmem:[#allocation2 + $0x8] sm:$0xff] }
 0x1b9   :  { %v2186_v22 = vmax.f32 %v2023_v56, %v2027_v29  ;;  %v1402_v1 = vpop.f32.mrf.mxu2  ;;  %v2395_v29 = vmax.f32 %v2393_v19, %v2394_v34  ;;  %v2093_v26 = vmax.f32 %v1965_v3, 0.0 }
 0x1ba   :  { %v2416_v5 = vmax.f32 %v2414_v31, %v2415_v38  ;;  %v2420_v0 = vrot.slane %v2419_v33, 4  ;;  %v1629_v17 = vpop.f32.mrf.mxu3  ;;  %v1492_v49 = vadd.f32 %v5511_v21, %v1402_v1  ;;  %v2843_v20 = vunpack.c.l.b16 %v2654_v11 }
 0x1bb   :  { %v2187_v43 = vrot.slane %v2186_v22, 4  ;;  %v1226_v41 = vpop.f32.mrf.mxu0  ;;  %v1630_v16 = vadd.f32 %v1629_v17, %v1540_v32  ;;  %v2655_v19 = vpack.c.bf16 %v2395_v29, %v2395_v29 }
 0x1bc   :  { %v2417_v14 = vrot.slane %v2416_v5, 1  ;;  %v2421_v12 = vmax.f32 %v2419_v33, %v2420_v0  ;;  %v1316_v59 = vadd.f32 %v5510_v35, %v1226_v41  ;;  %v1542_v51 = vpop.f32.mrf.mxu1  ;;  %v2161_v0 = vmax.f32 %v2159_v39, %v2160_v7 }
 0x1bd   :  { %v2188_v27 = vmax.f32 %v2186_v22, %v2187_v43  ;;  %v1966_v22 = vadd.f32 %v5091_v18, %v1492_v49 }
 0x1be   :  { %v2418_v45 = vmax.f32 %v2416_v5, %v2417_v14  ;;  %v2422_v31 = vrot.slane %v2421_v12, 2  ;;  %v1969_v56 = vadd.f32 %v5088_v40, %v1316_v59 }
 0x1bf   :  { %v2189_v32 = vrot.slane %v2188_v27, 2  ;;  %v2094_v29 = vmax.f32 %v1966_v22, 0.0 }
 0x1c0   :  { %v2658_v38 = vpack.c.bf16 %v2418_v45, %v2418_v45  ;;  %v2423_v33 = vmax.f32 %v2421_v12, %v2422_v31  ;;  %v2097_v46 = vmax.f32 %v1969_v56, 0.0  ;;  %v1903_v12 = vadd.f32 %v5047_v47, %v1630_v16 }
 0x1c1   :  { %v2190_v17 = vmax.f32 %v2188_v27, %v2189_v32  ;;  %v1404_v1 = vpop.f32.mrf.mxu2  ;;  %v5099_v27 = vld [vmem:[#allocation2 + $0x28] sm:$0xff]  ;;  %v2624_v45 = vpack.c.bf16 %v2161_v0, %v2161_v0 }
 0x1c2   :  { %v2847_v5 = vunpack.c.l.b16 %v2658_v38  ;;  %v2424_v43 = vrot.slane %v2423_v33, 1  ;;  %v2442_v41 = vmax.f32 %v2093_v26, %v2097_v46  ;;  %v1494_v14 = vadd.f32 %v4877_v2, %v1404_v1  ;;  %v1631_v35 = vpop.f32.mrf.mxu3  ;;  %v5512_v46 = vld [vmem:[#allocation19_spill] sm:$0xff] }
 0x1c3   :  { %v2191_v34 = vrot.slane %v2190_v17, 1  ;;  %v1229_v3 = vpop.f32.mrf.mxu0  ;;  %v1632_v59 = vadd.f32 %v1631_v35, %v1542_v51  ;;  %v2844_v51 = vunpack.c.l.b16 %v2655_v19  ;;  %v2813_v1 = vunpack.c.l.b16 %v2624_v45 }
 0x1c4   :  { %v5097_v39 = vsel %vm2875_vm7, %v2847_v5, %v2843_v20  ;;  %v2425_v11 = vmax.f32 %v2423_v33, %v2424_v43  ;;  %v2443_v7 = vrot.slane %v2442_v41, 4  ;;  %v1970_v21 = vadd.f32 %v5099_v27, %v1494_v14  ;;  %v1545_v49 = vpop.f32.mrf.mxu1 }
 0x1c5   :  { %v2192_v31 = vmax.f32 %v2190_v17, %v2191_v34  ;;  %v1907_v2 = vadd.f32 %v5051_v52, %v1632_v59  ;;  %v2031_v33 = vmax.f32 %v1903_v12, 0.0  ;;  %v1319_v22 = vadd.f32 %v4884_v58, %v1229_v3 }
 0x1c6   :  { %v2659_v56 = vpack.c.bf16 %v2425_v11, %v2425_v11  ;;  %v2444_v32 = vmax.f32 %v2442_v41, %v2443_v7  ;;  %v2098_v16 = vmax.f32 %v1970_v21, 0.0  ;;  %1722 = vmatmul.bf16.gmra.mxu0 %v4492_v50  ;;  %3478 = vmatmul.msk.bf16.gmra.mxu2 %vm762_vm1, %v3974_v60  ;;  %v5112_v21 = vld [vmem:[#allocation2] sm:$0xff] }
 0x1c7   :  { %v2628_v38 = vpack.c.bf16 %v2192_v31, %v2192_v31  ;;  %v2035_v26 = vmax.f32 %v1907_v2, 0.0  ;;  %1584 = vmatmul.bf16.gmra.mxu1 %v4880_v8  ;;  %3470 = vmatmul.msk.bf16.gmra.mxu3 %vm762_vm1, %v5512_v46  ;;  %v1973_v58 = vadd.f32 %v5112_v21, %v1319_v22 }
 0x1c8   :  { %v2848_v20 = vunpack.c.l.b16 %v2659_v56  ;;  %v2445_v0 = vrot.slane %v2444_v32, 2  ;;  %v2449_v17 = vmax.f32 %v2094_v29, %v2098_v16 }
 0x1c9   :  { %v2817_v5 = vunpack.c.l.b16 %v2628_v38  ;;  %v2216_v50 = vmax.f32 %v2031_v33, %v2035_v26  ;;  %v1407_v43 = vpop.f32.mrf.mxu2 }
 0x1ca   :  { %v2917_v60 = vsel %vm2875_vm7, %v2848_v20, %v2844_v51  ;;  %v2446_v41 = vmax.f32 %v2444_v32, %v2445_v0  ;;  %v2450_v14 = vrot.slane %v2449_v17, 4  ;;  %v1634_v35 = vpop.f32.mrf.mxu3  ;;  %v1497_v2 = vadd.f32 %v4893_v57, %v1407_v43 }
 0x1cb   :  { %v2896_v19 = vsel %vm2875_vm7, %v2817_v5, %v2813_v1  ;;  %v2217_v34 = vrot.slane %v2216_v50, 4  ;;  %v1231_v12 = vpop.f32.mrf.mxu0  ;;  %v1635_v59 = vadd.f32 %v1634_v35, %v1545_v49  ;;  %v2101_v49 = vmax.f32 %v1973_v58, 0.0 }
 0x1cc   :  { %v2447_v11 = vrot.slane %v2446_v41, 1  ;;  %v2451_v7 = vmax.f32 %v2449_v17, %v2450_v14  ;;  %v1321_v3 = vadd.f32 %v4899_v9, %v1231_v12  ;;  %v1547_v45 = vpop.f32.mrf.mxu1  ;;  %v1974_v20 = vadd.f32 %v5091_v18, %v1497_v2 }
 0x1cd   :  { %v2218_v31 = vmax.f32 %v2216_v50, %v2217_v34  ;;  %v1911_v50 = vadd.f32 %v5047_v47, %v1635_v59 }
 0x1ce   :  { %v2448_v56 = vmax.f32 %v2446_v41, %v2447_v11  ;;  %v2452_v29 = vrot.slane %v2451_v7, 2  ;;  %v1977_v32 = vadd.f32 %v5088_v40, %v1321_v3 }
 0x1cf   :  { %v2219_v16 = vrot.slane %v2218_v31, 2 }
 0x1d0   :  { %v2662_v51 = vpack.c.bf16 %v2448_v56, %v2448_v56  ;;  %v2453_v38 = vmax.f32 %v2451_v7, %v2452_v29  ;;  %v2105_v33 = vmax.f32 %v1977_v32, 0.0  ;;  %v5513_v56 = vld [vmem:[#allocation20_spill] sm:$0xff] }
 0x1d1   :  { %v2220_v26 = vmax.f32 %v2218_v31, %v2219_v16  ;;  %v1409_v0 = vpop.f32.mrf.mxu2 }
 0x1d2   :  { %v2851_v17 = vunpack.c.l.b16 %v2662_v51  ;;  %v2454_v22 = vrot.slane %v2453_v38, 1  ;;  %v2472_v9 = vmax.f32 %v2101_v49, %v2105_v33  ;;  %v1499_v1 = vadd.f32 %v4906_v25, %v1409_v0  ;;  %v1636_v5 = vpop.f32.mrf.mxu3 }
 0x1d3   :  { %v2221_v57 = vrot.slane %v2220_v26, 1  ;;  %v5121_v43 = vpop.f32.mrf.mxu0  ;;  %v1637_v41 = vadd.f32 %v1636_v5, %v1547_v45  ;;  %v2102_v25 = vmax.f32 %v1974_v20, 0.0  ;;  %v2039_v45 = vmax.f32 %v1911_v50, 0.0 }
 0x1d4   :  { %v2911_v14 = vsel %vm2877_vm8, %v2851_v17, %v5097_v39  ;;  %v2455_v35 = vmax.f32 %v2453_v38, %v2454_v22  ;;  %v2473_v34 = vrot.slane %v2472_v9, 4  ;;  %v1978_v12 = vadd.f32 %v5099_v27, %v1499_v1  ;;  %v1550_v11 = vpop.f32.mrf.mxu1 }
 0x1d5   :  { %v2222_v7 = vmax.f32 %v2220_v26, %v2221_v57  ;;  %v1915_v58 = vadd.f32 %v5051_v52, %v1637_v41 }
 0x1d6   :  { %v2663_v3 = vpack.c.bf16 %v2455_v35, %v2455_v35  ;;  %v2474_v31 = vmax.f32 %v2472_v9, %v2473_v34  ;;  %v2106_v2 = vmax.f32 %v1978_v12, 0.0  ;;  %1727 = vmatmul.bf16.gmra.mxu0 %v4551_v6  ;;  %3479 = vmatmul.msk.bf16.gmra.mxu2 %vm762_vm1, %v4023_v30 }
 0x1d7   :  { %v2632_v59 = vpack.c.bf16 %v2222_v7, %v2222_v7  ;;  %v2043_v39 = vmax.f32 %v1915_v58, 0.0  ;;  %1589 = vmatmul.bf16.gmra.mxu1 %v4909_v15  ;;  %3471 = vmatmul.msk.bf16.gmra.mxu3 %vm762_vm1, %v5513_v56 }
 0x1d8   :  { %v2852_v29 = vunpack.c.l.b16 %v2663_v3  ;;  %v2475_v32 = vrot.slane %v2474_v31, 2  ;;  %v2479_v16 = vmax.f32 %v2102_v25, %v2106_v2 }
 0x1d9   :  { %v2821_v51 = vunpack.c.l.b16 %v2632_v59  ;;  %v2246_v38 = vmax.f32 %v2039_v45, %v2043_v39  ;;  %v5133_v49 = vpop.f32.mrf.mxu2 }
 0x1da   :  { %v2918_v6 = vsel %vm2877_vm8, %v2852_v29, %v2917_v60  ;;  %v2476_v33 = vmax.f32 %v2474_v31, %v2475_v32  ;;  %v2480_v26 = vrot.slane %v2479_v16, 4  ;;  %v1639_v30 = vpop.f32.mrf.mxu3 }
 0x1db   :  { %v2897_v20 = vsel %vm2877_vm8, %v2821_v51, %v2896_v19  ;;  %v2247_v0 = vrot.slane %v2246_v38, 4  ;;  %v1236_v17 = vpop.f32.mrf.mxu0  ;;  %v1640_v22 = vadd.f32 %v1639_v30, %v1550_v11 }
 0x1dc   :  { %v2477_v9 = vrot.slane %v2476_v33, 1  ;;  %v2481_v1 = vmax.f32 %v2479_v16, %v2480_v26  ;;  %v1552_v5 = vpop.f32.mrf.mxu1  ;;  %v5514_v26 = vld [vmem:[#allocation21_spill] sm:$0xff] }
 0x1dd   :  { %v2248_v57 = vmax.f32 %v2246_v38, %v2247_v0  ;;  %v1919_v19 = vadd.f32 %v5047_v47, %v1640_v22 }
 0x1de   :  { %v2478_v50 = vmax.f32 %v2476_v33, %v2477_v9  ;;  %v2482_v41 = vrot.slane %v2481_v1, 2 }
 0x1df   :  { %v2249_v35 = vrot.slane %v2248_v57, 2  ;;  %v2047_v38 = vmax.f32 %v1919_v19, 0.0  ;;  %v3674_v19 = vld [vmem:[#allocation5 + $0x70] sm:$0xff] }
 0x1e0   :  { %v2666_v34 = vpack.c.bf16 %v2478_v50, %v2478_v50  ;;  %v2483_v12 = vmax.f32 %v2481_v1, %v2482_v41 }
 0x1e1   :  { %v2250_v7 = vmax.f32 %v2248_v57, %v2249_v35  ;;  %v1414_v58 = vpop.f32.mrf.mxu2  ;;  %v3666_v35 = vld [vmem:[#allocation5 + $0x30] sm:$0xff] }
 0x1e2   :  { %v2855_v60 = vunpack.c.l.b16 %v2666_v34  ;;  %v2484_v3 = vrot.slane %v2483_v12, 1  ;;  %v1641_v25 = vpop.f32.mrf.mxu3  ;;  %v1324_v34 = vadd.f32 %v4913_v36, %v5121_v43 }
 0x1e3   :  { %v2251_v31 = vrot.slane %v2250_v7, 1  ;;  %v1239_v2 = vpop.f32.mrf.mxu0  ;;  %v1642_v59 = vadd.f32 %v1641_v25, %v1552_v5 }
 0x1e4   :  { %v5139_v11 = vsel %vm2879_vm9, %v2855_v60, %v2911_v14  ;;  %v2485_v45 = vmax.f32 %v2483_v12, %v2484_v3  ;;  %v1555_v39 = vpop.f32.mrf.mxu1  ;;  %v3667_v14 = vld [vmem:[#allocation5 + $0x38] sm:$0xff]  ;;  %v1329_v36 = vadd.f32 %v4948_v62, %v1239_v2  ;;  %v1502_v62 = vadd.f32 %v4928_v42, %v5133_v49 }
 0x1e5   :  { %v2252_v29 = vmax.f32 %v2250_v7, %v2251_v31  ;;  %v1923_v32 = vadd.f32 %v5051_v52, %v1642_v59  ;;  %3123 = vmatpush.bf16.msra.mxu1 %v3667_v14  ;;  %v3675_v60 = vld [vmem:[#allocation5 + $0x78] sm:$0xff] }
 0x1e6   :  { %v2667_v16 = vpack.c.bf16 %v2485_v45, %v2485_v45  ;;  %1732 = vmatmul.bf16.gmra.mxu0 %v4619_v13  ;;  %3480 = vmatmul.msk.bf16.gmra.mxu2 %vm762_vm1, %v4108_v28  ;;  %v1326_v13 = vadd.f32 %v4934_v10, %v1236_v17  ;;  %v3665_v10 = vld [vmem:[#allocation5 + $0x28] sm:$0xff]  ;;  %v1981_v17 = vadd.f32 %v5112_v21, %v1324_v34  ;;  %v3672_v34 = vld [vmem:[#allocation5 + $0x60] sm:$0xff] }
 0x1e7   :  { %v2636_v51 = vpack.c.bf16 %v2252_v29, %v2252_v29  ;;  %v2051_v33 = vmax.f32 %v1923_v32, 0.0  ;;  %1594 = vmatmul.bf16.gmra.mxu1 %v4944_v63  ;;  %3472 = vmatmul.msk.bf16.gmra.mxu3 %vm762_vm1, %v5514_v26 }
 0x1e8   :  { %v2856_v30 = vunpack.c.l.b16 %v2667_v16  ;;  %3137 = vmatpush.bf16.msra.mxu3 %v3675_v60  ;;  %v3664_v16 = vld [vmem:[#allocation5 + $0x20] sm:$0xff] }
 0x1e9   :  { %v2825_v0 = vunpack.c.l.b16 %v2636_v51  ;;  %v2276_v22 = vmax.f32 %v2047_v38, %v2051_v33  ;;  %v1417_v9 = vpop.f32.mrf.mxu2  ;;  %3124 = vmatpush.bf16.msra.mxu1 %v3666_v35  ;;  %v2109_v51 = vmax.f32 %v1981_v17, 0.0  ;;  %v1504_v38 = vadd.f32 %v4941_v4, %v1414_v58  ;;  %v3662_v17 = vld [vmem:[#allocation5 + $0x10] sm:$0xff] }
 0x1ea   :  { %v5149_v1 = vsel %vm2879_vm9, %v2856_v30, %v2918_v6  ;;  %v1644_v28 = vpop.f32.mrf.mxu3  ;;  %v1985_v6 = vadd.f32 %v5088_v40, %v1326_v13  ;;  %v1989_v4 = vadd.f32 %v5112_v21, %v1329_v36 }
 0x1eb   :  { %v5153_v5 = vsel %vm2879_vm9, %v2825_v0, %v2897_v20  ;;  %v2277_v57 = vrot.slane %v2276_v22, 4  ;;  %v1241_v50 = vpop.f32.mrf.mxu0  ;;  %v1645_v41 = vadd.f32 %v1644_v28, %v1555_v39  ;;  %v3673_v0 = vld [vmem:[#allocation5 + $0x68] sm:$0xff]  ;;  %v1986_v42 = vadd.f32 %v5099_v27, %v1504_v38 }
 0x1ec   :  { %v1557_v12 = vpop.f32.mrf.mxu1  ;;  %v1331_v25 = vadd.f32 %v4963_v23, %v1241_v50  ;;  %v2113_v59 = vmax.f32 %v1985_v6, 0.0  ;;  %3138 = vmatpush.bf16.msra.mxu3 %v3674_v19  ;;  %v3663_v50 = vld [vmem:[#allocation5 + $0x18] sm:$0xff]  ;;  %v5516_v19 = vld [vmem:[#allocation43_spill] sm:$0xff] }
 0x1ed   :  { %v2278_v7 = vmax.f32 %v2276_v22, %v2277_v57  ;;  %3125 = vmatpush.bf16.msra.mxu1 %v3665_v10  ;;  %v1927_v39 = vadd.f32 %v5047_v47, %v1645_v41  ;;  %v5515_v57 = vld [vmem:[#allocation22_spill] sm:$0xff] }
 0x1ee   :  { %v1993_v23 = vadd.f32 %v5088_v40, %v1331_v25  ;;  %v2502_v2 = vmax.f32 %v2109_v51, %v2113_v59 }
 0x1ef   :  { %v2279_v3 = vrot.slane %v2278_v7, 2  ;;  %v2055_v13 = vmax.f32 %v1927_v39, 0.0  ;;  %v3671_v39 = vld [vmem:[#allocation5 + $0x58] sm:$0xff] }
 0x1f0   :  { %3139 = vmatpush.bf16.msra.mxu3 %v3673_v0 }
 0x1f1   :  { %v2280_v20 = vmax.f32 %v2278_v7, %v2279_v3  ;;  %v1419_v31 = vpop.f32.mrf.mxu2  ;;  %3126 = vmatpush.bf16.msra.mxu1 %v3664_v16  ;;  %v2503_v7 = vrot.slane %v2502_v2, 4  ;;  %v2117_v3 = vmax.f32 %v1989_v4, 0.0 }
 0x1f2   :  { %v1646_v45 = vpop.f32.mrf.mxu3  ;;  %v1509_v22 = vadd.f32 %v4976_v54, %v1419_v31  ;;  %v1507_v54 = vadd.f32 %v4957_v53, %v1417_v9 }
 0x1f3   :  { %v2281_v43 = vrot.slane %v2280_v20, 1  ;;  %v1244_v29 = vpop.f32.mrf.mxu0  ;;  %v1647_v32 = vadd.f32 %v1646_v45, %v1557_v12  ;;  %v1982_v12 = vadd.f32 %v5091_v18, %v1502_v62  ;;  %v2504_v38 = vmax.f32 %v2502_v2, %v2503_v7 }
 0x1f4   :  { %v1560_v33 = vpop.f32.mrf.mxu1  ;;  %v1994_v60 = vadd.f32 %v5099_v27, %v1509_v22  ;;  %v1990_v25 = vadd.f32 %v5091_v18, %v1507_v54  ;;  %3140 = vmatpush.bf16.msra.mxu3 %v3672_v34  ;;  %v5518_v54 = vld [vmem:[#allocation23_spill] sm:$0xff]  ;;  %v3660_v34 = vld [vmem:[#allocation5] sm:$0xff] }
 0x1f5   :  { %v2282_v14 = vmax.f32 %v2280_v20, %v2281_v43  ;;  %v1931_v30 = vadd.f32 %v5051_v52, %v1647_v32  ;;  %3127 = vmatpush.bf16.msra.mxu1 %v3663_v50  ;;  %v2114_v20 = vmax.f32 %v1986_v42, 0.0  ;;  %v5517_v32 = vld [vmem:[#allocation42_spill] sm:$0xff] }
 0x1f6   :  { %1737 = vmatmul.bf16.gmra.mxu0 %v4696_v61  ;;  %3481 = vmatmul.msk.bf16.gmra.mxu2 %vm762_vm1, %v4187_v24  ;;  %v1334_v61 = vadd.f32 %v4983_v48, %v1244_v29  ;;  %v2121_v24 = vmax.f32 %v1993_v23, 0.0  ;;  %v2110_v29 = vmax.f32 %v1982_v12, 0.0  ;;  %v2505_v12 = vrot.slane %v2504_v38, 2 }
 0x1f7   :  { %v2640_v58 = vpack.c.bf16 %v2282_v14, %v2282_v14  ;;  %v2059_v28 = vmax.f32 %v1931_v30, 0.0  ;;  %1599 = vmatmul.bf16.gmra.mxu1 %v4979_v55  ;;  %3473 = vmatmul.msk.bf16.gmra.mxu3 %vm762_vm1, %v5515_v57  ;;  %v3661_v14 = vld [vmem:[#allocation5 + $0x8] sm:$0xff]  ;;  %v2118_v30 = vmax.f32 %v1990_v25, 0.0 }
 0x1f8   :  { %v1997_v31 = vadd.f32 %v5112_v21, %v1334_v61  ;;  %v2532_v36 = vmax.f32 %v2117_v3, %v2121_v24  ;;  %v2509_v23 = vmax.f32 %v2110_v29, %v2114_v20  ;;  %3141 = vmatpush.bf16.msra.mxu3 %v3671_v39  ;;  %v3669_v20 = vld [vmem:[#allocation5 + $0x48] sm:$0xff] }
 0x1f9   :  { %v2829_v49 = vunpack.c.l.b16 %v2640_v58  ;;  %v2306_v41 = vmax.f32 %v2055_v13, %v2059_v28  ;;  %v1422_v35 = vpop.f32.mrf.mxu2  ;;  %3128 = vmatpush.bf16.msra.mxu1 %v3662_v17  ;;  %v3670_v13 = vld [vmem:[#allocation5 + $0x50] sm:$0xff] }
 0x1fa   :  { %v1649_v6 = vpop.f32.mrf.mxu3  ;;  %v1512_v16 = vadd.f32 %v5517_v32, %v1422_v35  ;;  %v2125_v0 = vmax.f32 %v1997_v31, 0.0  ;;  %v2533_v22 = vrot.slane %v2532_v36, 4  ;;  %v2510_v7 = vrot.slane %v2509_v23, 4 }
 0x1fb   :  { %v5182_v10 = vsel %vm2881_vm10, %v2829_v49, %v5153_v5  ;;  %v2307_v53 = vrot.slane %v2306_v41, 4  ;;  %v1246_v48 = vpop.f32.mrf.mxu0  ;;  %v1650_v9 = vadd.f32 %v1649_v6, %v1560_v33  ;;  %v2122_v5 = vmax.f32 %v1994_v60, 0.0 }
 0x1fc   :  { %v1336_v59 = vadd.f32 %v5516_v19, %v1246_v48  ;;  %v1562_v45 = vpop.f32.mrf.mxu1  ;;  %v1998_v50 = vadd.f32 %v5091_v18, %v1512_v16  ;;  %3142 = vmatpush.bf16.msra.mxu3 %v3670_v13  ;;  %v2506_v32 = vmax.f32 %v2504_v38, %v2505_v12  ;;  %v2511_v16 = vmax.f32 %v2509_v23, %v2510_v7 }
 0x1fd   :  { %v2308_v43 = vmax.f32 %v2306_v41, %v2307_v53  ;;  %3129 = vmatpush.bf16.msra.mxu1 %v3661_v14  ;;  %v2539_v28 = vmax.f32 %v2118_v30, %v2122_v5  ;;  %v1935_v24 = vadd.f32 %v5047_v47, %v1650_v9  ;;  %v2534_v53 = vmax.f32 %v2532_v36, %v2533_v22  ;;  %v5519_v9 = vld [vmem:[#allocation25_spill] sm:$0xff]  ;;  %v5521_v5 = vld [vmem:[#allocation24_spill] sm:$0xff]  ;;  %v5522_v36 = vld [vmem:[#allocation27_spill] sm:$0xff] }
 0x1fe   :  { %v2001_v51 = vadd.f32 %v5088_v40, %v1336_v59  ;;  %v2126_v31 = vmax.f32 %v1998_v50, 0.0  ;;  %v5520_v59 = vld [vmem:[#allocation13_spill] sm:$0xff] }
 0x1ff   :  { %v2309_v33 = vrot.slane %v2308_v43, 2  ;;  %v2540_v25 = vrot.slane %v2539_v28, 4  ;;  %v2063_v39 = vmax.f32 %v1935_v24, 0.0  ;;  %v2535_v30 = vrot.slane %v2534_v53, 2 }
 0x200   :  { %v2129_v62 = vmax.f32 %v2001_v51, 0.0  ;;  %3143 = vmatpush.bf16.msra.mxu3 %v3669_v20 }
 0x201   :  { %v2310_v4 = vmax.f32 %v2308_v43, %v2309_v33  ;;  %v1424_v58 = vpop.f32.mrf.mxu2  ;;  %3130 = vmatpush.bf16.msra.mxu1 %v3660_v34  ;;  %v5523_v33 = vld [vmem:[#allocation44_spill] sm:$0xff]  ;;  %v2536_v12 = vmax.f32 %v2534_v53, %v2535_v30 }
 0x202   :  { %v2562_v42 = vmax.f32 %v2125_v0, %v2129_v62  ;;  %v1514_v61 = vadd.f32 %v5518_v54, %v1424_v58  ;;  %v1651_v49 = vpop.f32.mrf.mxu3  ;;  %v2541_v58 = vmax.f32 %v2539_v28, %v2540_v25 }
 0x203   :  { %v2311_v2 = vrot.slane %v2310_v4, 1  ;;  %v1249_v41 = vpop.f32.mrf.mxu0  ;;  %v1652_v35 = vadd.f32 %v1651_v49, %v1562_v45  ;;  %v2507_v49 = vrot.slane %v2506_v32, 1 }
 0x204   :  { %v2563_v60 = vrot.slane %v2562_v42, 4  ;;  %v2002_v6 = vadd.f32 %v5099_v27, %v1514_v61  ;;  %v1565_v3 = vpop.f32.mrf.mxu1  ;;  %v1339_v14 = vadd.f32 %v5523_v33, %v1249_v41  ;;  %v5524_v41 = vld [vmem:[#allocation45_spill] sm:$0xff] }
 0x205   :  { %v2312_v48 = vmax.f32 %v2310_v4, %v2311_v2  ;;  %v1939_v17 = vadd.f32 %v5051_v52, %v1652_v35  ;;  %v3668_v4 = vld [vmem:[#allocation5 + $0x40] sm:$0xff]  ;;  %v2512_v2 = vrot.slane %v2511_v16, 2  ;;  %v2508_v25 = vmax.f32 %v2506_v32, %v2507_v49 }
 0x206   :  { %v2130_v19 = vmax.f32 %v2002_v6, 0.0  ;;  %1742 = vmatmul.bf16.gmra.mxu0 %v5519_v9  ;;  %3482 = vmatmul.msk.bf16.gmra.mxu2 %vm762_vm1, %v5520_v59  ;;  %v2564_v43 = vmax.f32 %v2562_v42, %v2563_v60  ;;  %v2005_v24 = vadd.f32 %v5112_v21, %v1339_v14  ;;  %v2542_v60 = vrot.slane %v2541_v58, 2  ;;  %v5525_v6 = vld [vmem:[#allocation26_spill] sm:$0xff] }
 0x207   :  { %v2644_v45 = vpack.c.bf16 %v2312_v48, %v2312_v48  ;;  %v2067_v29 = vmax.f32 %v1939_v17, 0.0  ;;  %1604 = vmatmul.bf16.gmra.mxu1 %v5521_v5  ;;  %3474 = vmatmul.msk.bf16.gmra.mxu3 %vm762_vm1, %v5522_v36  ;;  %v2537_v9 = vrot.slane %v2536_v12, 1 }
 0x208   :  { %v2569_v51 = vmax.f32 %v2126_v31, %v2130_v19  ;;  %v2565_v54 = vrot.slane %v2564_v43, 2  ;;  %3144 = vmatpush.bf16.msra.mxu3 %v3668_v4  ;;  %v2133_v31 = vmax.f32 %v2005_v24, 0.0  ;;  %v5527_v24 = vld [vmem:[#allocation30_spill] sm:$0xff] }
 0x209   :  { %v2833_v0 = vunpack.c.l.b16 %v2644_v45  ;;  %v2336_v62 = vmax.f32 %v2063_v39, %v2067_v29  ;;  %v1427_v22 = vpop.f32.mrf.mxu2  ;;  %v2543_v39 = vmax.f32 %v2541_v58, %v2542_v60 }
 0x20a   :  { %v2570_v13 = vrot.slane %v2569_v51, 4  ;;  %v1654_v50 = vpop.f32.mrf.mxu3  ;;  %v1517_v48 = vadd.f32 %v5525_v6, %v1427_v22  ;;  %v2566_v17 = vmax.f32 %v2564_v43, %v2565_v54 }
 0x20b   :  { %v5203_v42 = vsel %vm2883_vm11, %v2833_v0, %v5182_v10  ;;  %v2337_v61 = vrot.slane %v2336_v62, 4  ;;  %v1251_v38 = vpop.f32.mrf.mxu0  ;;  %v1655_v23 = vadd.f32 %v1654_v50, %v1565_v3  ;;  %v2513_v3 = vmax.f32 %v2511_v16, %v2512_v2 }
 0x20c   :  { %v1341_v35 = vadd.f32 %v5524_v41, %v1251_v38  ;;  %v1567_v34 = vpop.f32.mrf.mxu1  ;;  %v2571_v28 = vmax.f32 %v2569_v51, %v2570_v13  ;;  %v2006_v53 = vadd.f32 %v5091_v18, %v1517_v48  ;;  %v5526_v51 = vld [vmem:[#allocation28_spill] sm:$0xff]  ;;  %v2567_v30 = vrot.slane %v2566_v17, 1 }
 0x20d   :  { %v2338_v7 = vmax.f32 %v2336_v62, %v2337_v61  ;;  %v2670_v16 = vpack.c.bf16 %v2508_v25, %v2508_v25  ;;  %v2514_v62 = vrot.slane %v2513_v3, 1  ;;  %v2538_v50 = vmax.f32 %v2536_v12, %v2537_v9 }
 0x20e   :  { %v2009_v10 = vadd.f32 %v5088_v40, %v1341_v35  ;;  %v2572_v21 = vrot.slane %v2571_v28, 2  ;;  %v1943_v40 = vadd.f32 %v5047_v47, %v1655_v23  ;;  %v2544_v61 = vrot.slane %v2543_v39, 1  ;;  %v5528_v23 = vld [vmem:[#allocation14_spill] sm:$0xff] }
 0x20f   :  { %v2339_v20 = vrot.slane %v2338_v7, 2  ;;  %v2134_v38 = vmax.f32 %v2006_v53, 0.0  ;;  %v2568_v41 = vmax.f32 %v2566_v17, %v2567_v30  ;;  %v2515_v60 = vmax.f32 %v2513_v3, %v2514_v62 }
 0x210   :  { %v2137_v19 = vmax.f32 %v2009_v10, 0.0  ;;  %v2573_v58 = vmax.f32 %v2571_v28, %v2572_v21  ;;  %v2674_v6 = vpack.c.bf16 %v2538_v50, %v2538_v50 }
 0x211   :  { %v2340_v59 = vmax.f32 %v2338_v7, %v2339_v20  ;;  %v1429_v45 = vpop.f32.mrf.mxu2  ;;  %v2678_v53 = vpack.c.bf16 %v2568_v41, %v2568_v41 }
 0x212   :  { %v2592_v29 = vmax.f32 %v2133_v31, %v2137_v19  ;;  %v1519_v33 = vadd.f32 %v5526_v51, %v1429_v45  ;;  %v1656_v14 = vpop.f32.mrf.mxu3  ;;  %v2574_v48 = vrot.slane %v2573_v58, 1  ;;  %v3683_v31 = vld [vmem:[#allocation5 + $0xb8] sm:$0xff]  ;;  %v2545_v19 = vmax.f32 %v2543_v39, %v2544_v61 }
 0x213   :  { %v2341_v0 = vrot.slane %v2340_v59, 1  ;;  %v1708_v43 = vpop.f32.mrf.mxu0  ;;  %v1657_v32 = vadd.f32 %v1656_v14, %v1567_v34  ;;  %v2071_v34 = vmax.f32 %v1943_v40, 0.0  ;;  %3151 = vmatpush.bf16.msra.mxu0 %v3683_v31  ;;  %v2863_v40 = vunpack.c.l.b16 %v2674_v6 }
 0x214   :  { %v2593_v22 = vrot.slane %v2592_v29, 4  ;;  %v2010_v4 = vadd.f32 %v5099_v27, %v1519_v33  ;;  %v1570_v13 = vpop.f32.mrf.mxu1  ;;  %v2859_v27 = vunpack.c.l.b16 %v2670_v16  ;;  %v2671_v33 = vpack.c.bf16 %v2515_v60, %v2515_v60  ;;  %v5221_v16 = vld [vmem:[#allocation2 + $0x18] sm:$0xff] }
 0x215   :  { %v2342_v54 = vmax.f32 %v2340_v59, %v2341_v0  ;;  %v1947_v18 = vadd.f32 %v5051_v52, %v1657_v32  ;;  %v2575_v32 = vmax.f32 %v2573_v58, %v2574_v48 }
 0x216   :  { %v2594_v49 = vmax.f32 %v2592_v29, %v2593_v22  ;;  %v2138_v2 = vmax.f32 %v2010_v4, 0.0  ;;  %1747 = vmatmul.bf16.gmra.mxu0 %v5527_v24  ;;  %3483 = vmatmul.msk.bf16.gmra.mxu2 %vm762_vm1, %v5528_v23  ;;  %v2913_v4 = vsel %vm2881_vm10, %v2859_v27, %v5139_v11 }
 0x217   :  { %v2648_v35 = vpack.c.bf16 %v2342_v54, %v2342_v54  ;;  %v2075_v7 = vmax.f32 %v1947_v18, 0.0  ;;  %v2860_v54 = vunpack.c.l.b16 %v2671_v33  ;;  %v2914_v24 = vsel %vm2883_vm11, %v2863_v40, %v2913_v4 }
 0x218   :  { %v2595_v12 = vrot.slane %v2594_v49, 2  ;;  %v2599_v28 = vmax.f32 %v2134_v38, %v2138_v2  ;;  %v2679_v38 = vpack.c.bf16 %v2575_v32, %v2575_v32  ;;  %v5226_v2 = vld [vmem:[#allocation2 + $0x38] sm:$0xff] }
 0x219   :  { %v2837_v10 = vunpack.c.l.b16 %v2648_v35  ;;  %v2366_v20 = vmax.f32 %v2071_v34, %v2075_v7  ;;  %v1797_v25 = vpop.f32.mrf.mxu2 }
 0x21a   :  { %v2596_v9 = vmax.f32 %v2594_v49, %v2595_v12  ;;  %v2600_v21 = vrot.slane %v2599_v28, 4  ;;  %v1798_v59 = vadd.f32 %v1797_v25, %v1708_v43  ;;  %v1659_v45 = vpop.f32.mrf.mxu3  ;;  %v2675_v43 = vpack.c.bf16 %v2545_v19, %v2545_v19 }
 0x21b   :  { %v2367_v17 = vrot.slane %v2366_v20, 4  ;;  %v1710_v29 = vpop.f32.mrf.mxu0  ;;  %v1660_v51 = vadd.f32 %v1659_v45, %v1570_v13  ;;  %v5219_v3 = vsel %vm2885_vm12, %v2837_v10, %v5203_v42  ;;  %v2867_v13 = vunpack.c.l.b16 %v2678_v53 }
 0x21c   :  { %v2597_v14 = vrot.slane %v2596_v9, 1  ;;  %v2601_v30 = vmax.f32 %v2599_v28, %v2600_v21  ;;  %v1572_v0 = vpop.f32.mrf.mxu1  ;;  %v1888_v61 = vadd.f32 %v5221_v16, %v1798_v59  ;;  %v2864_v23 = vunpack.c.l.b16 %v2675_v43  ;;  %v5529_v21 = vld [vmem:[#allocation29_spill] sm:$0xff] }
 0x21d   :  { %v2368_v39 = vmax.f32 %v2366_v20, %v2367_v17  ;;  %v1951_v27 = vadd.f32 %v5047_v47, %v1660_v51  ;;  %v2915_v28 = vsel %vm2885_vm12, %v2867_v13, %v2914_v24  ;;  %v2868_v31 = vunpack.c.l.b16 %v2679_v38  ;;  %v5530_v47 = vld [vmem:[#allocation35_spill] sm:$0xff]  ;;  %v5531_v17 = vld [vmem:[#allocation17_spill] sm:$0xff] }
 0x21e   :  { %v2598_v62 = vmax.f32 %v2596_v9, %v2597_v14  ;;  %v2602_v22 = vrot.slane %v2601_v30, 2  ;;  %v2016_v48 = vmax.f32 %v1888_v61, 0.0 }
 0x21f   :  { %v2369_v50 = vrot.slane %v2368_v39, 2  ;;  %v2079_v33 = vmax.f32 %v1951_v27, 0.0 }
 0x220   :  { %v2682_v42 = vpack.c.bf16 %v2598_v62, %v2598_v62  ;;  %v2603_v18 = vmax.f32 %v2601_v30, %v2602_v22 }
 0x221   :  { %v2370_v49 = vmax.f32 %v2368_v39, %v2369_v50  ;;  %v1799_v58 = vpop.f32.mrf.mxu2 }
 0x222   :  { %v2871_v41 = vunpack.c.l.b16 %v2682_v42  ;;  %v2604_v35 = vrot.slane %v2603_v18, 1  ;;  %v1800_v34 = vadd.f32 %v1799_v58, %v1710_v29  ;;  %v1661_v11 = vpop.f32.mrf.mxu3  ;;  %v2920_v29 = vsel %vm2881_vm10, %v2860_v54, %v5149_v1  ;;  %v5532_v42 = vld [vmem:[#allocation15_spill] sm:$0xff] }
 0x223   :  { %v2371_v7 = vrot.slane %v2370_v49, 1  ;;  %v1713_v60 = vpop.f32.mrf.mxu0  ;;  %v1662_v12 = vadd.f32 %v1661_v11, %v1572_v0  ;;  %v2163_v0 = vsel %vm2162_vm14, %v2016_v48, -inf  ;;  %v2921_v40 = vsel %vm2883_vm11, %v2864_v23, %v2920_v29 }
 0x224   :  { %v2605_v6 = vmax.f32 %v2603_v18, %v2604_v35  ;;  %v1892_v10 = vadd.f32 %v5226_v2, %v1800_v34  ;;  %v1575_v20 = vpop.f32.mrf.mxu1  ;;  %v2916_v25 = vsel %vm2887_vm13, %v2871_v41, %v2915_v28  ;;  %v2922_v22 = vsel %vm2885_vm12, %v2868_v31, %v2921_v40 }
 0x225   :  { %v2372_v19 = vmax.f32 %v2370_v49, %v2371_v7  ;;  %v1955_v9 = vadd.f32 %v5051_v52, %v1662_v12  ;;  %v2938_v59 = vpack.c.b16 %v2916_v25, %v5529_v21  ;;  %v5251_v7 = vld [vmem:[#allocation2 + $0x10] sm:$0xff] }
 0x226   :  { %v2683_v45 = vpack.c.bf16 %v2605_v6, %v2605_v6  ;;  %v2020_v53 = vmax.f32 %v1892_v10, 0.0  ;;  %1752 = vmatmul.bf16.gmra.mxu0 %v5530_v47  ;;  %3484 = vmatmul.msk.bf16.gmra.mxu2 %vm762_vm1, %v5531_v17 }
 0x227   :  { %v2652_v51 = vpack.c.bf16 %v2372_v19, %v2372_v19  ;;  %v2083_v14 = vmax.f32 %v1955_v9, 0.0  ;;  %3131 = vmatmul.bf16.vlgmr.msra.gmra.mxu1 %v2938_v59 }
 0x228   :  { %v2872_v30 = vunpack.c.l.b16 %v2683_v45  ;;  %v2164_v52 = vsel %vm2162_vm14, %v2020_v53, -inf }
 0x229   :  { %v2841_v32 = vunpack.c.l.b16 %v2652_v51  ;;  %v2165_v39 = vmax.f32 %v2163_v0, %v2164_v52  ;;  %v2396_v43 = vmax.f32 %v2079_v33, %v2083_v14  ;;  %v1802_v62 = vpop.f32.mrf.mxu2  ;;  %v3682_v52 = vld [vmem:[#allocation5 + $0xb0] sm:$0xff] }
 0x22a   :  { %v1803_v4 = vadd.f32 %v1802_v62, %v1713_v60  ;;  %v1664_v13 = vpop.f32.mrf.mxu3  ;;  %v2923_v1 = vsel %vm2887_vm13, %v2872_v30, %v2922_v22  ;;  %3152 = vmatpush.bf16.msra.mxu0 %v3682_v52 }
 0x22b   :  { %v1715_v50 = vpop.f32.mrf.mxu0  ;;  %v1665_v54 = vadd.f32 %v1664_v13, %v1575_v20  ;;  %v2939_v18 = vpack.c.b16 %v2923_v1, %v5532_v42  ;;  %v2166_v61 = vrot.slane %v2165_v39, 4  ;;  %v2397_v38 = vrot.slane %v2396_v43, 4  ;;  %v5255_v20 = vld [vmem:[#allocation2 + $0x30] sm:$0xff] }
 0x22c   :  { %v1577_v49 = vpop.f32.mrf.mxu1  ;;  %v5248_v58 = vsel %vm2887_vm13, %v2841_v32, %v5219_v3  ;;  %v1896_v41 = vadd.f32 %v5221_v16, %v1803_v4 }
 0x22d   :  { %3145 = vmatmul.bf16.vlgmr.msra.gmra.mxu3 %v2939_v18  ;;  %v2167_v24 = vmax.f32 %v2165_v39, %v2166_v61  ;;  %v2398_v23 = vmax.f32 %v2396_v43, %v2397_v38  ;;  %v1959_v27 = vadd.f32 %v5251_v7, %v1665_v54 }
 0x22e   :  { %v2024_v48 = vmax.f32 %v1896_v41, 0.0 }
 0x22f   :  { %v2168_v28 = vrot.slane %v2167_v24, 2  ;;  %v2399_v6 = vrot.slane %v2398_v23, 2  ;;  %v2087_v19 = vmax.f32 %v1959_v27, 0.0 }
 0x230   :  { %v2193_v45 = vsel %vm2162_vm14, %v2024_v48, -inf }
 0x231   :  { %v1804_v35 = vpop.f32.mrf.mxu2  ;;  %v2169_v21 = vmax.f32 %v2167_v24, %v2168_v28  ;;  %v2400_v59 = vmax.f32 %v2398_v23, %v2399_v6 }
 0x232   :  { %v1805_v34 = vadd.f32 %v1804_v35, %v1715_v50  ;;  %v1666_v11 = vpop.f32.mrf.mxu3 }
 0x233   :  { %v1718_v60 = vpop.f32.mrf.mxu0  ;;  %v1667_v12 = vadd.f32 %v1666_v11, %v1577_v49  ;;  %v2170_v40 = vrot.slane %v2169_v21, 1 }
 0x234   :  { %v1900_v3 = vadd.f32 %v5226_v2, %v1805_v34  ;;  %v1580_v10 = vpop.f32.mrf.mxu1 }
 0x235   :  { %v1963_v25 = vadd.f32 %v5255_v20, %v1667_v12  ;;  %v2171_v4 = vmax.f32 %v2169_v21, %v2170_v40 }
 0x236   :  { %v2028_v31 = vmax.f32 %v1900_v3, 0.0  ;;  %1757 = vmatmul.bf16.gmra.mxu0 %v4847_v44  ;;  %3485 = vmatmul.msk.bf16.gmra.mxu2 %vm762_vm1, %v5508_v37  ;;  %v2401_v37 = vrot.slane %v2400_v59, 1 }
 0x237   :  { %v2091_v9 = vmax.f32 %v1963_v25, 0.0  ;;  %v2625_v35 = vpack.c.bf16 %v2171_v4, %v2171_v4 }
 0x238   :  { %v2194_v53 = vsel %vm2162_vm14, %v2028_v31, -inf  ;;  %v2402_v13 = vmax.f32 %v2400_v59, %v2401_v37 }
 0x239   :  { %v2195_v47 = vmax.f32 %v2193_v45, %v2194_v53  ;;  %v2426_v17 = vmax.f32 %v2087_v19, %v2091_v9  ;;  %v1807_v29 = vpop.f32.mrf.mxu2  ;;  %v2814_v19 = vunpack.c.l.b16 %v2625_v35 }
 0x23a   :  { %v1808_v51 = vadd.f32 %v1807_v29, %v1718_v60  ;;  %v1669_v33 = vpop.f32.mrf.mxu3  ;;  %v2656_v34 = vpack.c.bf16 %v2402_v13, %v2402_v13 }
 0x23b   :  { %v2196_v14 = vrot.slane %v2195_v47, 4  ;;  %v2427_v30 = vrot.slane %v2426_v17, 4  ;;  %v1720_v0 = vpop.f32.mrf.mxu0  ;;  %v1670_v44 = vadd.f32 %v1669_v33, %v1580_v10 }
 0x23c   :  { %v1582_v32 = vpop.f32.mrf.mxu1  ;;  %v1904_v1 = vadd.f32 %v5221_v16, %v1808_v51  ;;  %v2845_v9 = vunpack.c.l.b16 %v2656_v34 }
 0x23d   :  { %v2197_v39 = vmax.f32 %v2195_v47, %v2196_v14  ;;  %v2428_v43 = vmax.f32 %v2426_v17, %v2427_v30  ;;  %v1967_v24 = vadd.f32 %v5251_v7, %v1670_v44 }
 0x23e   :  { %v2032_v11 = vmax.f32 %v1904_v1, 0.0 }
 0x23f   :  { %v2198_v62 = vrot.slane %v2197_v39, 2  ;;  %v2429_v22 = vrot.slane %v2428_v43, 2  ;;  %v2095_v25 = vmax.f32 %v1967_v24, 0.0 }
 0x240   :  { %v2223_v21 = vsel %vm2162_vm14, %v2032_v11, -inf }
 0x241   :  { %v2199_v50 = vmax.f32 %v2197_v39, %v2198_v62  ;;  %v2430_v54 = vmax.f32 %v2428_v43, %v2429_v22  ;;  %v1809_v42 = vpop.f32.mrf.mxu2 }
 0x242   :  { %v1810_v18 = vadd.f32 %v1809_v42, %v1720_v0  ;;  %v1671_v61 = vpop.f32.mrf.mxu3 }
 0x243   :  { %v2200_v38 = vrot.slane %v2199_v50, 1  ;;  %v2431_v49 = vrot.slane %v2430_v54, 1  ;;  %v1723_v23 = vpop.f32.mrf.mxu0  ;;  %v1672_v41 = vadd.f32 %v1671_v61, %v1582_v32 }
 0x244   :  { %v1908_v27 = vadd.f32 %v5226_v2, %v1810_v18  ;;  %v1585_v60 = vpop.f32.mrf.mxu1 }
 0x245   :  { %v2201_v12 = vmax.f32 %v2199_v50, %v2200_v38  ;;  %v2432_v28 = vmax.f32 %v2430_v54, %v2431_v49  ;;  %v1971_v6 = vadd.f32 %v5255_v20, %v1672_v41 }
 0x246   :  { %v2036_v48 = vmax.f32 %v1908_v27, 0.0  ;;  %1762 = vmatmul.bf16.gmra.mxu0 %v4880_v8  ;;  %3486 = vmatmul.msk.bf16.gmra.mxu2 %vm762_vm1, %v5512_v46 }
 0x247   :  { %v2629_v3 = vpack.c.bf16 %v2201_v12, %v2201_v12  ;;  %v2660_v10 = vpack.c.bf16 %v2432_v28, %v2432_v28  ;;  %v2099_v31 = vmax.f32 %v1971_v6, 0.0 }
 0x248   :  { %v2224_v59 = vsel %vm2162_vm14, %v2036_v48, -inf }
 0x249   :  { %v2818_v45 = vunpack.c.l.b16 %v2629_v3  ;;  %v2849_v53 = vunpack.c.l.b16 %v2660_v10  ;;  %v2225_v47 = vmax.f32 %v2223_v21, %v2224_v59  ;;  %v2456_v17 = vmax.f32 %v2095_v25, %v2099_v31  ;;  %v1812_v29 = vpop.f32.mrf.mxu2 }
 0x24a   :  { %v1813_v51 = vadd.f32 %v1812_v29, %v1723_v23  ;;  %v1674_v8 = vpop.f32.mrf.mxu3 }
 0x24b   :  { %v2903_v33 = vsel %vm2875_vm7, %v2818_v45, %v2814_v19  ;;  %v2924_v46 = vsel %vm2875_vm7, %v2849_v53, %v2845_v9  ;;  %v2226_v14 = vrot.slane %v2225_v47, 4  ;;  %v2457_v30 = vrot.slane %v2456_v17, 4  ;;  %v1725_v0 = vpop.f32.mrf.mxu0  ;;  %v3681_v53 = vld [vmem:[#allocation5 + $0xa8] sm:$0xff] }
 0x24c   :  { %v1675_v44 = vadd.f32 %v1674_v8, %v1585_v60  ;;  %v1587_v52 = vpop.f32.mrf.mxu1  ;;  %v1912_v43 = vadd.f32 %v5221_v16, %v1813_v51  ;;  %3153 = vmatpush.bf16.msra.mxu0 %v3681_v53 }
 0x24d   :  { %v2227_v40 = vmax.f32 %v2225_v47, %v2226_v14  ;;  %v2458_v37 = vmax.f32 %v2456_v17, %v2457_v30 }
 0x24e   :  { %v1975_v42 = vadd.f32 %v5251_v7, %v1675_v44  ;;  %v2040_v38 = vmax.f32 %v1912_v43, 0.0 }
 0x24f   :  { %v2228_v32 = vrot.slane %v2227_v40, 2  ;;  %v2459_v39 = vrot.slane %v2458_v37, 2 }
 0x250   :  { %v2103_v60 = vmax.f32 %v1975_v42, 0.0  ;;  %v2253_v28 = vsel %vm2162_vm14, %v2040_v38, -inf }
 0x251   :  { %v2229_v62 = vmax.f32 %v2227_v40, %v2228_v32  ;;  %v2460_v22 = vmax.f32 %v2458_v37, %v2459_v39  ;;  %v1814_v4 = vpop.f32.mrf.mxu2 }
 0x252   :  { %v1815_v13 = vadd.f32 %v1814_v4, %v1725_v0  ;;  %v1676_v1 = vpop.f32.mrf.mxu3 }
 0x253   :  { %v2230_v50 = vrot.slane %v2229_v62, 1  ;;  %v2461_v54 = vrot.slane %v2460_v22, 1  ;;  %v1728_v18 = vpop.f32.mrf.mxu0  ;;  %v1677_v61 = vadd.f32 %v1676_v1, %v1587_v52 }
 0x254   :  { %v1916_v49 = vadd.f32 %v5226_v2, %v1815_v13  ;;  %v5277_v24 = vpop.f32.mrf.mxu1 }
 0x255   :  { %v2231_v23 = vmax.f32 %v2229_v62, %v2230_v50  ;;  %v2462_v41 = vmax.f32 %v2460_v22, %v2461_v54  ;;  %v1979_v35 = vadd.f32 %v5255_v20, %v1677_v61 }
 0x256   :  { %v2044_v34 = vmax.f32 %v1916_v49, 0.0  ;;  %1767 = vmatmul.bf16.gmra.mxu0 %v4909_v15  ;;  %3487 = vmatmul.msk.bf16.gmra.mxu2 %vm762_vm1, %v5513_v56 }
 0x257   :  { %v2633_v11 = vpack.c.bf16 %v2231_v23, %v2231_v23  ;;  %v2664_v27 = vpack.c.bf16 %v2462_v41, %v2462_v41  ;;  %v2107_v12 = vmax.f32 %v1979_v35, 0.0 }
 0x258   :  { %v2254_v6 = vsel %vm2162_vm14, %v2044_v34, -inf }
 0x259   :  { %v2822_v48 = vunpack.c.l.b16 %v2633_v11  ;;  %v2853_v3 = vunpack.c.l.b16 %v2664_v27  ;;  %v2255_v10 = vmax.f32 %v2253_v28, %v2254_v6  ;;  %v2486_v25 = vmax.f32 %v2103_v60, %v2107_v12  ;;  %v1817_v31 = vpop.f32.mrf.mxu2 }
 0x25a   :  { %v1818_v19 = vadd.f32 %v1817_v31, %v1728_v18  ;;  %v5285_v9 = vpop.f32.mrf.mxu3 }
 0x25b   :  { %v2904_v15 = vsel %vm2877_vm8, %v2822_v48, %v2903_v33  ;;  %v2925_v56 = vsel %vm2877_vm8, %v2853_v3, %v2924_v46  ;;  %v2256_v21 = vrot.slane %v2255_v10, 4  ;;  %v2487_v59 = vrot.slane %v2486_v25, 4  ;;  %v1730_v45 = vpop.f32.mrf.mxu0 }
 0x25c   :  { %v1592_v47 = vpop.f32.mrf.mxu1  ;;  %v1920_v14 = vadd.f32 %v5221_v16, %v1818_v19 }
 0x25d   :  { %v2257_v17 = vmax.f32 %v2255_v10, %v2256_v21  ;;  %v2488_v29 = vmax.f32 %v2486_v25, %v2487_v59 }
 0x25e   :  { %v2048_v32 = vmax.f32 %v1920_v14, 0.0  ;;  %v1680_v14 = vadd.f32 %v5285_v9, %v5277_v24 }
 0x25f   :  { %v2258_v51 = vrot.slane %v2257_v17, 2  ;;  %v2489_v8 = vrot.slane %v2488_v29, 2 }
 0x260   :  { %v2283_v50 = vsel %vm2162_vm14, %v2048_v32, -inf }
 0x261   :  { %v2259_v30 = vmax.f32 %v2257_v17, %v2258_v51  ;;  %v2490_v0 = vmax.f32 %v2488_v29, %v2489_v8  ;;  %v1819_v44 = vpop.f32.mrf.mxu2 }
 0x262   :  { %v1820_v52 = vadd.f32 %v1819_v44, %v1730_v45  ;;  %v1681_v40 = vpop.f32.mrf.mxu3 }
 0x263   :  { %v2260_v33 = vrot.slane %v2259_v30, 1  ;;  %v2491_v37 = vrot.slane %v2490_v0, 1  ;;  %v1733_v46 = vpop.f32.mrf.mxu0  ;;  %v1682_v59 = vadd.f32 %v1681_v40, %v1592_v47 }
 0x264   :  { %v1924_v39 = vadd.f32 %v5226_v2, %v1820_v52  ;;  %v1595_v43 = vpop.f32.mrf.mxu1 }
 0x265   :  { %v2261_v62 = vmax.f32 %v2259_v30, %v2260_v33  ;;  %v2492_v22 = vmax.f32 %v2490_v0, %v2491_v37  ;;  %v3680_v33 = vld [vmem:[#allocation5 + $0xa0] sm:$0xff]  ;;  %v1987_v47 = vadd.f32 %v5255_v20, %v1682_v59 }
 0x266   :  { %v2052_v4 = vmax.f32 %v1924_v39, 0.0  ;;  %1772 = vmatmul.bf16.gmra.mxu0 %v4944_v63  ;;  %3488 = vmatmul.msk.bf16.gmra.mxu2 %vm762_vm1, %v5514_v26 }
 0x267   :  { %v2637_v13 = vpack.c.bf16 %v2261_v62, %v2261_v62  ;;  %v2668_v1 = vpack.c.bf16 %v2492_v22, %v2492_v22  ;;  %3154 = vmatpush.bf16.msra.mxu0 %v3680_v33  ;;  %v2115_v62 = vmax.f32 %v1987_v47, 0.0 }
 0x268   :  { %v2284_v54 = vsel %vm2162_vm14, %v2052_v4, -inf }
 0x269   :  { %v2826_v42 = vunpack.c.l.b16 %v2637_v13  ;;  %v2857_v18 = vunpack.c.l.b16 %v2668_v1  ;;  %v2285_v61 = vmax.f32 %v2283_v50, %v2284_v54  ;;  %v1822_v38 = vpop.f32.mrf.mxu2 }
 0x26a   :  { %v1823_v49 = vadd.f32 %v1822_v38, %v1733_v46  ;;  %v1684_v23 = vpop.f32.mrf.mxu3  ;;  %v1983_v46 = vadd.f32 %v5251_v7, %v1680_v14  ;;  %v3676_v14 = vld [vmem:[#allocation5 + $0x80] sm:$0xff] }
 0x26b   :  { %v2905_v41 = vsel %vm2879_vm9, %v2826_v42, %v2904_v15  ;;  %v5298_v35 = vsel %vm2879_vm9, %v2857_v18, %v2925_v56  ;;  %v2286_v63 = vrot.slane %v2285_v61, 4  ;;  %v1735_v34 = vpop.f32.mrf.mxu0  ;;  %v1685_v44 = vadd.f32 %v1684_v23, %v1595_v43  ;;  %v3679_v43 = vld [vmem:[#allocation5 + $0x98] sm:$0xff] }
 0x26c   :  { %v1597_v26 = vpop.f32.mrf.mxu1  ;;  %v1928_v60 = vadd.f32 %v5221_v16, %v1823_v49  ;;  %v2111_v50 = vmax.f32 %v1983_v46, 0.0  ;;  %3155 = vmatpush.bf16.msra.mxu0 %v3679_v43 }
 0x26d   :  { %v2287_v11 = vmax.f32 %v2285_v61, %v2286_v63  ;;  %v1991_v39 = vadd.f32 %v5251_v7, %v1685_v44 }
 0x26e   :  { %v2056_v25 = vmax.f32 %v1928_v60, 0.0 }
 0x26f   :  { %v2288_v27 = vrot.slane %v2287_v11, 2  ;;  %v2119_v18 = vmax.f32 %v1991_v39, 0.0 }
 0x270   :  { %v2313_v45 = vsel %vm2162_vm14, %v2056_v25, -inf }
 0x271   :  { %v2289_v12 = vmax.f32 %v2287_v11, %v2288_v27  ;;  %v1824_v28 = vpop.f32.mrf.mxu2 }
 0x272   :  { %v1825_v6 = vadd.f32 %v1824_v28, %v1735_v34  ;;  %v1686_v48 = vpop.f32.mrf.mxu3 }
 0x273   :  { %v2290_v3 = vrot.slane %v2289_v12, 1  ;;  %v1738_v10 = vpop.f32.mrf.mxu0  ;;  %v1687_v51 = vadd.f32 %v1686_v48, %v1597_v26  ;;  %v3678_v26 = vld [vmem:[#allocation5 + $0x90] sm:$0xff] }
 0x274   :  { %v1932_v31 = vadd.f32 %v5226_v2, %v1825_v6  ;;  %v1600_v19 = vpop.f32.mrf.mxu1  ;;  %3156 = vmatpush.bf16.msra.mxu0 %v3678_v26 }
 0x275   :  { %v2291_v15 = vmax.f32 %v2289_v12, %v2290_v3  ;;  %v1995_v37 = vadd.f32 %v5255_v20, %v1687_v51 }
 0x276   :  { %v2060_v56 = vmax.f32 %v1932_v31, 0.0  ;;  %1777 = vmatmul.bf16.gmra.mxu0 %v4979_v55  ;;  %3489 = vmatmul.msk.bf16.gmra.mxu2 %vm762_vm1, %v5515_v57 }
 0x277   :  { %v2641_v21 = vpack.c.bf16 %v2291_v15, %v2291_v15  ;;  %v2123_v13 = vmax.f32 %v1995_v37, 0.0 }
 0x278   :  { %v2314_v53 = vsel %vm2162_vm14, %v2060_v56, -inf }
 0x279   :  { %v2830_v17 = vunpack.c.l.b16 %v2641_v21  ;;  %v2315_v29 = vmax.f32 %v2313_v45, %v2314_v53  ;;  %v1827_v8 = vpop.f32.mrf.mxu2  ;;  %v2546_v27 = vmax.f32 %v2119_v18, %v2123_v13 }
 0x27a   :  { %v1828_v30 = vadd.f32 %v1827_v8, %v1738_v10  ;;  %v1689_v0 = vpop.f32.mrf.mxu3 }
 0x27b   :  { %v2906_v55 = vsel %vm2881_vm10, %v2830_v17, %v2905_v41  ;;  %v2316_v52 = vrot.slane %v2315_v29, 4  ;;  %v1740_v57 = vpop.f32.mrf.mxu0  ;;  %v1690_v9 = vadd.f32 %v1689_v0, %v1600_v19  ;;  %v2516_v41 = vmax.f32 %v2111_v50, %v2115_v62  ;;  %v3677_v19 = vld [vmem:[#allocation5 + $0x88] sm:$0xff] }
 0x27c   :  { %v1602_v32 = vpop.f32.mrf.mxu1  ;;  %v1936_v22 = vadd.f32 %v5221_v16, %v1828_v30  ;;  %v2547_v56 = vrot.slane %v2546_v27, 4  ;;  %3157 = vmatpush.bf16.msra.mxu0 %v3677_v19 }
 0x27d   :  { %v2317_v40 = vmax.f32 %v2315_v29, %v2316_v52  ;;  %v1999_v38 = vadd.f32 %v5251_v7, %v1690_v9  ;;  %v2517_v3 = vrot.slane %v2516_v41, 4 }
 0x27e   :  { %v2064_v63 = vmax.f32 %v1936_v22, 0.0  ;;  %v2548_v30 = vmax.f32 %v2546_v27, %v2547_v56 }
 0x27f   :  { %v2318_v24 = vrot.slane %v2317_v40, 2  ;;  %v2127_v6 = vmax.f32 %v1999_v38, 0.0  ;;  %v2518_v8 = vmax.f32 %v2516_v41, %v2517_v3 }
 0x280   :  { %v2343_v10 = vsel %vm2162_vm14, %v2064_v63, -inf  ;;  %3158 = vmatpush.bf16.msra.mxu0 %v3676_v14 }
 0x281   :  { %v2319_v4 = vmax.f32 %v2317_v40, %v2318_v24  ;;  %v1829_v1 = vpop.f32.mrf.mxu2  ;;  %v2519_v33 = vrot.slane %v2518_v8, 2  ;;  %v2549_v40 = vrot.slane %v2548_v30, 2 }
 0x282   :  { %v1830_v54 = vadd.f32 %v1829_v1, %v1740_v57  ;;  %v1691_v42 = vpop.f32.mrf.mxu3 }
 0x283   :  { %v2320_v61 = vrot.slane %v2319_v4, 1  ;;  %v1743_v49 = vpop.f32.mrf.mxu0  ;;  %v1692_v23 = vadd.f32 %v1691_v42, %v1602_v32  ;;  %v2550_v50 = vmax.f32 %v2548_v30, %v2549_v40 }
 0x284   :  { %v1940_v34 = vadd.f32 %v5226_v2, %v1830_v54  ;;  %v1605_v31 = vpop.f32.mrf.mxu1 }
 0x285   :  { %v2321_v11 = vmax.f32 %v2319_v4, %v2320_v61  ;;  %v2003_v60 = vadd.f32 %v5255_v20, %v1692_v23  ;;  %v2520_v4 = vmax.f32 %v2518_v8, %v2519_v33 }
 0x286   :  { %v2068_v12 = vmax.f32 %v1940_v34, 0.0  ;;  %1782 = vmatmul.bf16.gmra.mxu0 %v5521_v5  ;;  %3490 = vmatmul.msk.bf16.gmra.mxu2 %vm762_vm1, %v5522_v36  ;;  %v2551_v34 = vrot.slane %v2550_v50, 1 }
 0x287   :  { %v2645_v28 = vpack.c.bf16 %v2321_v11, %v2321_v11  ;;  %v2131_v48 = vmax.f32 %v2003_v60, 0.0  ;;  %v2521_v41 = vrot.slane %v2520_v4, 1 }
 0x288   :  { %v2344_v25 = vsel %vm2162_vm14, %v2068_v12, -inf }
 0x289   :  { %v2834_v15 = vunpack.c.l.b16 %v2645_v28  ;;  %v2345_v21 = vmax.f32 %v2343_v10, %v2344_v25  ;;  %v2576_v59 = vmax.f32 %v2127_v6, %v2131_v48  ;;  %v1832_v45 = vpop.f32.mrf.mxu2  ;;  %v2522_v10 = vmax.f32 %v2520_v4, %v2521_v41 }
 0x28a   :  { %v1833_v5 = vadd.f32 %v1832_v45, %v1743_v49  ;;  %v1694_v53 = vpop.f32.mrf.mxu3  ;;  %v2552_v25 = vmax.f32 %v2550_v50, %v2551_v34 }
 0x28b   :  { %v2907_v36 = vsel %vm2883_vm11, %v2834_v15, %v2906_v55  ;;  %v2346_v17 = vrot.slane %v2345_v21, 4  ;;  %v2577_v29 = vrot.slane %v2576_v59, 4  ;;  %v1745_v51 = vpop.f32.mrf.mxu0  ;;  %v1695_v57 = vadd.f32 %v1694_v53, %v1605_v31 }
 0x28c   :  { %v1944_v47 = vadd.f32 %v5221_v16, %v1833_v5  ;;  %v1607_v55 = vpop.f32.mrf.mxu1  ;;  %v2676_v5 = vpack.c.bf16 %v2552_v25, %v2552_v25 }
 0x28d   :  { %v2347_v0 = vmax.f32 %v2345_v21, %v2346_v17  ;;  %v2578_v44 = vmax.f32 %v2576_v59, %v2577_v29  ;;  %v2007_v62 = vadd.f32 %v5251_v7, %v1695_v57  ;;  %v2672_v59 = vpack.c.bf16 %v2522_v10, %v2522_v10 }
 0x28e   :  { %v2072_v13 = vmax.f32 %v1944_v47, 0.0  ;;  %v2865_v57 = vunpack.c.l.b16 %v2676_v5 }
 0x28f   :  { %v2348_v52 = vrot.slane %v2347_v0, 2  ;;  %v2579_v32 = vrot.slane %v2578_v44, 2  ;;  %v2135_v49 = vmax.f32 %v2007_v62, 0.0 }
 0x290   :  { %v2373_v63 = vsel %vm2162_vm14, %v2072_v13, -inf }
 0x291   :  { %v2349_v37 = vmax.f32 %v2347_v0, %v2348_v52  ;;  %v1834_v46 = vpop.f32.mrf.mxu2  ;;  %v2580_v18 = vmax.f32 %v2578_v44, %v2579_v32  ;;  %v2861_v0 = vunpack.c.l.b16 %v2672_v59 }
 0x292   :  { %v1835_v39 = vadd.f32 %v1834_v46, %v1745_v51  ;;  %v1696_v24 = vpop.f32.mrf.mxu3 }
 0x293   :  { %v2350_v9 = vrot.slane %v2349_v37, 1  ;;  %v1748_v22 = vpop.f32.mrf.mxu0  ;;  %v1697_v43 = vadd.f32 %v1696_v24, %v1607_v55  ;;  %v2581_v12 = vrot.slane %v2580_v18, 1  ;;  %v2927_v55 = vsel %vm2881_vm10, %v2861_v0, %v5298_v35 }
 0x294   :  { %v1948_v1 = vadd.f32 %v5226_v2, %v1835_v39 }
 0x295   :  { %v2351_v54 = vmax.f32 %v2349_v37, %v2350_v9  ;;  %v2011_v42 = vadd.f32 %v5255_v20, %v1697_v43  ;;  %v2582_v15 = vmax.f32 %v2580_v18, %v2581_v12  ;;  %v2928_v9 = vsel %vm2883_vm11, %v2865_v57, %v2927_v55 }
 0x296   :  { %v2076_v61 = vmax.f32 %v1948_v1, 0.0 }
 0x297   :  { %v2649_v38 = vpack.c.bf16 %v2351_v54, %v2351_v54  ;;  %v2139_v23 = vmax.f32 %v2011_v42, 0.0  ;;  %v2680_v51 = vpack.c.bf16 %v2582_v15, %v2582_v15 }
 0x298   :  { %v2374_v7 = vsel %vm2162_vm14, %v2076_v61, -inf }
 0x299   :  { %v2838_v26 = vunpack.c.l.b16 %v2649_v38  ;;  %v2375_v11 = vmax.f32 %v2373_v63, %v2374_v7  ;;  %v2606_v27 = vmax.f32 %v2135_v49, %v2139_v23  ;;  %v1837_v60 = vpop.f32.mrf.mxu2  ;;  %v2869_v40 = vunpack.c.l.b16 %v2680_v51 }
 0x29a   :  { %v1838_v28 = vadd.f32 %v1837_v60, %v1748_v22 }
 0x29b   :  { %v2908_v6 = vsel %vm2885_vm12, %v2838_v26, %v2907_v36  ;;  %v2376_v20 = vrot.slane %v2375_v11, 4  ;;  %v2607_v48 = vrot.slane %v2606_v27, 4  ;;  %v1750_v3 = vpop.f32.mrf.mxu0  ;;  %v2929_v1 = vsel %vm2885_vm12, %v2869_v40, %v2928_v9 }
 0x29c   :  { %v1952_v45 = vadd.f32 %v5221_v16, %v1838_v28 }
 0x29d   :  { %v2377_v31 = vmax.f32 %v2375_v11, %v2376_v20  ;;  %v2608_v19 = vmax.f32 %v2606_v27, %v2607_v48 }
 0x29e   :  { %v2080_v44 = vmax.f32 %v1952_v45, 0.0 }
 0x29f   :  { %v2378_v56 = vrot.slane %v2377_v31, 2  ;;  %v2609_v21 = vrot.slane %v2608_v19, 2 }
 0x2a0   :  { %v2403_v39 = vsel %vm2162_vm14, %v2080_v44, -inf }
 0x2a1   :  { %v2379_v53 = vmax.f32 %v2377_v31, %v2378_v56  ;;  %v2610_v17 = vmax.f32 %v2608_v19, %v2609_v21  ;;  %v1839_v29 = vpop.f32.mrf.mxu2 }
 0x2a2   :  { %v1840_v8 = vadd.f32 %v1839_v29, %v1750_v3 }
 0x2a3   :  { %v2380_v36 = vrot.slane %v2379_v53, 1  ;;  %v2611_v14 = vrot.slane %v2610_v17, 1  ;;  %v1753_v30 = vpop.f32.mrf.mxu0 }
 0x2a4   :  { %v1956_v52 = vadd.f32 %v5226_v2, %v1840_v8 }
 0x2a5   :  { %v2381_v33 = vmax.f32 %v2379_v53, %v2380_v36  ;;  %v2612_v47 = vmax.f32 %v2610_v17, %v2611_v14 }
 0x2a6   :  { %v2084_v37 = vmax.f32 %v1956_v52, 0.0 }
 0x2a7   :  { %v2653_v46 = vpack.c.bf16 %v2381_v33, %v2381_v33  ;;  %v2684_v32 = vpack.c.bf16 %v2612_v47, %v2612_v47 }
 0x2a8   :  { %v2404_v24 = vsel %vm2162_vm14, %v2084_v37, -inf }
 0x2a9   :  { %v2842_v62 = vunpack.c.l.b16 %v2653_v46  ;;  %v2873_v22 = vunpack.c.l.b16 %v2684_v32  ;;  %v2405_v43 = vmax.f32 %v2403_v39, %v2404_v24  ;;  %v1842_v4 = vpop.f32.mrf.mxu2 }
 0x2aa   :  { %v1843_v13 = vadd.f32 %v1842_v4, %v1753_v30 }
 0x2ab   :  { %v5340_v50 = vsel %vm2887_vm13, %v2842_v62, %v2908_v6  ;;  %v1755_v54 = vpop.f32.mrf.mxu0  ;;  %v2930_v42 = vsel %vm2887_vm13, %v2873_v22, %v2929_v1  ;;  %v2406_v18 = vrot.slane %v2405_v43, 4 }
 0x2ac   :  { %v2940_v35 = vpack.c.b16 %v2930_v42, %v5248_v58  ;;  %v1960_v61 = vadd.f32 %v5221_v16, %v1843_v13 }
 0x2ad   :  { %v2407_v38 = vmax.f32 %v2405_v43, %v2406_v18 }
 0x2ae   :  { %3159 = vmatmul.bf16.vlgmr.msra.gmra.mxu0 %v2940_v35  ;;  %v2088_v63 = vmax.f32 %v1960_v61, 0.0 }
 0x2af   :  { %v2408_v34 = vrot.slane %v2407_v38, 2 }
 0x2b0   :  { %v2433_v11 = vsel %vm2162_vm14, %v2088_v63, -inf }
 0x2b1   :  { %v1844_v49 = vpop.f32.mrf.mxu2  ;;  %v2409_v60 = vmax.f32 %v2407_v38, %v2408_v34 }
 0x2b2   :  { %v1845_v23 = vadd.f32 %v1844_v49, %v1755_v54 }
 0x2b3   :  { %v1758_v41 = vpop.f32.mrf.mxu0  ;;  %v2410_v48 = vrot.slane %v2409_v60, 1 }
 0x2b4   :  { %v1964_v7 = vadd.f32 %v5226_v2, %v1845_v23 }
 0x2b5   :  { %v2411_v31 = vmax.f32 %v2409_v60, %v2410_v48 }
 0x2b6   :  { %v2092_v26 = vmax.f32 %v1964_v7, 0.0 }
 0x2b7   :  { %v2657_v53 = vpack.c.bf16 %v2411_v31, %v2411_v31 }
 0x2b8   :  { %v2434_v27 = vsel %vm2162_vm14, %v2092_v26, -inf }
 0x2b9   :  { %v2435_v12 = vmax.f32 %v2433_v11, %v2434_v27  ;;  %v1847_v58 = vpop.f32.mrf.mxu2  ;;  %v2846_v14 = vunpack.c.l.b16 %v2657_v53 }
 0x2ba   :  { %v1848_v28 = vadd.f32 %v1847_v58, %v1758_v41 }
 0x2bb   :  { %v2436_v6 = vrot.slane %v2435_v12, 4  ;;  %v1760_v20 = vpop.f32.mrf.mxu0 }
 0x2bc   :  { %v1968_v25 = vadd.f32 %v5221_v16, %v1848_v28 }
 0x2bd   :  { %v2437_v3 = vmax.f32 %v2435_v12, %v2436_v6 }
 0x2be   :  { %v2096_v45 = vmax.f32 %v1968_v25, 0.0 }
 0x2bf   :  { %v2438_v10 = vrot.slane %v2437_v3, 2 }
 0x2c0   :  { %v2463_v8 = vsel %vm2162_vm14, %v2096_v45, -inf }
 0x2c1   :  { %v2439_v19 = vmax.f32 %v2437_v3, %v2438_v10  ;;  %v1849_v15 = vpop.f32.mrf.mxu2  ;;  %v2742_v10 = vld [vmem:[#allocation5 + $0xe0] sm:$0x1] }
 0x2c2   :  { %v1850_v56 = vadd.f32 %v1849_v15, %v1760_v20  ;;  %v3058_v31 = vunpack.c.l.b16 %v2742_v10 }
 0x2c3   :  { %v2440_v21 = vrot.slane %v2439_v19, 1  ;;  %v1763_v59 = vpop.f32.mrf.mxu0 }
 0x2c4   :  { %v1972_v5 = vadd.f32 %v5226_v2, %v1850_v56 }
 0x2c5   :  { %v2441_v17 = vmax.f32 %v2439_v19, %v2440_v21  ;;  %v3087_v21 = vpack.c.b16 %v3058_v31, %v3058_v31 }
 0x2c6   :  { %v2100_v29 = vmax.f32 %v1972_v5, 0.0 }
 0x2c7   :  { %v2661_v51 = vpack.c.bf16 %v2441_v17, %v2441_v17  ;;  %v3121_v5 = vsel %vm3119_vm15, %v3087_v21, 0 }
 0x2c8   :  { %v2464_v36 = vsel %vm2162_vm14, %v2100_v29, -inf  ;;  %3168 = vmatpush.bf16.msrb.mxu1 %v3121_v5 }
 0x2c9   :  { %v2850_v30 = vunpack.c.l.b16 %v2661_v51  ;;  %v2465_v0 = vmax.f32 %v2463_v8, %v2464_v36  ;;  %v1852_v44 = vpop.f32.mrf.mxu2  ;;  %v3687_v36 = vld [vmem:[#allocation5 + $0xd8] sm:$0xff] }
 0x2ca   :  { %v1853_v52 = vadd.f32 %v1852_v44, %v1763_v59 }
 0x2cb   :  { %v2931_v57 = vsel %vm2875_vm7, %v2850_v30, %v2846_v14  ;;  %v2466_v33 = vrot.slane %v2465_v0, 4  ;;  %v1765_v47 = vpop.f32.mrf.mxu0 }
 0x2cc   :  { %v1976_v46 = vadd.f32 %v5221_v16, %v1853_v52  ;;  %3169 = vmatpush.bf16.msrb.mxu1 %v3687_v36 }
 0x2cd   :  { %v2467_v40 = vmax.f32 %v2465_v0, %v2466_v33 }
 0x2ce   :  { %v2104_v62 = vmax.f32 %v1976_v46, 0.0 }
 0x2cf   :  { %v2468_v37 = vrot.slane %v2467_v40, 2 }
 0x2d0   :  { %v2493_v1 = vsel %vm2162_vm14, %v2104_v62, -inf }
 0x2d1   :  { %v2469_v32 = vmax.f32 %v2467_v40, %v2468_v37  ;;  %v1854_v55 = vpop.f32.mrf.mxu2 }
 0x2d2   :  { %v1855_v39 = vadd.f32 %v1854_v55, %v1765_v47  ;;  %v3686_v47 = vld [vmem:[#allocation5 + $0xd0] sm:$0xff] }
 0x2d3   :  { %v2470_v24 = vrot.slane %v2469_v32, 1  ;;  %v1768_v9 = vpop.f32.mrf.mxu0  ;;  %3170 = vmatpush.bf16.msrb.mxu1 %v3686_v47 }
 0x2d4   :  { %v1980_v22 = vadd.f32 %v5226_v2, %v1855_v39 }
 0x2d5   :  { %v2471_v43 = vmax.f32 %v2469_v32, %v2470_v24 }
 0x2d6   :  { %v2108_v4 = vmax.f32 %v1980_v22, 0.0 }
 0x2d7   :  { %v2665_v13 = vpack.c.bf16 %v2471_v43, %v2471_v43 }
 0x2d8   :  { %v2494_v54 = vsel %vm2162_vm14, %v2108_v4, -inf }
 0x2d9   :  { %v2854_v42 = vunpack.c.l.b16 %v2665_v13  ;;  %v2495_v35 = vmax.f32 %v2493_v1, %v2494_v54  ;;  %v1857_v18 = vpop.f32.mrf.mxu2  ;;  %v3684_v54 = vld [vmem:[#allocation5 + $0xc0] sm:$0xff] }
 0x2da   :  { %v1858_v25 = vadd.f32 %v1857_v18, %v1768_v9 }
 0x2db   :  { %v2932_v61 = vsel %vm2877_vm8, %v2854_v42, %v2931_v57  ;;  %v2496_v38 = vrot.slane %v2495_v35, 4  ;;  %v1770_v49 = vpop.f32.mrf.mxu0 }
 0x2dc   :  { %v1984_v45 = vadd.f32 %v5221_v16, %v1858_v25 }
 0x2dd   :  { %v2497_v23 = vmax.f32 %v2495_v35, %v2496_v38 }
 0x2de   :  { %v2112_v14 = vmax.f32 %v1984_v45, 0.0 }
 0x2df   :  { %v2498_v41 = vrot.slane %v2497_v23, 2 }
 0x2e0   :  { %v2523_v40 = vsel %vm2162_vm14, %v2112_v14, -inf }
 0x2e1   :  { %v2499_v63 = vmax.f32 %v2497_v23, %v2498_v41  ;;  %v1859_v7 = vpop.f32.mrf.mxu2 }
 0x2e2   :  { %v1860_v48 = vadd.f32 %v1859_v7, %v1770_v49  ;;  %v3708_v49 = vld [vmem:[#allocation2 + $0x18] sm:$0xff] }
 0x2e3   :  { %v2500_v34 = vrot.slane %v2499_v63, 1  ;;  %v1773_v26 = vpop.f32.mrf.mxu0 }
 0x2e4   :  { %v1988_v15 = vadd.f32 %v5226_v2, %v1860_v48 }
 0x2e5   :  { %v2501_v11 = vmax.f32 %v2499_v63, %v2500_v34 }
 0x2e6   :  { %v2116_v29 = vmax.f32 %v1988_v15, 0.0 }
 0x2e7   :  { %v2669_v27 = vpack.c.bf16 %v2501_v11, %v2501_v11 }
 0x2e8   :  { %v2524_v44 = vsel %vm2162_vm14, %v2116_v29, -inf }
 0x2e9   :  { %v2858_v60 = vunpack.c.l.b16 %v2669_v27  ;;  %v1862_v12 = vpop.f32.mrf.mxu2  ;;  %v2525_v37 = vmax.f32 %v2523_v40, %v2524_v44 }
 0x2ea   :  { %v1863_v19 = vadd.f32 %v1862_v12, %v1773_v26 }
 0x2eb   :  { %v5359_v58 = vsel %vm2879_vm9, %v2858_v60, %v2932_v61  ;;  %v1775_v28 = vpop.f32.mrf.mxu0  ;;  %v2526_v62 = vrot.slane %v2525_v37, 4  ;;  %v3709_v60 = vld [vmem:[#allocation2 + $0x38] sm:$0xff] }
 0x2ec   :  { %v1992_v53 = vadd.f32 %v5221_v16, %v1863_v19 }
 0x2ed   :  { %v2527_v35 = vmax.f32 %v2525_v37, %v2526_v62 }
 0x2ee   :  { %v2120_v30 = vmax.f32 %v1992_v53, 0.0 }
 0x2ef   :  { %v2528_v38 = vrot.slane %v2527_v35, 2 }
 0x2f0   :  { %v2553_v46 = vsel %vm2162_vm14, %v2120_v30, -inf }
 0x2f1   :  { %v1864_v6 = vpop.f32.mrf.mxu2  ;;  %v2529_v11 = vmax.f32 %v2527_v35, %v2528_v38 }
 0x2f2   :  { %v1865_v3 = vadd.f32 %v1864_v6, %v1775_v28 }
 0x2f3   :  { %v1778_v20 = vpop.f32.mrf.mxu0  ;;  %v2530_v48 = vrot.slane %v2529_v11, 1 }
 0x2f4   :  { %v1996_v59 = vadd.f32 %v5226_v2, %v1865_v3 }
 0x2f6   :  { %v2124_v8 = vmax.f32 %v1996_v59, 0.0 }
 0x2f8   :  { %v2554_v57 = vsel %vm2162_vm14, %v2124_v8, -inf }
 0x2f9   :  { %v1867_v56 = vpop.f32.mrf.mxu2  ;;  %v2555_v39 = vmax.f32 %v2553_v46, %v2554_v57  ;;  %v3132_v46 = vpop.f32.mrf.mxu1 }
 0x2fa   :  { %v1868_v17 = vadd.f32 %v1867_v56, %v1778_v20  ;;  %v2531_v56 = vmax.f32 %v2529_v11, %v2530_v48 }
 0x2fb   :  { %v1780_v51 = vpop.f32.mrf.mxu0  ;;  %v2556_v4 = vrot.slane %v2555_v39, 4 }
 0x2fc   :  { %v2000_v0 = vadd.f32 %v5221_v16, %v1868_v17  ;;  %v3685_v16 = vld [vmem:[#allocation5 + $0xc8] sm:$0xff]  ;;  %v2673_v53 = vpack.c.bf16 %v2531_v56, %v2531_v56 }
 0x2fd   :  { %3171 = vmatpush.bf16.msrb.mxu1 %v3685_v16 }
 0x2fe   :  { %v2128_v32 = vmax.f32 %v2000_v0, 0.0  ;;  %v2862_v36 = vunpack.c.l.b16 %v2673_v53 }
 0x300   :  { %v2583_v22 = vsel %vm2162_vm14, %v2128_v32, -inf }
 0x301   :  { %v1869_v52 = vpop.f32.mrf.mxu2  ;;  %3172 = vmatpush.bf16.msrb.mxu1 %v3684_v54  ;;  %v3134_v32 = vpop.f32.mrf.mxu1 }
 0x302   :  { %v1870_v33 = vadd.f32 %v1869_v52, %v1780_v51  ;;  %v2934_v52 = vsel %vm2881_vm10, %v2862_v36, %v5359_v58 }
 0x303   :  { %v1783_v9 = vpop.f32.mrf.mxu0 }
 0x304   :  { %v2004_v55 = vadd.f32 %v5226_v2, %v1870_v33  ;;  %v2557_v2 = vmax.f32 %v2555_v39, %v2556_v4 }
 0x306   :  { %v2132_v24 = vmax.f32 %v2004_v55, 0.0  ;;  %v2558_v41 = vrot.slane %v2557_v2, 2  ;;  %v3146_v55 = vpop.f32.mrf.mxu3 }
 0x308   :  { %v2584_v43 = vsel %vm2162_vm14, %v2132_v24, -inf  ;;  %v2559_v28 = vmax.f32 %v2557_v2, %v2558_v41  ;;  %v3701_v24 = vld [vmem:[%s5395_s4] ss:$0 sm:$0xff] }
 0x309   :  { %v2585_v13 = vmax.f32 %v2583_v22, %v2584_v43  ;;  %v1872_v1 = vpop.f32.mrf.mxu2  ;;  %v3135_v62 = vadd.f32 %v3701_v24, %v3134_v32 }
 0x30a   :  { %v1873_v18 = vadd.f32 %v1872_v1, %v1783_v9  ;;  %v2560_v25 = vrot.slane %v2559_v28, 1  ;;  %v3133_v9 = vadd.f32 %v3701_v24, %v3132_v46 }
 0x30b   :  { %v2586_v42 = vrot.slane %v2585_v13, 4  ;;  %v1785_v63 = vpop.f32.mrf.mxu0 }
 0x30c   :  { %v2008_v23 = vadd.f32 %v3708_v49, %v1873_v18  ;;  %v2561_v21 = vmax.f32 %v2559_v28, %v2560_v25  ;;  %v3147_v43 = vadd.f32 %v3146_v55, %v3133_v9 }
 0x30d   :  { %v2587_v61 = vmax.f32 %v2585_v13, %v2586_v42 }
 0x30e   :  { %v2136_v27 = vmax.f32 %v2008_v23, 0.0  ;;  %v2677_v17 = vpack.c.bf16 %v2561_v21, %v2561_v21  ;;  %v3148_v16 = vpop.f32.mrf.mxu3 }
 0x30f   :  { %v2588_v34 = vrot.slane %v2587_v61, 2  ;;  %v3149_v4 = vadd.f32 %v3148_v16, %v3135_v62 }
 0x310   :  { %v2613_v3 = vsel %vm2162_vm14, %v2136_v27, -inf  ;;  %v2866_v14 = vunpack.c.l.b16 %v2677_v17 }
 0x311   :  { %v1874_v7 = vpop.f32.mrf.mxu2  ;;  %v2589_v6 = vmax.f32 %v2587_v61, %v2588_v34 }
 0x312   :  { %v1875_v26 = vadd.f32 %v1874_v7, %v1785_v63  ;;  %v2935_v57 = vsel %vm2883_vm11, %v2866_v14, %v2934_v52 }
 0x313   :  { %v2590_v19 = vrot.slane %v2589_v6, 1 }
 0x314   :  { %v2012_v12 = vadd.f32 %v3709_v60, %v1875_v26 }
 0x315   :  { %v2591_v45 = vmax.f32 %v2589_v6, %v2590_v19 }
 0x316   :  { %v2140_v20 = vmax.f32 %v2012_v12, 0.0 }
 0x317   :  { %v2681_v51 = vpack.c.bf16 %v2591_v45, %v2591_v45 }
 0x318   :  { %v2614_v10 = vsel %vm2162_vm14, %v2140_v20, -inf }
 0x319   :  { %v2615_v31 = vmax.f32 %v2613_v3, %v2614_v10  ;;  %v2870_v0 = vunpack.c.l.b16 %v2681_v51 }
 0x31b   :  { %v2616_v15 = vrot.slane %v2615_v31, 4  ;;  %v2936_v47 = vsel %vm2885_vm12, %v2870_v0, %v2935_v57 }
 0x31d   :  { %v2617_v59 = vmax.f32 %v2615_v31, %v2616_v15 }
 0x31f   :  { %v2618_v5 = vrot.slane %v2617_v59, 2 }
 0x321   :  { %v2619_v29 = vmax.f32 %v2617_v59, %v2618_v5 }
 0x323   :  { %v2620_v8 = vrot.slane %v2619_v29, 1 }
 0x325   :  { %v2621_v30 = vmax.f32 %v2619_v29, %v2620_v8 }
 0x327   :  { %v2685_v44 = vpack.c.bf16 %v2621_v30, %v2621_v30 }
 0x329   :  { %v2874_v33 = vunpack.c.l.b16 %v2685_v44 }
 0x32b   :  { %v2937_v40 = vsel %vm2887_vm13, %v2874_v33, %v2936_v47  ;;  %v3160_v39 = vpop.f32.mrf.mxu0 }
 0x32c   :  { %v2941_v37 = vpack.c.b16 %v2937_v40, %v5340_v50  ;;  %v3161_v13 = vadd.f32 %v3160_v39, %v3147_v43 }
 0x32e   :  { %3603 = vmatmul.msk.bf16.vlgmr.msrb.gmra.mxu1 %vm2162_vm14, %v2941_v37 }
 0x333   :  { %v3162_v22 = vpop.f32.mrf.mxu0 }
 0x334   :  { %v3163_v1 = vadd.f32 %v3162_v22, %v3149_v4 }
 0x3ab   :  { %v3174_v58 = vpop.f32.mrf.mxu1 }
 0x3ac   :  { %v3175_v54 = vadd.f32 %v3174_v58, %v3161_v13 }
 0x3b3   :  { %v3176_v50 = vpop.f32.mrf.mxu1 }
 0x3b4   :  { %v3177_v42 = vadd.f32 %v3176_v50, %v3163_v1 }
 0x3b6   :  { %v3691_v35 = vpack.c.bf16 %v3177_v42, %v3175_v54 }
 0x3b8   :  { %3692 = vst [vmem:[#allocation7] sm:$0xff] %v3691_v35  }
 0x3b9   :  { %3195 = dma.vmem_to_hbm [thread:$0]  %s3188_s20, 128, %s3190_s22, [#allocation4], %s3792_s30, %s3792_s30, %s3793_s6  }
 0x3ba   :  { %3786 = dma.done.wait [#allocation4], 128  }
 0x3bb   :  { %3787 = vsyncadd [#allocation4], 4294967168 }
 0x3bc   :  { %3200 = vsyncpa [#allocation3], 1 }
 0x3bd   :  { %3201 = vsyncpa [#allocation6], 1 }
 0x3be   :  { %3202 = vsyncpa [#allocation4], 1 }

</bundles_post_ra>
